<compile_context>
chip_gen: v6e
topology: v6e:2x2x1
jax: 0.10.0
libtpu: 0.0.40
codegen_flags: <defaults>
</compile_context>

<pallas_src>
import jax
import jax.numpy as jnp
from jax.experimental import pallas as pl
from jax.experimental.pallas import tpu as pltpu

_USE_BF16_MXU = False  # flip on v6e/v7x (and for MXU inputs on v5e); f32 accum stays


# ---------------------------------------------------------------------------
# Small helpers
# ---------------------------------------------------------------------------
def _round_up(v, m):
    return ((v + m - 1) // m) * m


def _mxu_dtype():
    return jnp.bfloat16 if _USE_BF16_MXU else jnp.float32


# ---------------------------------------------------------------------------
# Pallas kernels
# ---------------------------------------------------------------------------
def _conv_relu_pool_kernel(p_ref, w_ref, b_ref, o_ref):
    """Fused conv-GEMM + bias + ReLU + 2x2 max-pool for one row tile.

    p_ref: (4, tm, K) im2col patches, axis 0 = pooling corner.
    The 4 corner dots are unrolled and combined with jnp.maximum; bias + ReLU
    are applied once afterwards (both are monotone, so they commute with max).
    """
    w = w_ref[...]
    y = jnp.dot(p_ref[0], w, preferred_element_type=jnp.float32)
    for c in range(1, 4):
        y = jnp.maximum(y, jnp.dot(p_ref[c], w, preferred_element_type=jnp.float32))
    o_ref[...] = jnp.maximum(y + b_ref[...], 0.0)


def _fc_stack_kernel(x_ref, w1_ref, b1_ref, w2_ref, b2_ref, w3_ref, b3_ref, o_ref):
    """Fused fc1(relu) -> fc2(relu) -> fc3; intermediates never leave VMEM."""
    h = jnp.dot(x_ref[...], w1_ref[...], preferred_element_type=jnp.float32) + b1_ref[...]
    h = jnp.maximum(h, 0.0).astype(w2_ref.dtype)
    h = jnp.dot(h, w2_ref[...], preferred_element_type=jnp.float32) + b2_ref[...]
    h = jnp.maximum(h, 0.0).astype(w3_ref.dtype)
    o_ref[...] = jnp.dot(h, w3_ref[...], preferred_element_type=jnp.float32) + b3_ref[...]


# ---------------------------------------------------------------------------
# pallas_call wrappers
# ---------------------------------------------------------------------------
def conv_relu_pool(patches4, w, b, *, tm=2048):
    """Fused conv-as-GEMM + bias + ReLU + 2x2 max-pool.

    patches4: (4, Mp, K)  im2col patches grouped by pooling corner;
              Mp = N*Hp*Wp rows ordered (n, oh, ow) of the POOLED output.
    w:        (K, Cout), b: (Cout,)
    returns   (Mp, Cout) pooled activation (f32).
    """
    four, mp, k = patches4.shape
    assert four == 4
    k2, cout = w.shape
    assert k == k2 and b.shape == (cout,)

    # Keep >= 2 row tiles so the "parallel" axis can shard across both v7x
    # TensorCores; keep the sublane axis 8-aligned.  (mp >= 25 here, so tm <= mp.)
    tm = max(8, min(tm, _round_up(pl.cdiv(mp, 2), 8)))
    grid_m = pl.cdiv(mp, tm)

    mxu_dt = _mxu_dtype()
    patches4 = patches4.astype(mxu_dt)
    w = w.astype(mxu_dt)
    b2 = b.reshape(1, cout).astype(jnp.float32)

    itemsize = 2 if _USE_BF16_MXU else 4
    cost = pl.CostEstimate(
        flops=2 * 4 * mp * k * cout,
        transcendentals=0,
        bytes_accessed=(4 * mp * k + k * cout) * itemsize + (cout + mp * cout) * 4,
    )

    return pl.pallas_call(
        _conv_relu_pool_kernel,
        out_shape=jax.ShapeDtypeStruct((mp, cout), jnp.float32),
        grid_spec=pltpu.PrefetchScalarGridSpec(
            num_scalar_prefetch=0,
            grid=(grid_m,),
            in_specs=[
                pl.BlockSpec((4, tm, k), lambda i: (0, i, 0)),   # full-dim K: no pad copy
                pl.BlockSpec((k, cout), lambda i: (0, 0)),       # resident weights
                pl.BlockSpec((1, cout), lambda i: (0, 0)),
            ],
            out_specs=pl.BlockSpec((tm, cout), lambda i: (i, 0)),  # true-width output
        ),
        compiler_params=pltpu.CompilerParams(
            dimension_semantics=("parallel",),
            vmem_limit_bytes=32 * 1024 * 1024,
        ),
        cost_estimate=cost,
    )(patches4, w, b2)


def fc_stack(x, w1, b1, w2, b2, w3, b3, *, tm=1024):
    """x:(M,400) -> relu(x@w1+b1) -> relu(@w2+b2) -> @w3+b3, one pallas_call."""
    m, k = x.shape
    h1 = w1.shape[1]
    h2 = w2.shape[1]
    n_out = w3.shape[1]

    m_pad = _round_up(m, 8)                      # tiny pad (< 8 rows) for 8-aligned tiles
    if m_pad != m:
        x = jnp.pad(x, ((0, m_pad - m), (0, 0)))

    tm = max(8, min(tm, _round_up(pl.cdiv(m_pad, 2), 8)))
    grid_m = pl.cdiv(m_pad, tm)

    mxu_dt = _mxu_dtype()
    xp = x.astype(mxu_dt)
    w1 = w1.astype(mxu_dt)
    w2 = w2.astype(mxu_dt)
    w3 = w3.astype(mxu_dt)
    b1 = b1.reshape(1, -1).astype(jnp.float32)
    b2 = b2.reshape(1, -1).astype(jnp.float32)
    b3 = b3.reshape(1, -1).astype(jnp.float32)

    itemsize = 2 if _USE_BF16_MXU else 4
    cost = pl.CostEstimate(
        flops=2 * m_pad * (k * h1 + h1 * h2 + h2 * n_out),
        transcendentals=0,
        bytes_accessed=(m_pad * k + k * h1 + h1 * h2 + h2 * n_out) * itemsize
        + (h1 + h2 + n_out + m_pad * n_out) * 4,
    )

    out = pl.pallas_call(
        _fc_stack_kernel,
        out_shape=jax.ShapeDtypeStruct((m_pad, n_out), jnp.float32),
        grid_spec=pltpu.PrefetchScalarGridSpec(
            num_scalar_prefetch=0,
            grid=(grid_m,),
            in_specs=[
                pl.BlockSpec((tm, k), lambda i: (i, 0)),     # K=400 full-dim, no pad
                pl.BlockSpec((k, h1), lambda i: (0, 0)),
                pl.BlockSpec((1, h1), lambda i: (0, 0)),
                pl.BlockSpec((h1, h2), lambda i: (0, 0)),
                pl.BlockSpec((1, h2), lambda i: (0, 0)),
                pl.BlockSpec((h2, n_out), lambda i: (0, 0)),
                pl.BlockSpec((1, n_out), lambda i: (0, 0)),
            ],
            out_specs=pl.BlockSpec((tm, n_out), lambda i: (i, 0)),
        ),
        compiler_params=pltpu.CompilerParams(
            dimension_semantics=("parallel",),
            vmem_limit_bytes=32 * 1024 * 1024,
        ),
        cost_estimate=cost,
    )(xp, w1, b1, w2, b2, w3, b3)
    return out[:m]


# ---------------------------------------------------------------------------
# Glue: im2col grouped by pooling corner + parameter handling
# ---------------------------------------------------------------------------
def _im2col_corners(x, kh, kw):
    """x: (N,H,W,C) NHWC, valid conv window (kh,kw), output pooled 2x2.

    Returns (4, N*Hp*Wp, kh*kw*C): axis 0 is the 2x2-pool corner (dh,dw),
    rows ordered (n, oh, ow) of the pooled output, patch order (kh, kw, C).
    """
    n, h, w, c = x.shape
    ho, wo = h - kh + 1, w - kw + 1
    # Fusing ReLU+maxpool via corner-max requires even conv output H/W.
    assert ho % 2 == 0 and wo % 2 == 0, "fused ReLU+pool needs even conv output H/W"
    hp, wp = ho // 2, wo // 2
    patches = jnp.stack(
        [x[:, i:i + ho, j:j + wo, :] for i in range(kh) for j in range(kw)],
        axis=3,
    ).reshape(n, ho, wo, kh * kw * c)
    corners = [
        patches[:, dh::2, dw::2, :].reshape(n * hp * wp, kh * kw * c)
        for dh in (0, 1) for dw in (0, 1)
    ]
    return jnp.stack(corners, axis=0)


def init_params(key):
    """Deterministic PyTorch-style uniform(-1/sqrt(fan_in), 1/sqrt(fan_in)) init."""
    def uni(k, shape, fan_in):
        bound = 1.0 / jnp.sqrt(jnp.float32(fan_in))
        return jax.random.uniform(k, shape, jnp.float32, -bound, bound)

    ks = jax.random.split(key, 10)
    return {
        "conv1_w": uni(ks[0], (6, 3, 5, 5), 3 * 5 * 5),
        "conv1_b": uni(ks[1], (6,), 3 * 5 * 5),
        "conv2_w": uni(ks[2], (16, 6, 5, 5), 6 * 5 * 5),
        "conv2_b": uni(ks[3], (16,), 6 * 5 * 5),
        "fc1_w": uni(ks[4], (120, 400), 400),
        "fc1_b": uni(ks[5], (120,), 400),
        "fc2_w": uni(ks[6], (84, 120), 120),
        "fc2_b": uni(ks[7], (84,), 120),
        "fc3_w": uni(ks[8], (10, 84), 84),
        "fc3_b": uni(ks[9], (10,), 84),
    }


@jax.jit
def convnet_forward(x_nchw, params):
    """Matches ConvNet.forward: pool(relu(conv1)), pool(relu(conv2)), fc1/2/3."""
    n = x_nchw.shape[0]
    x = jnp.transpose(x_nchw, (0, 2, 3, 1))                  # NCHW -> NHWC (N,32,32,3)

    # conv1 (3->6, 5x5 valid) + ReLU + 2x2 pool, fused -> (N,14,14,6)
    w1 = jnp.transpose(params["conv1_w"], (2, 3, 1, 0)).reshape(75, 6)
    p1 = _im2col_corners(x, 5, 5)                             # (4, N*196, 75)
    y = conv_relu_pool(p1, w1, params["conv1_b"]).reshape(n, 14, 14, 6)

    # conv2 (6->16, 5x5 valid) + ReLU + 2x2 pool, fused -> (N,5,5,16)
    w2 = jnp.transpose(params["conv2_w"], (2, 3, 1, 0)).reshape(150, 16)
    p2 = _im2col_corners(y, 5, 5)                             # (4, N*25, 150)
    y = conv_relu_pool(p2, w2, params["conv2_b"]).reshape(n, 5, 5, 16)

    # flatten in PyTorch's NCHW order: x.view(-1, 16*5*5)
    y = jnp.transpose(y, (0, 3, 1, 2)).reshape(n, 16 * 5 * 5)

    # fc1 + relu + fc2 + relu + fc3 in one fused kernel
    return fc_stack(
        y,
        params["fc1_w"].T, params["fc1_b"],
        params["fc2_w"].T, params["fc2_b"],
        params["fc3_w"].T, params["fc3_b"],
    )                                                         # (N, 10)


def _reference_forward(x_nchw, params):
    """Pure-XLA reference matching the PyTorch module (for a correctness check)."""
    y = jax.lax.conv_general_dilated(
        x_nchw, params["conv1_w"], (1, 1), "VALID",
        dimension_numbers=("NCHW", "OIHW", "NCHW"))
    y = jax.nn.relu(y + params["conv1_b"][None, :, None, None])
    y = jax.lax.reduce_window(y, -jnp.inf, jax.lax.max, (1, 1, 2, 2), (1, 1, 2, 2), "VALID")
    y = jax.lax.conv_general_dilated(
        y, params["conv2_w"], (1, 1), "VALID",
        dimension_numbers=("NCHW", "OIHW", "NCHW"))
    y = jax.nn.relu(y + params["conv2_b"][None, :, None, None])
    y = jax.lax.reduce_window(y, -jnp.inf, jax.lax.max, (1, 1, 2, 2), (1, 1, 2, 2), "VALID")
    y = y.reshape(y.shape[0], -1)
    y = jax.nn.relu(y @ params["fc1_w"].T + params["fc1_b"])
    y = jax.nn.relu(y @ params["fc2_w"].T + params["fc2_b"])
    return y @ params["fc3_w"].T + params["fc3_b"]


if __name__ == "__main__":
    key = jax.random.PRNGKey(0)
    k_x, k_p = jax.random.split(key)
    # Spatial size must be 32x32 so the flatten hits 16*5*5 exactly (LeNet/CIFAR).
    x = jax.random.normal(k_x, (2, 3, 32, 32), jnp.float32)
    params = init_params(k_p)

    out = jax.block_until_ready(convnet_forward(x, params))
    assert out.shape == (2, 10) and out.dtype == jnp.float32

    ref = jax.block_until_ready(_reference_forward(x, params))
    assert jnp.allclose(out, ref, atol=2e-3, rtol=2e-3), "mismatch vs XLA reference"

    print("KERNEL_OK")
</pallas_src>

<mosaic_0001>
module attributes {stable_mosaic.version = 11 : i64} {
  func.func @_conv_relu_pool_kernel(%arg0: i32, %arg1: memref<4x200x75xf32, #tpu.memory_space<vmem>>, %arg2: memref<75x6xf32, #tpu.memory_space<vmem>>, %arg3: memref<1x6xf32, #tpu.memory_space<vmem>>, %arg4: memref<200x6xf32, #tpu.memory_space<vmem>>) attributes {dimension_semantics = [#tpu.dimension_semantics<parallel>], iteration_bounds = array<i64: 2>, scalar_prefetch = 0 : i64, scratch_operands = 0 : i64, tpu.core_type = #tpu.core_type<tc>, window_params = [{transform_indices = @transform_0, window_bounds = array<i64: 4, 200, 75>}, {pipeline_mode = #tpu.pipeline_mode<synchronous>, transform_indices = @transform_1, window_bounds = array<i64: 75, 6>}, {pipeline_mode = #tpu.pipeline_mode<synchronous>, transform_indices = @transform_2, window_bounds = array<i64: 1, 6>}, {transform_indices = @transform_3, window_bounds = array<i64: 200, 6>}]} {
    %c0 = arith.constant 0 : index
    %c0_0 = arith.constant 0 : index
    %0 = vector.load %arg2[%c0, %c0_0] : memref<75x6xf32, #tpu.memory_space<vmem>>, vector<75x6xf32>
    %c0_1 = arith.constant 0 : index
    %c0_2 = arith.constant 0 : index
    %c0_3 = arith.constant 0 : index
    %1 = vector.load %arg1[%c0_1, %c0_2, %c0_3] : memref<4x200x75xf32, #tpu.memory_space<vmem>>, vector<1x200x75xf32>
    %2 = vector.shape_cast %1 : vector<1x200x75xf32> to vector<200x75xf32>
    %cst = arith.constant dense<0.000000e+00> : vector<200x6xf32>
    %3 = tpu.matmul %2, %0, %cst {dimension_numbers = #tpu.dot_dimension_numbers<[1], [0], [0], [1], [0, 0, 1, 1], [], []>} : vector<200x75xf32>, vector<75x6xf32>, vector<200x6xf32> -> vector<200x6xf32>
    %c1 = arith.constant 1 : index
    %c0_4 = arith.constant 0 : index
    %c0_5 = arith.constant 0 : index
    %4 = vector.load %arg1[%c1, %c0_4, %c0_5] : memref<4x200x75xf32, #tpu.memory_space<vmem>>, vector<1x200x75xf32>
    %5 = vector.shape_cast %4 : vector<1x200x75xf32> to vector<200x75xf32>
    %cst_6 = arith.constant dense<0.000000e+00> : vector<200x6xf32>
    %6 = tpu.matmul %5, %0, %cst_6 {dimension_numbers = #tpu.dot_dimension_numbers<[1], [0], [0], [1], [0, 0, 1, 1], [], []>} : vector<200x75xf32>, vector<75x6xf32>, vector<200x6xf32> -> vector<200x6xf32>
    %7 = arith.maximumf %3, %6 : vector<200x6xf32>
    %c2 = arith.constant 2 : index
    %c0_7 = arith.constant 0 : index
    %c0_8 = arith.constant 0 : index
    %8 = vector.load %arg1[%c2, %c0_7, %c0_8] : memref<4x200x75xf32, #tpu.memory_space<vmem>>, vector<1x200x75xf32>
    %9 = vector.shape_cast %8 : vector<1x200x75xf32> to vector<200x75xf32>
    %cst_9 = arith.constant dense<0.000000e+00> : vector<200x6xf32>
    %10 = tpu.matmul %9, %0, %cst_9 {dimension_numbers = #tpu.dot_dimension_numbers<[1], [0], [0], [1], [0, 0, 1, 1], [], []>} : vector<200x75xf32>, vector<75x6xf32>, vector<200x6xf32> -> vector<200x6xf32>
    %11 = arith.maximumf %7, %10 : vector<200x6xf32>
    %c3 = arith.constant 3 : index
    %c0_10 = arith.constant 0 : index
    %c0_11 = arith.constant 0 : index
    %12 = vector.load %arg1[%c3, %c0_10, %c0_11] : memref<4x200x75xf32, #tpu.memory_space<vmem>>, vector<1x200x75xf32>
    %13 = vector.shape_cast %12 : vector<1x200x75xf32> to vector<200x75xf32>
    %cst_12 = arith.constant dense<0.000000e+00> : vector<200x6xf32>
    %14 = tpu.matmul %13, %0, %cst_12 {dimension_numbers = #tpu.dot_dimension_numbers<[1], [0], [0], [1], [0, 0, 1, 1], [], []>} : vector<200x75xf32>, vector<75x6xf32>, vector<200x6xf32> -> vector<200x6xf32>
    %15 = arith.maximumf %11, %14 : vector<200x6xf32>
    %c0_13 = arith.constant 0 : index
    %c0_14 = arith.constant 0 : index
    %16 = vector.load %arg3[%c0_13, %c0_14] : memref<1x6xf32, #tpu.memory_space<vmem>>, vector<1x6xf32>
    %17 = vector.broadcast %16 : vector<1x6xf32> to vector<200x6xf32>
    %18 = arith.addf %15, %17 : vector<200x6xf32>
    %cst_15 = arith.constant 0.000000e+00 : f32
    %19 = vector.broadcast %cst_15 : f32 to vector<200x6xf32>
    %20 = arith.maximumf %18, %19 : vector<200x6xf32>
    %c0_16 = arith.constant 0 : index
    %c0_17 = arith.constant 0 : index
    %21 = vector.load %arg4[%c0_16, %c0_17] : memref<200x6xf32, #tpu.memory_space<vmem>>, vector<200x6xf32>
    tpu.vector_store %arg4[%c0_16, %c0_17], %20 {strides = array<i32>} : memref<200x6xf32, #tpu.memory_space<vmem>>, vector<200x6xf32>,
    return
  }
  func.func @transform_0(%arg0: i32) -> (i32, i32, i32) {
    %c0_i32 = arith.constant 0 : i32
    %c0_i32_0 = arith.constant 0 : i32
    %c0_i32_1 = arith.constant 0 : i32
    return %c0_i32, %arg0, %c0_i32_0 : i32, i32, i32
  }
  func.func @transform_1(%arg0: i32) -> (i32, i32) {
    %c0_i32 = arith.constant 0 : i32
    %c0_i32_0 = arith.constant 0 : i32
    %c0_i32_1 = arith.constant 0 : i32
    return %c0_i32, %c0_i32_0 : i32, i32
  }
  func.func @transform_2(%arg0: i32) -> (i32, i32) {
    %c0_i32 = arith.constant 0 : i32
    %c0_i32_0 = arith.constant 0 : i32
    %c0_i32_1 = arith.constant 0 : i32
    return %c0_i32, %c0_i32_0 : i32, i32
  }
  func.func @transform_3(%arg0: i32) -> (i32, i32) {
    %c0_i32 = arith.constant 0 : i32
    %c0_i32_0 = arith.constant 0 : i32
    return %arg0, %c0_i32 : i32, i32
  }
}

module attributes {stable_mosaic.version = 11 : i64} {
  func.func @_conv_relu_pool_kernel(%arg0: i32, %arg1: memref<4x32x150xf32, #tpu.memory_space<vmem>>, %arg2: memref<150x16xf32, #tpu.memory_space<vmem>>, %arg3: memref<1x16xf32, #tpu.memory_space<vmem>>, %arg4: memref<32x16xf32, #tpu.memory_space<vmem>>) attributes {dimension_semantics = [#tpu.dimension_semantics<parallel>], iteration_bounds = array<i64: 2>, scalar_prefetch = 0 : i64, scratch_operands = 0 : i64, tpu.core_type = #tpu.core_type<tc>, window_params = [{transform_indices = @transform_0, window_bounds = array<i64: 4, 32, 150>}, {pipeline_mode = #tpu.pipeline_mode<synchronous>, transform_indices = @transform_1, window_bounds = array<i64: 150, 16>}, {pipeline_mode = #tpu.pipeline_mode<synchronous>, transform_indices = @transform_2, window_bounds = array<i64: 1, 16>}, {transform_indices = @transform_3, window_bounds = array<i64: 32, 16>}]} {
    %c0 = arith.constant 0 : index
    %c0_0 = arith.constant 0 : index
    %0 = vector.load %arg2[%c0, %c0_0] : memref<150x16xf32, #tpu.memory_space<vmem>>, vector<150x16xf32>
    %c0_1 = arith.constant 0 : index
    %c0_2 = arith.constant 0 : index
    %c0_3 = arith.constant 0 : index
    %1 = vector.load %arg1[%c0_1, %c0_2, %c0_3] : memref<4x32x150xf32, #tpu.memory_space<vmem>>, vector<1x32x150xf32>
    %2 = vector.shape_cast %1 : vector<1x32x150xf32> to vector<32x150xf32>
    %cst = arith.constant dense<0.000000e+00> : vector<32x16xf32>
    %3 = tpu.matmul %2, %0, %cst {dimension_numbers = #tpu.dot_dimension_numbers<[1], [0], [0], [1], [0, 0, 1, 1], [], []>} : vector<32x150xf32>, vector<150x16xf32>, vector<32x16xf32> -> vector<32x16xf32>
    %c1 = arith.constant 1 : index
    %c0_4 = arith.constant 0 : index
    %c0_5 = arith.constant 0 : index
    %4 = vector.load %arg1[%c1, %c0_4, %c0_5] : memref<4x32x150xf32, #tpu.memory_space<vmem>>, vector<1x32x150xf32>
    %5 = vector.shape_cast %4 : vector<1x32x150xf32> to vector<32x150xf32>
    %cst_6 = arith.constant dense<0.000000e+00> : vector<32x16xf32>
    %6 = tpu.matmul %5, %0, %cst_6 {dimension_numbers = #tpu.dot_dimension_numbers<[1], [0], [0], [1], [0, 0, 1, 1], [], []>} : vector<32x150xf32>, vector<150x16xf32>, vector<32x16xf32> -> vector<32x16xf32>
    %7 = arith.maximumf %3, %6 : vector<32x16xf32>
    %c2 = arith.constant 2 : index
    %c0_7 = arith.constant 0 : index
    %c0_8 = arith.constant 0 : index
    %8 = vector.load %arg1[%c2, %c0_7, %c0_8] : memref<4x32x150xf32, #tpu.memory_space<vmem>>, vector<1x32x150xf32>
    %9 = vector.shape_cast %8 : vector<1x32x150xf32> to vector<32x150xf32>
    %cst_9 = arith.constant dense<0.000000e+00> : vector<32x16xf32>
    %10 = tpu.matmul %9, %0, %cst_9 {dimension_numbers = #tpu.dot_dimension_numbers<[1], [0], [0], [1], [0, 0, 1, 1], [], []>} : vector<32x150xf32>, vector<150x16xf32>, vector<32x16xf32> -> vector<32x16xf32>
    %11 = arith.maximumf %7, %10 : vector<32x16xf32>
    %c3 = arith.constant 3 : index
    %c0_10 = arith.constant 0 : index
    %c0_11 = arith.constant 0 : index
    %12 = vector.load %arg1[%c3, %c0_10, %c0_11] : memref<4x32x150xf32, #tpu.memory_space<vmem>>, vector<1x32x150xf32>
    %13 = vector.shape_cast %12 : vector<1x32x150xf32> to vector<32x150xf32>
    %cst_12 = arith.constant dense<0.000000e+00> : vector<32x16xf32>
    %14 = tpu.matmul %13, %0, %cst_12 {dimension_numbers = #tpu.dot_dimension_numbers<[1], [0], [0], [1], [0, 0, 1, 1], [], []>} : vector<32x150xf32>, vector<150x16xf32>, vector<32x16xf32> -> vector<32x16xf32>
    %15 = arith.maximumf %11, %14 : vector<32x16xf32>
    %c0_13 = arith.constant 0 : index
    %c0_14 = arith.constant 0 : index
    %16 = vector.load %arg3[%c0_13, %c0_14] : memref<1x16xf32, #tpu.memory_space<vmem>>, vector<1x16xf32>
    %17 = vector.broadcast %16 : vector<1x16xf32> to vector<32x16xf32>
    %18 = arith.addf %15, %17 : vector<32x16xf32>
    %cst_15 = arith.constant 0.000000e+00 : f32
    %19 = vector.broadcast %cst_15 : f32 to vector<32x16xf32>
    %20 = arith.maximumf %18, %19 : vector<32x16xf32>
    %c0_16 = arith.constant 0 : index
    %c0_17 = arith.constant 0 : index
    %21 = vector.load %arg4[%c0_16, %c0_17] : memref<32x16xf32, #tpu.memory_space<vmem>>, vector<32x16xf32>
    tpu.vector_store %arg4[%c0_16, %c0_17], %20 {strides = array<i32>} : memref<32x16xf32, #tpu.memory_space<vmem>>, vector<32x16xf32>,
    return
  }
  func.func @transform_0(%arg0: i32) -> (i32, i32, i32) {
    %c0_i32 = arith.constant 0 : i32
    %c0_i32_0 = arith.constant 0 : i32
    %c0_i32_1 = arith.constant 0 : i32
    return %c0_i32, %arg0, %c0_i32_0 : i32, i32, i32
  }
  func.func @transform_1(%arg0: i32) -> (i32, i32) {
    %c0_i32 = arith.constant 0 : i32
    %c0_i32_0 = arith.constant 0 : i32
    %c0_i32_1 = arith.constant 0 : i32
    return %c0_i32, %c0_i32_0 : i32, i32
  }
  func.func @transform_2(%arg0: i32) -> (i32, i32) {
    %c0_i32 = arith.constant 0 : i32
    %c0_i32_0 = arith.constant 0 : i32
    %c0_i32_1 = arith.constant 0 : i32
    return %c0_i32, %c0_i32_0 : i32, i32
  }
  func.func @transform_3(%arg0: i32) -> (i32, i32) {
    %c0_i32 = arith.constant 0 : i32
    %c0_i32_0 = arith.constant 0 : i32
    return %arg0, %c0_i32 : i32, i32
  }
}

module attributes {stable_mosaic.version = 11 : i64} {
  func.func @_fc_stack_kernel(%arg0: i32, %arg1: memref<8x400xf32, #tpu.memory_space<vmem>>, %arg2: memref<400x120xf32, #tpu.memory_space<vmem>>, %arg3: memref<1x120xf32, #tpu.memory_space<vmem>>, %arg4: memref<120x84xf32, #tpu.memory_space<vmem>>, %arg5: memref<1x84xf32, #tpu.memory_space<vmem>>, %arg6: memref<84x10xf32, #tpu.memory_space<vmem>>, %arg7: memref<1x10xf32, #tpu.memory_space<vmem>>, %arg8: memref<8x10xf32, #tpu.memory_space<vmem>>) attributes {dimension_semantics = [#tpu.dimension_semantics<parallel>], iteration_bounds = array<i64: 1>, scalar_prefetch = 0 : i64, scratch_operands = 0 : i64, tpu.core_type = #tpu.core_type<tc>, window_params = [{transform_indices = @transform_0, window_bounds = array<i64: 8, 400>}, {pipeline_mode = #tpu.pipeline_mode<synchronous>, transform_indices = @transform_1, window_bounds = array<i64: 400, 120>}, {pipeline_mode = #tpu.pipeline_mode<synchronous>, transform_indices = @transform_2, window_bounds = array<i64: 1, 120>}, {pipeline_mode = #tpu.pipeline_mode<synchronous>, transform_indices = @transform_3, window_bounds = array<i64: 120, 84>}, {pipeline_mode = #tpu.pipeline_mode<synchronous>, transform_indices = @transform_4, window_bounds = array<i64: 1, 84>}, {pipeline_mode = #tpu.pipeline_mode<synchronous>, transform_indices = @transform_5, window_bounds = array<i64: 84, 10>}, {pipeline_mode = #tpu.pipeline_mode<synchronous>, transform_indices = @transform_6, window_bounds = array<i64: 1, 10>}, {transform_indices = @transform_7, window_bounds = array<i64: 8, 10>}]} {
    %c0 = arith.constant 0 : index
    %c0_0 = arith.constant 0 : index
    %0 = vector.load %arg1[%c0, %c0_0] : memref<8x400xf32, #tpu.memory_space<vmem>>, vector<8x400xf32>
    %c0_1 = arith.constant 0 : index
    %c0_2 = arith.constant 0 : index
    %1 = vector.load %arg2[%c0_1, %c0_2] : memref<400x120xf32, #tpu.memory_space<vmem>>, vector<400x120xf32>
    %cst = arith.constant dense<0.000000e+00> : vector<8x120xf32>
    %2 = tpu.matmul %0, %1, %cst {dimension_numbers = #tpu.dot_dimension_numbers<[1], [0], [0], [1], [0, 0, 1, 1], [], []>} : vector<8x400xf32>, vector<400x120xf32>, vector<8x120xf32> -> vector<8x120xf32>
    %c0_3 = arith.constant 0 : index
    %c0_4 = arith.constant 0 : index
    %3 = vector.load %arg3[%c0_3, %c0_4] : memref<1x120xf32, #tpu.memory_space<vmem>>, vector<1x120xf32>
    %4 = vector.broadcast %3 : vector<1x120xf32> to vector<8x120xf32>
    %5 = arith.addf %2, %4 : vector<8x120xf32>
    %cst_5 = arith.constant 0.000000e+00 : f32
    %6 = vector.broadcast %cst_5 : f32 to vector<8x120xf32>
    %7 = arith.maximumf %5, %6 : vector<8x120xf32>
    %c0_6 = arith.constant 0 : index
    %c0_7 = arith.constant 0 : index
    %8 = vector.load %arg4[%c0_6, %c0_7] : memref<120x84xf32, #tpu.memory_space<vmem>>, vector<120x84xf32>
    %cst_8 = arith.constant dense<0.000000e+00> : vector<8x84xf32>
    %9 = tpu.matmul %7, %8, %cst_8 {dimension_numbers = #tpu.dot_dimension_numbers<[1], [0], [0], [1], [0, 0, 1, 1], [], []>} : vector<8x120xf32>, vector<120x84xf32>, vector<8x84xf32> -> vector<8x84xf32>
    %c0_9 = arith.constant 0 : index
    %c0_10 = arith.constant 0 : index
    %10 = vector.load %arg5[%c0_9, %c0_10] : memref<1x84xf32, #tpu.memory_space<vmem>>, vector<1x84xf32>
    %11 = vector.broadcast %10 : vector<1x84xf32> to vector<8x84xf32>
    %12 = arith.addf %9, %11 : vector<8x84xf32>
    %cst_11 = arith.constant 0.000000e+00 : f32
    %13 = vector.broadcast %cst_11 : f32 to vector<8x84xf32>
    %14 = arith.maximumf %12, %13 : vector<8x84xf32>
    %c0_12 = arith.constant 0 : index
    %c0_13 = arith.constant 0 : index
    %15 = vector.load %arg6[%c0_12, %c0_13] : memref<84x10xf32, #tpu.memory_space<vmem>>, vector<84x10xf32>
    %cst_14 = arith.constant dense<0.000000e+00> : vector<8x10xf32>
    %16 = tpu.matmul %14, %15, %cst_14 {dimension_numbers = #tpu.dot_dimension_numbers<[1], [0], [0], [1], [0, 0, 1, 1], [], []>} : vector<8x84xf32>, vector<84x10xf32>, vector<8x10xf32> -> vector<8x10xf32>
    %c0_15 = arith.constant 0 : index
    %c0_16 = arith.constant 0 : index
    %17 = vector.load %arg7[%c0_15, %c0_16] : memref<1x10xf32, #tpu.memory_space<vmem>>, vector<1x10xf32>
    %18 = vector.broadcast %17 : vector<1x10xf32> to vector<8x10xf32>
    %19 = arith.addf %16, %18 : vector<8x10xf32>
    %c0_17 = arith.constant 0 : index
    %c0_18 = arith.constant 0 : index
    %20 = vector.load %arg8[%c0_17, %c0_18] : memref<8x10xf32, #tpu.memory_space<vmem>>, vector<8x10xf32>
    tpu.vector_store %arg8[%c0_17, %c0_18], %19 {strides = array<i32>} : memref<8x10xf32, #tpu.memory_space<vmem>>, vector<8x10xf32>,
    return
  }
  func.func @transform_0(%arg0: i32) -> (i32, i32) {
    %c0_i32 = arith.constant 0 : i32
    %c0_i32_0 = arith.constant 0 : i32
    return %arg0, %c0_i32 : i32, i32
  }
  func.func @transform_1(%arg0: i32) -> (i32, i32) {
    %c0_i32 = arith.constant 0 : i32
    %c0_i32_0 = arith.constant 0 : i32
    %c0_i32_1 = arith.constant 0 : i32
    return %c0_i32, %c0_i32_0 : i32, i32
  }
  func.func @transform_2(%arg0: i32) -> (i32, i32) {
    %c0_i32 = arith.constant 0 : i32
    %c0_i32_0 = arith.constant 0 : i32
    %c0_i32_1 = arith.constant 0 : i32
    return %c0_i32, %c0_i32_0 : i32, i32
  }
  func.func @transform_3(%arg0: i32) -> (i32, i32) {
    %c0_i32 = arith.constant 0 : i32
    %c0_i32_0 = arith.constant 0 : i32
    %c0_i32_1 = arith.constant 0 : i32
    return %c0_i32, %c0_i32_0 : i32, i32
  }
  func.func @transform_4(%arg0: i32) -> (i32, i32) {
    %c0_i32 = arith.constant 0 : i32
    %c0_i32_0 = arith.constant 0 : i32
    %c0_i32_1 = arith.constant 0 : i32
    return %c0_i32, %c0_i32_0 : i32, i32
  }
  func.func @transform_5(%arg0: i32) -> (i32, i32) {
    %c0_i32 = arith.constant 0 : i32
    %c0_i32_0 = arith.constant 0 : i32
    %c0_i32_1 = arith.constant 0 : i32
    return %c0_i32, %c0_i32_0 : i32, i32
  }
  func.func @transform_6(%arg0: i32) -> (i32, i32) {
    %c0_i32 = arith.constant 0 : i32
    %c0_i32_0 = arith.constant 0 : i32
    %c0_i32_1 = arith.constant 0 : i32
    return %c0_i32, %c0_i32_0 : i32, i32
  }
  func.func @transform_7(%arg0: i32) -> (i32, i32) {
    %c0_i32 = arith.constant 0 : i32
    %c0_i32_0 = arith.constant 0 : i32
    return %arg0, %c0_i32 : i32, i32
  }
}

</mosaic_0001>

<bundles_post_ra>
// kernel: convnet_forward.3
= control target key start
LH: loop header
LB: loop body
LE: loop exit
PB: predicated region body
PF: predicated region fallthrough
CT: control target
= control target key end

     0   :  { %s3322_s12 = smov 0   ;;  %s3324_s13 = smov 0   ;;  %s4540_s0 = inlined_call_operand.vmem [shape: f32[4,392,75], index: 0, kind: input, shape index: {}]   ;;  %s4541_s1 = inlined_call_operand.vmem [shape: f32[75,6], index: 1, kind: input, shape index: {}]   ;;  %s4542_s2 = inlined_call_operand.vmem [shape: f32[1,6], index: 2, kind: input, shape index: {}]   ;;  %s4543_s3 = inlined_call_operand.vmem [shape: f32[392,6], index: 3, kind: output, shape index: {}]  }
   0x1   :  { %s3326_s14 = smov 0  }
   0x2 LB: > { %s3338_s15 = sadd.s32 4294967295, %s3234_s14   ;;  %s3341_s16 = sadd.s32 1, %s3234_s14   ;;  %s3234_s14 = sphi %s3326_s14, %s4582_s14   ;;  %s3230_s13 = sphi %s3324_s13, %s4581_s13   ;;  %s3226_s12 = sphi %s3322_s12, %s4580_s12  }
   0x3   : > { %s17_s17 = ssub.s32 %s3234_s14, %s3341_s16  ;;  %s20_s18 = sadd.s32 1, %s3230_s13 }
   0x4   : > { %p18_p0 = scmp.eq.s32.totalorder %s17_s17, 0  ;;  %p27_p1 = scmp.ne.s32.totalorder %s3230_s13, %s3226_s12 }
   0x5   : > { %p28_p2 = scmp.eq.s32.totalorder %s3234_s14, 0  ;;  %p99_p3 = scmp.eq.s32.totalorder %s3338_s15, 1 }
   0x6   : > { %s3351_s19 = scalar_select %p18_p0, %s3230_s13, %s20_s18  }
   0x7   : > { %p29_p4 = por %p28_p2, %p27_p1  ;;  %p3353_p5 = por %p99_p3, %p27_p1 }
   0x8   : > { %p2255_p6 = scmp.ge.s32.totalorder %s3234_s14, 2 }
   0xa   : > { %127 = sbr.rel (%p2255_p6) target bundleno = 85 (0x55), region = 24 }
   0xf   : > { %130 = sbr.rel (!%p29_p4) target bundleno = 85 (0x55), region = 28  ;;  %s132_s21 = sand.u32 (%p29_p4), 1, %s3230_s13  }
  0x10   : > { %s135_s22 = smul.u32 (%p29_p4), 25, %s3234_s14 }
  0x11   : > { %s2986_s23 = smul.u32 (%p29_p4), 800, %s132_s21 }
  0x12   : > { %s136_s24 = ssub.s32 (%p29_p4), 49, %s135_s22  ;;  %s2462_s25 = smul.u32 (%p29_p4), 200, %s3234_s14 }
  0x13   : > { %p137_p7 = scmp.lt.s32.totalorder (%p29_p4), %s136_s24, 25  ;;  %s3369_s30 = scalar_lea.vmem (%p29_p4), [#allocation2], %s2986_s23  }
  0x14   : > { %s3364_s28 = scalar_lea.vmem %s4540_s0, %s2462_s25  }
  0x15   : > { %s4584_s24 = smov (!%p137_p7, %s136_s24), 25 }
  0x16   : > { %s2256_s29 = sshll.u32 %s4584_s24, 9 }
  0x17   : > { %p2259_p8 = scmp.eq.s32.totalorder %s2256_s29, 0 }
  0x18   : > { %s3372_s4 = sshrl.u32 (!%p2259_p8), %s4584_s24, 4 }
  0x19   : > { %145 = sbr.rel (%p2259_p8) target bundleno = 85 (0x55), region = 32  ;;  %p2260_p9 = scmp.le.s32.totalorder (!%p2259_p8), %s3372_s4, 0 }
  0x1e   : > { %2181 = sbr.rel (%p2260_p9) target bundleno = 68 (0x44), region = 184  ;;  %s4545_s5 = smov (!%p2260_p9), %s3369_s30 }
  0x1f   : > { %s4546_s6 = smov (!%p2260_p9), %s3364_s28  ;;  %s3381_s7 = smov (!%p2260_p9), 0  }
  0x20   : > { %s3383_s8 = smov (!%p2260_p9), 0  }
  0x23 LB: >> { %v340_v0 = vld [vmem:[%s3242_s6] sm:$0xff]  ;;  %v342_v1 = vld [vmem:[%s3242_s6 + $0x8] sm:$0xff]  ;;  %v344_v2 = vld [vmem:[%s3242_s6 + $0x10] sm:$0xff]  ;;  %s468_s9 = sadd.s32 1, %s3246_s7  ;;  %s334_s8 = sadd.s32 1, %s3250_s8   ;;  %s3250_s8 = sphi %s3383_s8, %s334_s8   ;;  %s3246_s7 = sphi %s3381_s7, %s4549_s7   ;;  %s3242_s6 = sphi %s4546_s6, %s4548_s6   ;;  %s3238_s5 = sphi %s4545_s5, %s4547_s5  }
  0x24   : >> { %341 = vst [vmem:[%s3238_s5] sm:$0xff] %v340_v0  ;;  %343 = vst [vmem:[%s3238_s5 + $0x8] sm:$0xff] %v342_v1  ;;  %v346_v3 = vld [vmem:[%s3242_s6 + $0x18] sm:$0xff]  ;;  %v348_v4 = vld [vmem:[%s3242_s6 + $0x20] sm:$0xff]  ;;  %p469_p10 = scmp.ge.s32.totalorder %s468_s9, %s3372_s4  ;;  %p333_p11 = scmp.ge.s32.totalorder %s334_s8, %s3372_s4 }
  0x25   : >> { %345 = vst [vmem:[%s3238_s5 + $0x10] sm:$0xff] %v344_v2  ;;  %v350_v5 = vld [vmem:[%s3242_s6 + $0x28] sm:$0xff]  ;;  %347 = vst [vmem:[%s3238_s5 + $0x18] sm:$0xff] %v346_v3  ;;  %v352_v6 = vld [vmem:[%s3242_s6 + $0x30] sm:$0xff] }
  0x26   : >> { %349 = vst [vmem:[%s3238_s5 + $0x20] sm:$0xff] %v348_v4  ;;  %351 = vst [vmem:[%s3238_s5 + $0x28] sm:$0xff] %v350_v5  ;;  %v354_v7 = vld [vmem:[%s3242_s6 + $0x38] sm:$0xff]  ;;  %v356_v8 = vld [vmem:[%s3242_s6 + $0x40] sm:$0xff]  ;;  %s4586_s9 = smov (%p469_p10, %s468_s9), 0 }
  0x27   : >> { %353 = vst [vmem:[%s3238_s5 + $0x30] sm:$0xff] %v352_v6  ;;  %355 = vst [vmem:[%s3238_s5 + $0x38] sm:$0xff] %v354_v7  ;;  %v358_v9 = vld [vmem:[%s3242_s6 + $0x48] sm:$0xff]  ;;  %v360_v10 = vld [vmem:[%s3242_s6 + $0x50] sm:$0xff]  ;;  %s2261_s10 = sshll.u32 %s4586_s9, 7  ;;  %s4549_s7 = smov %s4586_s9 }
  0x28   : >> { %357 = vst [vmem:[%s3238_s5 + $0x40] sm:$0xff] %v356_v8  ;;  %v362_v11 = vld [vmem:[%s3242_s6 + $0x58] sm:$0xff]  ;;  %359 = vst [vmem:[%s3238_s5 + $0x48] sm:$0xff] %v358_v9  ;;  %v364_v12 = vld [vmem:[%s3242_s6 + $0x60] sm:$0xff]  ;;  %s3439_s11 = scalar_lea.vmem %s3364_s28, %s2261_s10   ;;  %s3442_s17 = scalar_lea.vmem %s3369_s30, %s2261_s10 [#allocation2]  }
  0x29   : >> { %361 = vst [vmem:[%s3238_s5 + $0x50] sm:$0xff] %v360_v10  ;;  %363 = vst [vmem:[%s3238_s5 + $0x58] sm:$0xff] %v362_v11  ;;  %v366_v13 = vld [vmem:[%s3242_s6 + $0x68] sm:$0xff]  ;;  %v368_v14 = vld [vmem:[%s3242_s6 + $0x70] sm:$0xff] }
  0x2a   : >> { %365 = vst [vmem:[%s3238_s5 + $0x60] sm:$0xff] %v364_v12  ;;  %367 = vst [vmem:[%s3238_s5 + $0x68] sm:$0xff] %v366_v13  ;;  %v370_v15 = vld [vmem:[%s3242_s6 + $0x78] sm:$0xff]  ;;  %v372_v16 = vld [vmem:[%s3242_s6 + $0x188] sm:$0xff] }
  0x2b   : >> { %369 = vst [vmem:[%s3238_s5 + $0x70] sm:$0xff] %v368_v14  ;;  %v374_v17 = vld [vmem:[%s3242_s6 + $0x190] sm:$0xff]  ;;  %371 = vst [vmem:[%s3238_s5 + $0x78] sm:$0xff] %v370_v15  ;;  %v376_v18 = vld [vmem:[%s3242_s6 + $0x198] sm:$0xff] }
  0x2c   : >> { %373 = vst [vmem:[%s3238_s5 + $0xc8] sm:$0xff] %v372_v16  ;;  %375 = vst [vmem:[%s3238_s5 + $0xd0] sm:$0xff] %v374_v17  ;;  %v378_v19 = vld [vmem:[%s3242_s6 + $0x1a0] sm:$0xff]  ;;  %v380_v20 = vld [vmem:[%s3242_s6 + $0x1a8] sm:$0xff] }
  0x2d   : >> { %377 = vst [vmem:[%s3238_s5 + $0xd8] sm:$0xff] %v376_v18  ;;  %379 = vst [vmem:[%s3238_s5 + $0xe0] sm:$0xff] %v378_v19  ;;  %v382_v21 = vld [vmem:[%s3242_s6 + $0x1b0] sm:$0xff]  ;;  %v384_v22 = vld [vmem:[%s3242_s6 + $0x1b8] sm:$0xff] }
  0x2e   : >> { %381 = vst [vmem:[%s3238_s5 + $0xe8] sm:$0xff] %v380_v20  ;;  %v386_v23 = vld [vmem:[%s3242_s6 + $0x1c0] sm:$0xff]  ;;  %383 = vst [vmem:[%s3238_s5 + $0xf0] sm:$0xff] %v382_v21  ;;  %v388_v24 = vld [vmem:[%s3242_s6 + $0x1c8] sm:$0xff] }
  0x2f   : >> { %385 = vst [vmem:[%s3238_s5 + $0xf8] sm:$0xff] %v384_v22  ;;  %387 = vst [vmem:[%s3238_s5 + $0x100] sm:$0xff] %v386_v23  ;;  %v390_v25 = vld [vmem:[%s3242_s6 + $0x1d0] sm:$0xff]  ;;  %v392_v26 = vld [vmem:[%s3242_s6 + $0x1d8] sm:$0xff] }
  0x30   : >> { %389 = vst [vmem:[%s3238_s5 + $0x108] sm:$0xff] %v388_v24  ;;  %391 = vst [vmem:[%s3238_s5 + $0x110] sm:$0xff] %v390_v25  ;;  %v394_v27 = vld [vmem:[%s3242_s6 + $0x1e0] sm:$0xff]  ;;  %v396_v28 = vld [vmem:[%s3242_s6 + $0x1e8] sm:$0xff] }
  0x31   : >> { %393 = vst [vmem:[%s3238_s5 + $0x118] sm:$0xff] %v392_v26  ;;  %v398_v29 = vld [vmem:[%s3242_s6 + $0x1f0] sm:$0xff]  ;;  %395 = vst [vmem:[%s3238_s5 + $0x120] sm:$0xff] %v394_v27  ;;  %v400_v30 = vld [vmem:[%s3242_s6 + $0x1f8] sm:$0xff] }
  0x32   : >> { %397 = vst [vmem:[%s3238_s5 + $0x128] sm:$0xff] %v396_v28  ;;  %399 = vst [vmem:[%s3238_s5 + $0x130] sm:$0xff] %v398_v29  ;;  %v402_v31 = vld [vmem:[%s3242_s6 + $0x200] sm:$0xff]  ;;  %v404_v32 = vld [vmem:[%s3242_s6 + $0x310] sm:$0xff] }
  0x33   : >> { %401 = vst [vmem:[%s3238_s5 + $0x138] sm:$0xff] %v400_v30  ;;  %403 = vst [vmem:[%s3238_s5 + $0x140] sm:$0xff] %v402_v31  ;;  %v406_v33 = vld [vmem:[%s3242_s6 + $0x318] sm:$0xff]  ;;  %v408_v34 = vld [vmem:[%s3242_s6 + $0x320] sm:$0xff] }
  0x34   : >> { %405 = vst [vmem:[%s3238_s5 + $0x190] sm:$0xff] %v404_v32  ;;  %v410_v35 = vld [vmem:[%s3242_s6 + $0x328] sm:$0xff]  ;;  %407 = vst [vmem:[%s3238_s5 + $0x198] sm:$0xff] %v406_v33  ;;  %v412_v36 = vld [vmem:[%s3242_s6 + $0x330] sm:$0xff] }
  0x35   : >> { %409 = vst [vmem:[%s3238_s5 + $0x1a0] sm:$0xff] %v408_v34  ;;  %411 = vst [vmem:[%s3238_s5 + $0x1a8] sm:$0xff] %v410_v35  ;;  %v414_v37 = vld [vmem:[%s3242_s6 + $0x338] sm:$0xff]  ;;  %v416_v38 = vld [vmem:[%s3242_s6 + $0x340] sm:$0xff] }
  0x36   : >> { %413 = vst [vmem:[%s3238_s5 + $0x1b0] sm:$0xff] %v412_v36  ;;  %415 = vst [vmem:[%s3238_s5 + $0x1b8] sm:$0xff] %v414_v37  ;;  %v418_v39 = vld [vmem:[%s3242_s6 + $0x348] sm:$0xff]  ;;  %v420_v40 = vld [vmem:[%s3242_s6 + $0x350] sm:$0xff] }
  0x37   : >> { %417 = vst [vmem:[%s3238_s5 + $0x1c0] sm:$0xff] %v416_v38  ;;  %v422_v41 = vld [vmem:[%s3242_s6 + $0x358] sm:$0xff]  ;;  %419 = vst [vmem:[%s3238_s5 + $0x1c8] sm:$0xff] %v418_v39  ;;  %v424_v42 = vld [vmem:[%s3242_s6 + $0x360] sm:$0xff] }
  0x38   : >> { %421 = vst [vmem:[%s3238_s5 + $0x1d0] sm:$0xff] %v420_v40  ;;  %423 = vst [vmem:[%s3238_s5 + $0x1d8] sm:$0xff] %v422_v41  ;;  %v426_v43 = vld [vmem:[%s3242_s6 + $0x368] sm:$0xff]  ;;  %v428_v44 = vld [vmem:[%s3242_s6 + $0x370] sm:$0xff] }
  0x39   : >> { %425 = vst [vmem:[%s3238_s5 + $0x1e0] sm:$0xff] %v424_v42  ;;  %427 = vst [vmem:[%s3238_s5 + $0x1e8] sm:$0xff] %v426_v43  ;;  %v430_v45 = vld [vmem:[%s3242_s6 + $0x378] sm:$0xff]  ;;  %v432_v46 = vld [vmem:[%s3242_s6 + $0x380] sm:$0xff] }
  0x3a   : >> { %429 = vst [vmem:[%s3238_s5 + $0x1f0] sm:$0xff] %v428_v44  ;;  %v434_v47 = vld [vmem:[%s3242_s6 + $0x388] sm:$0xff]  ;;  %431 = vst [vmem:[%s3238_s5 + $0x1f8] sm:$0xff] %v430_v45  ;;  %v436_v48 = vld [vmem:[%s3242_s6 + $0x498] sm:$0xff] }
  0x3b   : >> { %433 = vst [vmem:[%s3238_s5 + $0x200] sm:$0xff] %v432_v46  ;;  %435 = vst [vmem:[%s3238_s5 + $0x208] sm:$0xff] %v434_v47  ;;  %v438_v49 = vld [vmem:[%s3242_s6 + $0x4a0] sm:$0xff]  ;;  %v440_v50 = vld [vmem:[%s3242_s6 + $0x4a8] sm:$0xff] }
  0x3c   : >> { %437 = vst [vmem:[%s3238_s5 + $0x258] sm:$0xff] %v436_v48  ;;  %439 = vst [vmem:[%s3238_s5 + $0x260] sm:$0xff] %v438_v49  ;;  %v442_v51 = vld [vmem:[%s3242_s6 + $0x4b0] sm:$0xff]  ;;  %v444_v52 = vld [vmem:[%s3242_s6 + $0x4b8] sm:$0xff] }
  0x3d   : >> { %441 = vst [vmem:[%s3238_s5 + $0x268] sm:$0xff] %v440_v50  ;;  %v446_v53 = vld [vmem:[%s3242_s6 + $0x4c0] sm:$0xff]  ;;  %443 = vst [vmem:[%s3238_s5 + $0x270] sm:$0xff] %v442_v51  ;;  %v448_v54 = vld [vmem:[%s3242_s6 + $0x4c8] sm:$0xff] }
  0x3e   : >> { %445 = vst [vmem:[%s3238_s5 + $0x278] sm:$0xff] %v444_v52  ;;  %447 = vst [vmem:[%s3238_s5 + $0x280] sm:$0xff] %v446_v53  ;;  %v450_v55 = vld [vmem:[%s3242_s6 + $0x4d0] sm:$0xff]  ;;  %v452_v56 = vld [vmem:[%s3242_s6 + $0x4d8] sm:$0xff] }
  0x3f   : >> { %449 = vst [vmem:[%s3238_s5 + $0x288] sm:$0xff] %v448_v54  ;;  %451 = vst [vmem:[%s3238_s5 + $0x290] sm:$0xff] %v450_v55  ;;  %v454_v57 = vld [vmem:[%s3242_s6 + $0x4e0] sm:$0xff]  ;;  %v456_v58 = vld [vmem:[%s3242_s6 + $0x4e8] sm:$0xff]  ;;  %336 = sbr.rel (!%p333_p11) target bundleno = 35 (0x23), region = 190 }
  0x40   : >> { %453 = vst [vmem:[%s3238_s5 + $0x298] sm:$0xff] %v452_v56  ;;  %v458_v59 = vld [vmem:[%s3242_s6 + $0x4f0] sm:$0xff]  ;;  %455 = vst [vmem:[%s3238_s5 + $0x2a0] sm:$0xff] %v454_v57  ;;  %v460_v60 = vld [vmem:[%s3242_s6 + $0x4f8] sm:$0xff] }
  0x41   : >> { %457 = vst [vmem:[%s3238_s5 + $0x2a8] sm:$0xff] %v456_v58  ;;  %459 = vst [vmem:[%s3238_s5 + $0x2b0] sm:$0xff] %v458_v59  ;;  %v462_v61 = vld [vmem:[%s3242_s6 + $0x500] sm:$0xff]  ;;  %v464_v62 = vld [vmem:[%s3242_s6 + $0x508] sm:$0xff] }
  0x42   : >> { %461 = vst [vmem:[%s3238_s5 + $0x2b8] sm:$0xff] %v460_v60  ;;  %463 = vst [vmem:[%s3238_s5 + $0x2c0] sm:$0xff] %v462_v61  ;;  %v466_v63 = vld [vmem:[%s3242_s6 + $0x510] sm:$0xff]  ;;  %s4548_s6 = smov %s3439_s11 }
  0x43   : >> { %465 = vst [vmem:[%s3238_s5 + $0x2c8] sm:$0xff] %v464_v62  ;;  %467 = vst [vmem:[%s3238_s5 + $0x2d0] sm:$0xff] %v466_v63  ;;  %s4547_s5 = smov %s3442_s17 }
  0x44 PF: > { %s3547_s18 = sand.u32 15, %s4584_s24   ;;  %s2463_s21 = sshll.u32 %s3372_s4, 7 }
  0x45   : > { %s3551_s22 = scalar_lea.vmem %s3364_s28, %s2463_s21   ;;  %s3554_s23 = scalar_lea.vmem %s3369_s30, %s2463_s21 [#allocation2]  }
  0x46   : > { %p2266_p12 = scmp.le.s32.totalorder %s3547_s18, 0 }
  0x47   : > { %s4550_s25 = smov (!%p2266_p12), %s3554_s23  ;;  %s4551_s26 = smov (!%p2266_p12), %s3551_s22 }
  0x48   : > { %2195 = sbr.rel (%p2266_p12) target bundleno = 85 (0x55), region = 195  ;;  %s3260_s27 = smov (!%p2266_p12), 0  }
  0x49   : > { %s3264_s29 = smov (!%p2266_p12), 0  }
  0x4d LB: >> { %v491_v0 = vld [vmem:[%s3258_s26] sm:$0xff]  ;;  %v493_v1 = vld [vmem:[%s3258_s26 + $0x188] sm:$0xff]  ;;  %v495_v2 = vld [vmem:[%s3258_s26 + $0x310] sm:$0xff]  ;;  %s499_s24 = sadd.s32 1, %s3262_s27  ;;  %s485_s29 = sadd.s32 1, %s3266_s29   ;;  %s3266_s29 = sphi %s3264_s29, %s485_s29   ;;  %s3262_s27 = sphi %s3260_s27, %s3261_s27   ;;  %s3258_s26 = sphi %s4551_s26, %s504_s26   ;;  %s3254_s25 = sphi %s4550_s25, %s505_s25  }
  0x4e   : >> { %492 = vst [vmem:[%s3254_s25] sm:$0xff] %v491_v0  ;;  %494 = vst [vmem:[%s3254_s25 + $0xc8] sm:$0xff] %v493_v1  ;;  %v497_v3 = vld [vmem:[%s3258_s26 + $0x498] sm:$0xff]  ;;  %p500_p13 = scmp.ge.s32.totalorder %s499_s24, %s3547_s18  ;;  %p484_p0 = scmp.ge.s32.totalorder %s485_s29, %s3547_s18 }
  0x4f   : >> { %496 = vst [vmem:[%s3254_s25 + $0x190] sm:$0xff] %v495_v2  ;;  %498 = vst [vmem:[%s3254_s25 + $0x258] sm:$0xff] %v497_v3 }
  0x50   : >> { %s4588_s24 = smov (%p500_p13, %s499_s24), 0  ;;  %487 = sbr.rel (!%p484_p0) target bundleno = 77 (0x4d), region = 201 }
  0x51   : >> { %s2267_s28 = sshll.u32 %s4588_s24, 3  ;;  %s3261_s27 = smov %s4588_s24  }
  0x52   : >> { %s504_s26 = scalar_lea.vmem %s3551_s22, %s2267_s28   ;;  %s505_s25 = scalar_lea.vmem %s3554_s23, %s2267_s28 [#allocation2]  }
  0x55 PF: > { %p2269_p1 = scmp.ge.s32.totalorder %s3234_s14, 1  ;;  %p510_p2 = scmp.lt.s32.totalorder %s3234_s14, 3 }
  0x57   : > { %p511_p3 = pnand %p2269_p1, %p510_p2 }
  0x58   : > { %s517_s17 = sand.u32 (!%p511_p3), 1, %s3226_s12  }
  0x59   : > { %514 = sbr.rel (%p511_p3) target bundleno = 572 (0x23c), region = 80 }
  0x5a   : > { %s2987_s25 = smul.u32 (!%p511_p3), 800, %s517_s17 }
  0x5b   : > { %s2988_s5 = smul.u32 (!%p511_p3), 200, %s517_s17 }
  0x5c   : > { %s3666_s4 = scalar_lea.vmem (!%p511_p3), [#allocation2], %s2987_s25 }
  0x5d   : > { %s4278_s12 = scalar_lea.vmem (!%p511_p3), [#allocation3], %s2988_s5  }
  0x5e   : > { %v3578_v4 = vld [vmem:[%s4541_s1 + $0x48] sm:$0x7]  ;;  %vm660_vm0 = vcmask 1042432   ;;  %v3300_v5 = vmov 0.0   ;;  %v3585_v6 = vld [vmem:[%s4541_s1 + $0x40] sm:$0xff]  ;;  %v3596_v7 = vld [vmem:[%s4541_s1 + $0x38] sm:$0xff] }
  0x5f   : > { %2606 = vmatprep.subr.mxu0 %v3300_v5  ;;  %2701 = vmatprep.subr.mxu1 %v3300_v5  ;;  %v3605_v8 = vld [vmem:[%s4541_s1 + $0x30] sm:$0xff]  ;;  %v3614_v9 = vld [vmem:[%s4541_s1 + $0x28] sm:$0xff]  ;;  %v3624_v10 = vld [vmem:[%s4541_s1 + $0x20] sm:$0xff]  ;;  %vm584_vm1 = vcmask 613376   ;;  %vm3301_vm2 = vmmov 0   ;;  %vm1859_vm3 = vcmask 48128  }
  0x60   : > { %2607 = vmatpush3.msk.msra.mxu0 %vm660_vm0, %v3578_v4  ;;  %2702 = vmatpush3.msk.msra.mxu1 %vm660_vm0, %v3578_v4  ;;  %v3633_v11 = vld [vmem:[%s4541_s1 + $0x18] sm:$0xff]  ;;  %v3644_v12 = vld [vmem:[%s4541_s1 + $0x10] sm:$0xff]  ;;  %v3653_v13 = vld [vmem:[%s4541_s1 + $0x8] sm:$0xff]  ;;  %s1892_s7 = smul.u32 (%p3353_p5), 25, %s3338_s15 }
  0x61   : > { %2608 = vmatprep.subr.mxu0 %v3300_v5  ;;  %2703 = vmatprep.subr.mxu1 %v3300_v5  ;;  %v3662_v14 = vld [vmem:[%s4541_s1] sm:$0xff]  ;;  %v2296_v16 = vld [vmem:[%s3666_s4 + $0xc8] sm:$0xff]  ;;  %v2297_v18 = vld [vmem:[%s3666_s4 + $0xd0] sm:$0xff]  ;;  %s2465_s8 = smul.u32 (%p3353_p5), 200, %s3338_s15 }
  0x62   : > { %2609 = vmatpush3.msra.mxu0 %v3585_v6  ;;  %2704 = vmatpush3.msra.mxu1 %v3585_v6  ;;  %v559_v15 = vld [vmem:[%s3666_s4] sm:$0xff]  ;;  %v560_v17 = vld [vmem:[%s3666_s4 + $0x8] sm:$0xff]  ;;  %v561_v19 = vld [vmem:[%s3666_s4 + $0x10] sm:$0xff]  ;;  %s1893_s9 = ssub.s32 (%p3353_p5), 49, %s1892_s7 }
  0x63   : > { %2610 = vmatprep.subr.mxu0 %v3300_v5  ;;  %2705 = vmatprep.subr.mxu1 %v3300_v5  ;;  %v2298_v20 = vld [vmem:[%s3666_s4 + $0xd8] sm:$0xff]  ;;  %v2299_v22 = vld [vmem:[%s3666_s4 + $0xe0] sm:$0xff]  ;;  %v2300_v24 = vld [vmem:[%s3666_s4 + $0xe8] sm:$0xff]  ;;  %p1894_p4 = scmp.lt.s32.totalorder (%p3353_p5), %s1893_s9, 25  ;;  %s4430_s17 = scalar_lea.vmem (%p3353_p5), %s4543_s3, %s2465_s8  }
  0x64   : > { %2611 = vmatpush3.msra.mxu0 %v3596_v7  ;;  %2706 = vmatpush3.msra.mxu1 %v3596_v7  ;;  %v562_v21 = vld [vmem:[%s3666_s4 + $0x18] sm:$0xff]  ;;  %v563_v23 = vld [vmem:[%s3666_s4 + $0x20] sm:$0xff]  ;;  %v564_v25 = vld [vmem:[%s3666_s4 + $0x28] sm:$0xff] }
  0x65   : > { %2612 = vmatprep.subr.mxu0 %v3300_v5  ;;  %2707 = vmatprep.subr.mxu1 %v3300_v5  ;;  %v2301_v26 = vld [vmem:[%s3666_s4 + $0xf0] sm:$0xff]  ;;  %v2302_v28 = vld [vmem:[%s3666_s4 + $0xf8] sm:$0xff]  ;;  %v2303_v30 = vld [vmem:[%s3666_s4 + $0x100] sm:$0xff] }
  0x66   : > { %2613 = vmatpush3.msra.mxu0 %v3605_v8  ;;  %2708 = vmatpush3.msra.mxu1 %v3605_v8  ;;  %v565_v27 = vld [vmem:[%s3666_s4 + $0x30] sm:$0xff]  ;;  %v566_v29 = vld [vmem:[%s3666_s4 + $0x38] sm:$0xff]  ;;  %v567_v31 = vld [vmem:[%s3666_s4 + $0x40] sm:$0xff] }
  0x67   : > { %2614 = vmatprep.subr.mxu0 %v3300_v5  ;;  %2709 = vmatprep.subr.mxu1 %v3300_v5  ;;  %v2304_v32 = vld [vmem:[%s3666_s4 + $0x108] sm:$0xff]  ;;  %v2305_v34 = vld [vmem:[%s3666_s4 + $0x110] sm:$0xff]  ;;  %v2306_v36 = vld [vmem:[%s3666_s4 + $0x118] sm:$0xff] }
  0x68   : > { %2615 = vmatpush3.msra.mxu0 %v3614_v9  ;;  %2710 = vmatpush3.msra.mxu1 %v3614_v9  ;;  %v568_v33 = vld [vmem:[%s3666_s4 + $0x48] sm:$0xff]  ;;  %v569_v35 = vld [vmem:[%s3666_s4 + $0x50] sm:$0xff]  ;;  %v570_v37 = vld [vmem:[%s3666_s4 + $0x58] sm:$0xff] }
  0x69   : > { %2616 = vmatprep.subr.mxu0 %v3300_v5  ;;  %2711 = vmatprep.subr.mxu1 %v3300_v5  ;;  %v2307_v38 = vld [vmem:[%s3666_s4 + $0x120] sm:$0xff]  ;;  %v2308_v40 = vld [vmem:[%s3666_s4 + $0x128] sm:$0xff]  ;;  %v2309_v42 = vld [vmem:[%s3666_s4 + $0x130] sm:$0xff] }
  0x6a   : > { %2617 = vmatpush3.msra.mxu0 %v3624_v10  ;;  %2712 = vmatpush3.msra.mxu1 %v3624_v10  ;;  %v571_v39 = vld [vmem:[%s3666_s4 + $0x60] sm:$0xff]  ;;  %v572_v41 = vld [vmem:[%s3666_s4 + $0x68] sm:$0xff]  ;;  %v573_v43 = vld [vmem:[%s3666_s4 + $0x70] sm:$0xff] }
  0x6b   : > { %2618 = vmatprep.subr.mxu0 %v3300_v5  ;;  %2713 = vmatprep.subr.mxu1 %v3300_v5  ;;  %v2310_v44 = vld [vmem:[%s3666_s4 + $0x138] sm:$0xff]  ;;  %v2311_v46 = vld [vmem:[%s3666_s4 + $0x140] sm:$0xff]  ;;  %v2312_v48 = vld [vmem:[%s3666_s4 + $0x148] sm:$0xff] }
  0x6c   : > { %2619 = vmatpush3.msra.mxu0 %v3633_v11  ;;  %2714 = vmatpush3.msra.mxu1 %v3633_v11  ;;  %v574_v45 = vld [vmem:[%s3666_s4 + $0x78] sm:$0xff]  ;;  %v575_v47 = vld [vmem:[%s3666_s4 + $0x80] sm:$0xff]  ;;  %v576_v49 = vld [vmem:[%s3666_s4 + $0x88] sm:$0xff] }
  0x6d   : > { %2620 = vmatprep.subr.mxu0 %v3300_v5  ;;  %2715 = vmatprep.subr.mxu1 %v3300_v5  ;;  %v2313_v50 = vld [vmem:[%s3666_s4 + $0x150] sm:$0xff]  ;;  %v2314_v52 = vld [vmem:[%s3666_s4 + $0x158] sm:$0xff]  ;;  %v2315_v54 = vld [vmem:[%s3666_s4 + $0x160] sm:$0xff] }
  0x6e   : > { %2621 = vmatpush3.msra.mxu0 %v3644_v12  ;;  %2716 = vmatpush3.msra.mxu1 %v3644_v12  ;;  %v577_v51 = vld [vmem:[%s3666_s4 + $0x90] sm:$0xff]  ;;  %v578_v53 = vld [vmem:[%s3666_s4 + $0x98] sm:$0xff]  ;;  %v579_v55 = vld [vmem:[%s3666_s4 + $0xa0] sm:$0xff] }
  0x6f   : > { %2622 = vmatprep.subr.mxu0 %v3300_v5  ;;  %2717 = vmatprep.subr.mxu1 %v3300_v5  ;;  %v2316_v56 = vld [vmem:[%s3666_s4 + $0x168] sm:$0xff]  ;;  %v2317_v58 = vld [vmem:[%s3666_s4 + $0x170] sm:$0xff]  ;;  %v2318_v60 = vld [vmem:[%s3666_s4 + $0x178] sm:$0xff] }
  0x70   : > { %2623 = vmatpush3.msra.mxu0 %v3653_v13  ;;  %2718 = vmatpush3.msra.mxu1 %v3653_v13  ;;  %v580_v57 = vld [vmem:[%s3666_s4 + $0xa8] sm:$0xff]  ;;  %v581_v59 = vld [vmem:[%s3666_s4 + $0xb0] sm:$0xff]  ;;  %v582_v61 = vld [vmem:[%s3666_s4 + $0xb8] sm:$0xff] }
  0x71   : > { %2624 = vmatprep.subr.mxu0 %v3300_v5  ;;  %2626 = vmatprep.mubr.msk.f32.mxu0 %vm3301_vm2, %v3300_v5  ;;  %v2319_v62 = vld [vmem:[%s3666_s4 + $0x180] sm:$0xff]  ;;  %v2320_v0 = vld [vmem:[%s3666_s4 + $0x188] sm:$0xff]  ;;  %v2347_v1 = vld [vmem:[%s3666_s4 + $0x190] sm:$0xff] }
  0x72   : > { %2625 = vmatpush3.msra.mxu0 %v3662_v14  ;;  %2719 = vmatprep.subr.mxu1 %v3300_v5  ;;  %v583_v63 = vld [vmem:[%s3666_s4 + $0xc0] sm:$0xff]  ;;  %v2398_v2 = vld [vmem:[%s3666_s4 + $0x258] sm:$0xff] }
  0x73   : > { %2627 = vmatmul.mubr.msk.f32.vlgmr.msra.gmra.mxu0 %vm584_vm1, %v559_v15  ;;  %2720 = vmatpush3.msra.mxu1 %v3662_v14  ;;  %v2348_v3 = vld [vmem:[%s3666_s4 + $0x198] sm:$0xff]  ;;  %v2404_v15 = vld [vmem:[%s3666_s4 + $0x288] sm:$0xff] }
  0x74   : > { %2721 = vmatprep.mubr.msk.f32.mxu1 %vm3301_vm2, %v3300_v5  ;;  %2796 = vmatprep.subr.mxu0 %v3300_v5 }
  0x75   : > { %2722 = vmatmul.mubr.msk.f32.vlgmr.msra.gmra.mxu1 %vm584_vm1, %v2296_v16  ;;  %2797 = vmatpush3.msk.msra.mxu0 %vm660_vm0, %v3578_v4  ;;  %v2354_v16 = vld [vmem:[%s3666_s4 + $0x1c8] sm:$0xff] }
  0x76   : > { %2891 = vmatprep.subr.mxu1 %v3300_v5  ;;  %2629 = vmatprep.mubr.msk.f32.mxu0 %vm3301_vm2, %v3300_v5 }
  0x77   : > { %2892 = vmatpush3.msk.msra.mxu1 %vm660_vm0, %v3578_v4  ;;  %2630 = vmatmul.mubr.msk.f32.gmra.mxu0 %vm584_vm1, %v560_v17  ;;  %v2399_v4 = vld [vmem:[%s3666_s4 + $0x260] sm:$0xff]  ;;  %v2405_v17 = vld [vmem:[%s3666_s4 + $0x290] sm:$0xff] }
  0x78   : > { %2724 = vmatprep.mubr.msk.f32.mxu1 %vm3301_vm2, %v3300_v5  ;;  %2632 = vmatprep.mubr.msk.f32.mxu0 %vm3301_vm2, %v3300_v5 }
  0x79   : > { %2725 = vmatmul.mubr.msk.f32.gmra.mxu1 %vm584_vm1, %v2297_v18  ;;  %2798 = vmatprep.subr.mxu0 %v3300_v5  ;;  %v2355_v18 = vld [vmem:[%s3666_s4 + $0x1d0] sm:$0xff] }
  0x7a   : > { %2727 = vmatprep.mubr.msk.f32.mxu1 %vm3301_vm2, %v3300_v5  ;;  %2799 = vmatpush3.msra.mxu0 %v3585_v6 }
  0x7b   : > { %2633 = vmatmul.mubr.msk.f32.gmra.mxu0 %vm584_vm1, %v561_v19  ;;  %2893 = vmatprep.subr.mxu1 %v3300_v5  ;;  %v2406_v19 = vld [vmem:[%s3666_s4 + $0x298] sm:$0xff] }
  0x7c   : > { %2635 = vmatprep.mubr.msk.f32.mxu0 %vm3301_vm2, %v3300_v5  ;;  %2894 = vmatpush3.msra.mxu1 %v3585_v6  ;;  %v2349_v6 = vld [vmem:[%s3666_s4 + $0x1a0] sm:$0xff] }
  0x7d   : > { %2728 = vmatmul.mubr.msk.f32.gmra.mxu1 %vm584_vm1, %v2298_v20  ;;  %2800 = vmatprep.subr.mxu0 %v3300_v5  ;;  %v2356_v20 = vld [vmem:[%s3666_s4 + $0x1d8] sm:$0xff] }
  0x7e   : > { %2730 = vmatprep.mubr.msk.f32.mxu1 %vm3301_vm2, %v3300_v5  ;;  %2801 = vmatpush3.msra.mxu0 %v3596_v7 }
  0x7f   : > { %2636 = vmatmul.mubr.msk.f32.gmra.mxu0 %vm584_vm1, %v562_v21  ;;  %2895 = vmatprep.subr.mxu1 %v3300_v5  ;;  %v2407_v21 = vld [vmem:[%s3666_s4 + $0x2a0] sm:$0xff] }
  0x80   : > { %2638 = vmatprep.mubr.msk.f32.mxu0 %vm3301_vm2, %v3300_v5  ;;  %2896 = vmatpush3.msra.mxu1 %v3596_v7  ;;  %v2400_v7 = vld [vmem:[%s3666_s4 + $0x268] sm:$0xff] }
  0x81   : > { %2731 = vmatmul.mubr.msk.f32.gmra.mxu1 %vm584_vm1, %v2299_v22  ;;  %2802 = vmatprep.subr.mxu0 %v3300_v5  ;;  %v2357_v22 = vld [vmem:[%s3666_s4 + $0x1e0] sm:$0xff] }
  0x82   : > { %2733 = vmatprep.mubr.msk.f32.mxu1 %vm3301_vm2, %v3300_v5  ;;  %2803 = vmatpush3.msra.mxu0 %v3605_v8 }
  0x83   : > { %2639 = vmatmul.mubr.msk.f32.gmra.mxu0 %vm584_vm1, %v563_v23  ;;  %2897 = vmatprep.subr.mxu1 %v3300_v5  ;;  %v2408_v23 = vld [vmem:[%s3666_s4 + $0x2a8] sm:$0xff] }
  0x84   : > { %2641 = vmatprep.mubr.msk.f32.mxu0 %vm3301_vm2, %v3300_v5  ;;  %2898 = vmatpush3.msra.mxu1 %v3605_v8  ;;  %v2350_v8 = vld [vmem:[%s3666_s4 + $0x1a8] sm:$0xff] }
  0x85   : > { %2734 = vmatmul.mubr.msk.f32.gmra.mxu1 %vm584_vm1, %v2300_v24  ;;  %2804 = vmatprep.subr.mxu0 %v3300_v5  ;;  %v2358_v24 = vld [vmem:[%s3666_s4 + $0x1e8] sm:$0xff] }
  0x86   : > { %2736 = vmatprep.mubr.msk.f32.mxu1 %vm3301_vm2, %v3300_v5  ;;  %2805 = vmatpush3.msra.mxu0 %v3614_v9 }
  0x87   : > { %2642 = vmatmul.mubr.msk.f32.gmra.mxu0 %vm584_vm1, %v564_v25  ;;  %2899 = vmatprep.subr.mxu1 %v3300_v5  ;;  %v2409_v25 = vld [vmem:[%s3666_s4 + $0x2b0] sm:$0xff] }
  0x88   : > { %2644 = vmatprep.mubr.msk.f32.mxu0 %vm3301_vm2, %v3300_v5  ;;  %2900 = vmatpush3.msra.mxu1 %v3614_v9  ;;  %v2401_v9 = vld [vmem:[%s3666_s4 + $0x270] sm:$0xff] }
  0x89   : > { %2737 = vmatmul.mubr.msk.f32.gmra.mxu1 %vm584_vm1, %v2301_v26  ;;  %2806 = vmatprep.subr.mxu0 %v3300_v5  ;;  %v2359_v26 = vld [vmem:[%s3666_s4 + $0x1f0] sm:$0xff] }
  0x8a   : > { %2739 = vmatprep.mubr.msk.f32.mxu1 %vm3301_vm2, %v3300_v5  ;;  %2807 = vmatpush3.msra.mxu0 %v3624_v10 }
  0x8b   : > { %2645 = vmatmul.mubr.msk.f32.gmra.mxu0 %vm584_vm1, %v565_v27  ;;  %2901 = vmatprep.subr.mxu1 %v3300_v5  ;;  %v2410_v27 = vld [vmem:[%s3666_s4 + $0x2b8] sm:$0xff] }
  0x8c   : > { %2647 = vmatprep.mubr.msk.f32.mxu0 %vm3301_vm2, %v3300_v5  ;;  %2902 = vmatpush3.msra.mxu1 %v3624_v10  ;;  %v2351_v10 = vld [vmem:[%s3666_s4 + $0x1b0] sm:$0xff] }
  0x8d   : > { %2740 = vmatmul.mubr.msk.f32.gmra.mxu1 %vm584_vm1, %v2302_v28  ;;  %2808 = vmatprep.subr.mxu0 %v3300_v5  ;;  %v2360_v28 = vld [vmem:[%s3666_s4 + $0x1f8] sm:$0xff] }
  0x8e   : > { %2742 = vmatprep.mubr.msk.f32.mxu1 %vm3301_vm2, %v3300_v5  ;;  %2809 = vmatpush3.msra.mxu0 %v3633_v11 }
  0x8f   : > { %2648 = vmatmul.mubr.msk.f32.gmra.mxu0 %vm584_vm1, %v566_v29  ;;  %2903 = vmatprep.subr.mxu1 %v3300_v5  ;;  %v2411_v29 = vld [vmem:[%s3666_s4 + $0x2c0] sm:$0xff] }
  0x90   : > { %2650 = vmatprep.mubr.msk.f32.mxu0 %vm3301_vm2, %v3300_v5  ;;  %2904 = vmatpush3.msra.mxu1 %v3633_v11  ;;  %v2402_v11 = vld [vmem:[%s3666_s4 + $0x278] sm:$0xff] }
  0x91   : > { %2743 = vmatmul.mubr.msk.f32.gmra.mxu1 %vm584_vm1, %v2303_v30  ;;  %2810 = vmatprep.subr.mxu0 %v3300_v5  ;;  %v2361_v30 = vld [vmem:[%s3666_s4 + $0x200] sm:$0xff] }
  0x92   : > { %2745 = vmatprep.mubr.msk.f32.mxu1 %vm3301_vm2, %v3300_v5  ;;  %2811 = vmatpush3.msra.mxu0 %v3644_v12 }
  0x93   : > { %2651 = vmatmul.mubr.msk.f32.gmra.mxu0 %vm584_vm1, %v567_v31  ;;  %2905 = vmatprep.subr.mxu1 %v3300_v5  ;;  %v2412_v31 = vld [vmem:[%s3666_s4 + $0x2c8] sm:$0xff] }
  0x94   : > { %2653 = vmatprep.mubr.msk.f32.mxu0 %vm3301_vm2, %v3300_v5  ;;  %2906 = vmatpush3.msra.mxu1 %v3644_v12  ;;  %v2352_v12 = vld [vmem:[%s3666_s4 + $0x1b8] sm:$0xff] }
  0x95   : > { %2746 = vmatmul.mubr.msk.f32.gmra.mxu1 %vm584_vm1, %v2304_v32  ;;  %2812 = vmatprep.subr.mxu0 %v3300_v5  ;;  %v2362_v32 = vld [vmem:[%s3666_s4 + $0x208] sm:$0xff] }
  0x96   : > { %2748 = vmatprep.mubr.msk.f32.mxu1 %vm3301_vm2, %v3300_v5  ;;  %2813 = vmatpush3.msra.mxu0 %v3653_v13 }
  0x97   : > { %2654 = vmatmul.mubr.msk.f32.gmra.mxu0 %vm584_vm1, %v568_v33  ;;  %2907 = vmatprep.subr.mxu1 %v3300_v5  ;;  %v2413_v33 = vld [vmem:[%s3666_s4 + $0x2d0] sm:$0xff] }
  0x98   : > { %2656 = vmatprep.mubr.msk.f32.mxu0 %vm3301_vm2, %v3300_v5  ;;  %2908 = vmatpush3.msra.mxu1 %v3653_v13  ;;  %v2403_v13 = vld [vmem:[%s3666_s4 + $0x280] sm:$0xff] }
  0x99   : > { %2749 = vmatmul.mubr.msk.f32.gmra.mxu1 %vm584_vm1, %v2305_v34  ;;  %2814 = vmatprep.subr.mxu0 %v3300_v5  ;;  %v2363_v34 = vld [vmem:[%s3666_s4 + $0x210] sm:$0xff] }
  0x9a   : > { %2751 = vmatprep.mubr.msk.f32.mxu1 %vm3301_vm2, %v3300_v5  ;;  %2815 = vmatpush3.msra.mxu0 %v3662_v14 }
  0x9b   : > { %2657 = vmatmul.mubr.msk.f32.gmra.mxu0 %vm584_vm1, %v569_v35  ;;  %2909 = vmatprep.subr.mxu1 %v3300_v5  ;;  %v2414_v35 = vld [vmem:[%s3666_s4 + $0x2d8] sm:$0xff] }
  0x9c   : > { %2659 = vmatprep.mubr.msk.f32.mxu0 %vm3301_vm2, %v3300_v5  ;;  %2910 = vmatpush3.msra.mxu1 %v3662_v14  ;;  %v2353_v14 = vld [vmem:[%s3666_s4 + $0x1c0] sm:$0xff] }
  0x9d   : > { %2752 = vmatmul.mubr.msk.f32.gmra.mxu1 %vm584_vm1, %v2306_v36  ;;  %v2364_v36 = vld [vmem:[%s3666_s4 + $0x218] sm:$0xff] }
  0x9e   : > { %2754 = vmatprep.mubr.msk.f32.mxu1 %vm3301_vm2, %v3300_v5 }
  0x9f   : > { %2660 = vmatmul.mubr.msk.f32.gmra.mxu0 %vm584_vm1, %v570_v37  ;;  %v2415_v37 = vld [vmem:[%s3666_s4 + $0x2e0] sm:$0xff] }
  0xa0   : > { %2662 = vmatprep.mubr.msk.f32.mxu0 %vm3301_vm2, %v3300_v5 }
  0xa1   : > { %2755 = vmatmul.mubr.msk.f32.gmra.mxu1 %vm584_vm1, %v2307_v38  ;;  %v2365_v38 = vld [vmem:[%s3666_s4 + $0x220] sm:$0xff] }
  0xa2   : > { %2757 = vmatprep.mubr.msk.f32.mxu1 %vm3301_vm2, %v3300_v5 }
  0xa3   : > { %2663 = vmatmul.mubr.msk.f32.gmra.mxu0 %vm584_vm1, %v571_v39  ;;  %v2416_v39 = vld [vmem:[%s3666_s4 + $0x2e8] sm:$0xff] }
  0xa4   : > { %2665 = vmatprep.mubr.msk.f32.mxu0 %vm3301_vm2, %v3300_v5 }
  0xa5   : > { %2758 = vmatmul.mubr.msk.f32.gmra.mxu1 %vm584_vm1, %v2308_v40  ;;  %v2366_v40 = vld [vmem:[%s3666_s4 + $0x228] sm:$0xff] }
  0xa6   : > { %2760 = vmatprep.mubr.msk.f32.mxu1 %vm3301_vm2, %v3300_v5 }
  0xa7   : > { %2666 = vmatmul.mubr.msk.f32.gmra.mxu0 %vm584_vm1, %v572_v41  ;;  %v2417_v41 = vld [vmem:[%s3666_s4 + $0x2f0] sm:$0xff] }
  0xa8   : > { %2668 = vmatprep.mubr.msk.f32.mxu0 %vm3301_vm2, %v3300_v5 }
  0xa9   : > { %2761 = vmatmul.mubr.msk.f32.gmra.mxu1 %vm584_vm1, %v2309_v42  ;;  %v2367_v42 = vld [vmem:[%s3666_s4 + $0x230] sm:$0xff] }
  0xaa   : > { %2763 = vmatprep.mubr.msk.f32.mxu1 %vm3301_vm2, %v3300_v5 }
  0xab   : > { %2669 = vmatmul.mubr.msk.f32.gmra.mxu0 %vm584_vm1, %v573_v43  ;;  %v2418_v43 = vld [vmem:[%s3666_s4 + $0x2f8] sm:$0xff] }
  0xac   : > { %2671 = vmatprep.mubr.msk.f32.mxu0 %vm3301_vm2, %v3300_v5 }
  0xad   : > { %2764 = vmatmul.mubr.msk.f32.gmra.mxu1 %vm584_vm1, %v2310_v44  ;;  %v2368_v44 = vld [vmem:[%s3666_s4 + $0x238] sm:$0xff] }
  0xae   : > { %2766 = vmatprep.mubr.msk.f32.mxu1 %vm3301_vm2, %v3300_v5 }
  0xaf   : > { %2672 = vmatmul.mubr.msk.f32.gmra.mxu0 %vm584_vm1, %v574_v45  ;;  %v2419_v45 = vld [vmem:[%s3666_s4 + $0x300] sm:$0xff] }
  0xb0   : > { %2674 = vmatprep.mubr.msk.f32.mxu0 %vm3301_vm2, %v3300_v5 }
  0xb1   : > { %2767 = vmatmul.mubr.msk.f32.gmra.mxu1 %vm584_vm1, %v2311_v46  ;;  %v2369_v46 = vld [vmem:[%s3666_s4 + $0x240] sm:$0xff] }
  0xb2   : > { %2769 = vmatprep.mubr.msk.f32.mxu1 %vm3301_vm2, %v3300_v5 }
  0xb3   : > { %2675 = vmatmul.mubr.msk.f32.gmra.mxu0 %vm584_vm1, %v575_v47  ;;  %v2420_v47 = vld [vmem:[%s3666_s4 + $0x308] sm:$0xff] }
  0xb4   : > { %2677 = vmatprep.mubr.msk.f32.mxu0 %vm3301_vm2, %v3300_v5 }
  0xb5   : > { %2770 = vmatmul.mubr.msk.f32.gmra.mxu1 %vm584_vm1, %v2312_v48  ;;  %v2370_v48 = vld [vmem:[%s3666_s4 + $0x248] sm:$0xff] }
  0xb6   : > { %2772 = vmatprep.mubr.msk.f32.mxu1 %vm3301_vm2, %v3300_v5 }
  0xb7   : > { %2678 = vmatmul.mubr.msk.f32.gmra.mxu0 %vm584_vm1, %v576_v49  ;;  %v2421_v49 = vld [vmem:[%s3666_s4 + $0x310] sm:$0xff] }
  0xb8   : > { %2680 = vmatprep.mubr.msk.f32.mxu0 %vm3301_vm2, %v3300_v5 }
  0xb9   : > { %2773 = vmatmul.mubr.msk.f32.gmra.mxu1 %vm584_vm1, %v2313_v50 }
  0xba   : > { %2775 = vmatprep.mubr.msk.f32.mxu1 %vm3301_vm2, %v3300_v5 }
  0xbb   : > { %2681 = vmatmul.mubr.msk.f32.gmra.mxu0 %vm584_vm1, %v577_v51  ;;  %v2371_v51 = vld [vmem:[%s3666_s4 + $0x250] sm:$0xff] }
  0xbc   : > { %2683 = vmatprep.mubr.msk.f32.mxu0 %vm3301_vm2, %v3300_v5 }
  0xbd   : > { %2776 = vmatmul.mubr.msk.f32.gmra.mxu1 %vm584_vm1, %v2314_v52 }
  0xbe   : > { %2778 = vmatprep.mubr.msk.f32.mxu1 %vm3301_vm2, %v3300_v5 }
  0xbf   : > { %2684 = vmatmul.mubr.msk.f32.gmra.mxu0 %vm584_vm1, %v578_v53 }
  0xc0   : > { %2686 = vmatprep.mubr.msk.f32.mxu0 %vm3301_vm2, %v3300_v5 }
  0xc1   : > { %2779 = vmatmul.mubr.msk.f32.gmra.mxu1 %vm584_vm1, %v2315_v54 }
  0xc2   : > { %2781 = vmatprep.mubr.msk.f32.mxu1 %vm3301_vm2, %v3300_v5 }
  0xc3   : > { %2687 = vmatmul.mubr.msk.f32.gmra.mxu0 %vm584_vm1, %v579_v55  ;;  %v2422_v55 = vld [vmem:[%s3666_s4 + $0x318] sm:$0xff] }
  0xc4   : > { %2689 = vmatprep.mubr.msk.f32.mxu0 %vm3301_vm2, %v3300_v5 }
  0xc5   : > { %2782 = vmatmul.mubr.msk.f32.gmra.mxu1 %vm584_vm1, %v2316_v56 }
  0xc6   : > { %2784 = vmatprep.mubr.msk.f32.mxu1 %vm3301_vm2, %v3300_v5 }
  0xc7   : > { %2690 = vmatmul.mubr.msk.f32.gmra.mxu0 %vm584_vm1, %v580_v57 }
  0xc8   : > { %2692 = vmatprep.mubr.msk.f32.mxu0 %vm3301_vm2, %v3300_v5 }
  0xc9   : > { %2785 = vmatmul.mubr.msk.f32.gmra.mxu1 %vm584_vm1, %v2317_v58 }
  0xca   : > { %2787 = vmatprep.mubr.msk.f32.mxu1 %vm3301_vm2, %v3300_v5 }
  0xcb   : > { %2693 = vmatmul.mubr.msk.f32.gmra.mxu0 %vm584_vm1, %v581_v59 }
  0xcc   : > { %2695 = vmatprep.mubr.msk.f32.mxu0 %vm3301_vm2, %v3300_v5 }
  0xcd   : > { %2788 = vmatmul.mubr.msk.f32.gmra.mxu1 %vm584_vm1, %v2318_v60 }
  0xce   : > { %2790 = vmatprep.mubr.msk.f32.mxu1 %vm3301_vm2, %v3300_v5 }
  0xcf   : > { %2696 = vmatmul.mubr.msk.f32.gmra.mxu0 %vm584_vm1, %v582_v61 }
  0xd0   : > { %2698 = vmatprep.mubr.msk.f32.mxu0 %vm3301_vm2, %v3300_v5 }
  0xd1   : > { %2791 = vmatmul.mubr.msk.f32.gmra.mxu1 %vm584_vm1, %v2319_v62 }
  0xd2   : > { %2793 = vmatprep.mubr.msk.f32.mxu1 %vm3301_vm2, %v3300_v5 }
  0xd3   : > { %2699 = vmatmul.mubr.msk.f32.gmra.mxu0 %vm584_vm1, %v583_v63 }
  0xd4   : > { %2816 = vmatprep.mubr.msk.f32.mxu0 %vm3301_vm2, %v3300_v5 }
  0xd5   : > { %2794 = vmatmul.mubr.msk.f32.gmra.mxu1 %vm584_vm1, %v2320_v0 }
  0xd6   : > { %2911 = vmatprep.mubr.msk.f32.mxu1 %vm3301_vm2, %v3300_v5 }
  0xd7   : > { %2817 = vmatmul.mubr.msk.f32.vlgmr.msra.gmra.mxu0 %vm584_vm1, %v2347_v1 }
  0xd8   : > { %2819 = vmatprep.mubr.msk.f32.mxu0 %vm3301_vm2, %v3300_v5 }
  0xd9   : > { %2912 = vmatmul.mubr.msk.f32.vlgmr.msra.gmra.mxu1 %vm584_vm1, %v2398_v2 }
  0xda   : > { %2914 = vmatprep.mubr.msk.f32.mxu1 %vm3301_vm2, %v3300_v5 }
  0xdb   : > { %2820 = vmatmul.mubr.msk.f32.gmra.mxu0 %vm584_vm1, %v2348_v3 }
  0xdc   : > { %2822 = vmatprep.mubr.msk.f32.mxu0 %vm3301_vm2, %v3300_v5 }
  0xdd   : > { %2915 = vmatmul.mubr.msk.f32.gmra.mxu1 %vm584_vm1, %v2399_v4 }
  0xde   : > { %2917 = vmatprep.mubr.msk.f32.mxu1 %vm3301_vm2, %v3300_v5 }
  0xdf   : > { %2823 = vmatmul.mubr.msk.f32.gmra.mxu0 %vm584_vm1, %v2349_v6 }
  0xe0   : > { %2825 = vmatprep.mubr.msk.f32.mxu0 %vm3301_vm2, %v3300_v5 }
  0xe1   : > { %2918 = vmatmul.mubr.msk.f32.gmra.mxu1 %vm584_vm1, %v2400_v7 }
  0xe2   : > { %2920 = vmatprep.mubr.msk.f32.mxu1 %vm3301_vm2, %v3300_v5 }
  0xe3   : > { %2826 = vmatmul.mubr.msk.f32.gmra.mxu0 %vm584_vm1, %v2350_v8 }
  0xe4   : > { %2828 = vmatprep.mubr.msk.f32.mxu0 %vm3301_vm2, %v3300_v5 }
  0xe5   : > { %2921 = vmatmul.mubr.msk.f32.gmra.mxu1 %vm584_vm1, %v2401_v9 }
  0xe6   : > { %2923 = vmatprep.mubr.msk.f32.mxu1 %vm3301_vm2, %v3300_v5 }
  0xe7   : > { %2829 = vmatmul.mubr.msk.f32.gmra.mxu0 %vm584_vm1, %v2351_v10 }
  0xe8   : > { %2831 = vmatprep.mubr.msk.f32.mxu0 %vm3301_vm2, %v3300_v5 }
  0xe9   : > { %2924 = vmatmul.mubr.msk.f32.gmra.mxu1 %vm584_vm1, %v2402_v11 }
  0xea   : > { %2926 = vmatprep.mubr.msk.f32.mxu1 %vm3301_vm2, %v3300_v5 }
  0xeb   : > { %2832 = vmatmul.mubr.msk.f32.gmra.mxu0 %vm584_vm1, %v2352_v12 }
  0xec   : > { %2834 = vmatprep.mubr.msk.f32.mxu0 %vm3301_vm2, %v3300_v5 }
  0xed   : > { %2927 = vmatmul.mubr.msk.f32.gmra.mxu1 %vm584_vm1, %v2403_v13 }
  0xee   : > { %2929 = vmatprep.mubr.msk.f32.mxu1 %vm3301_vm2, %v3300_v5 }
  0xef   : > { %2835 = vmatmul.mubr.msk.f32.gmra.mxu0 %vm584_vm1, %v2353_v14 }
  0xf0   : > { %2837 = vmatprep.mubr.msk.f32.mxu0 %vm3301_vm2, %v3300_v5 }
  0xf1   : > { %2930 = vmatmul.mubr.msk.f32.gmra.mxu1 %vm584_vm1, %v2404_v15 }
  0xf2   : > { %2932 = vmatprep.mubr.msk.f32.mxu1 %vm3301_vm2, %v3300_v5 }
  0xf3   : > { %2838 = vmatmul.mubr.msk.f32.gmra.mxu0 %vm584_vm1, %v2354_v16 }
  0xf4   : > { %2840 = vmatprep.mubr.msk.f32.mxu0 %vm3301_vm2, %v3300_v5 }
  0xf5   : > { %2933 = vmatmul.mubr.msk.f32.gmra.mxu1 %vm584_vm1, %v2405_v17 }
  0xf6   : > { %2935 = vmatprep.mubr.msk.f32.mxu1 %vm3301_vm2, %v3300_v5 }
  0xf7   : > { %2841 = vmatmul.mubr.msk.f32.gmra.mxu0 %vm584_vm1, %v2355_v18 }
  0xf8   : > { %2843 = vmatprep.mubr.msk.f32.mxu0 %vm3301_vm2, %v3300_v5 }
  0xf9   : > { %2936 = vmatmul.mubr.msk.f32.gmra.mxu1 %vm584_vm1, %v2406_v19 }
  0xfa   : > { %2938 = vmatprep.mubr.msk.f32.mxu1 %vm3301_vm2, %v3300_v5 }
  0xfb   : > { %2844 = vmatmul.mubr.msk.f32.gmra.mxu0 %vm584_vm1, %v2356_v20 }
  0xfc   : > { %2846 = vmatprep.mubr.msk.f32.mxu0 %vm3301_vm2, %v3300_v5 }
  0xfd   : > { %2939 = vmatmul.mubr.msk.f32.gmra.mxu1 %vm584_vm1, %v2407_v21 }
  0xfe   : > { %2941 = vmatprep.mubr.msk.f32.mxu1 %vm3301_vm2, %v3300_v5 }
  0xff   : > { %2847 = vmatmul.mubr.msk.f32.gmra.mxu0 %vm584_vm1, %v2357_v22 }
 0x100   : > { %2849 = vmatprep.mubr.msk.f32.mxu0 %vm3301_vm2, %v3300_v5 }
 0x101   : > { %2942 = vmatmul.mubr.msk.f32.gmra.mxu1 %vm584_vm1, %v2408_v23 }
 0x102   : > { %2944 = vmatprep.mubr.msk.f32.mxu1 %vm3301_vm2, %v3300_v5 }
 0x103   : > { %2850 = vmatmul.mubr.msk.f32.gmra.mxu0 %vm584_vm1, %v2358_v24 }
 0x104   : > { %2852 = vmatprep.mubr.msk.f32.mxu0 %vm3301_vm2, %v3300_v5 }
 0x105   : > { %2945 = vmatmul.mubr.msk.f32.gmra.mxu1 %vm584_vm1, %v2409_v25 }
 0x106   : > { %2947 = vmatprep.mubr.msk.f32.mxu1 %vm3301_vm2, %v3300_v5 }
 0x107   : > { %2853 = vmatmul.mubr.msk.f32.gmra.mxu0 %vm584_vm1, %v2359_v26 }
 0x108   : > { %2855 = vmatprep.mubr.msk.f32.mxu0 %vm3301_vm2, %v3300_v5 }
 0x109   : > { %2948 = vmatmul.mubr.msk.f32.gmra.mxu1 %vm584_vm1, %v2410_v27 }
 0x10a   : > { %2950 = vmatprep.mubr.msk.f32.mxu1 %vm3301_vm2, %v3300_v5 }
 0x10b   : > { %2856 = vmatmul.mubr.msk.f32.gmra.mxu0 %vm584_vm1, %v2360_v28 }
 0x10c   : > { %2858 = vmatprep.mubr.msk.f32.mxu0 %vm3301_vm2, %v3300_v5 }
 0x10d   : > { %2951 = vmatmul.mubr.msk.f32.gmra.mxu1 %vm584_vm1, %v2411_v29 }
 0x10e   : > { %2953 = vmatprep.mubr.msk.f32.mxu1 %vm3301_vm2, %v3300_v5 }
 0x10f   : > { %2859 = vmatmul.mubr.msk.f32.gmra.mxu0 %vm584_vm1, %v2361_v30 }
 0x110   : > { %2861 = vmatprep.mubr.msk.f32.mxu0 %vm3301_vm2, %v3300_v5 }
 0x111   : > { %2954 = vmatmul.mubr.msk.f32.gmra.mxu1 %vm584_vm1, %v2412_v31 }
 0x112   : > { %2956 = vmatprep.mubr.msk.f32.mxu1 %vm3301_vm2, %v3300_v5 }
 0x113   : > { %2862 = vmatmul.mubr.msk.f32.gmra.mxu0 %vm584_vm1, %v2362_v32 }
 0x114   : > { %2864 = vmatprep.mubr.msk.f32.mxu0 %vm3301_vm2, %v3300_v5 }
 0x115   : > { %2957 = vmatmul.mubr.msk.f32.gmra.mxu1 %vm584_vm1, %v2413_v33 }
 0x116   : > { %2959 = vmatprep.mubr.msk.f32.mxu1 %vm3301_vm2, %v3300_v5 }
 0x117   : > { %2865 = vmatmul.mubr.msk.f32.gmra.mxu0 %vm584_vm1, %v2363_v34 }
 0x118   : > { %2867 = vmatprep.mubr.msk.f32.mxu0 %vm3301_vm2, %v3300_v5 }
 0x119   : > { %2960 = vmatmul.mubr.msk.f32.gmra.mxu1 %vm584_vm1, %v2414_v35 }
 0x11a   : > { %2962 = vmatprep.mubr.msk.f32.mxu1 %vm3301_vm2, %v3300_v5 }
 0x11b   : > { %2868 = vmatmul.mubr.msk.f32.gmra.mxu0 %vm584_vm1, %v2364_v36 }
 0x11c   : > { %2870 = vmatprep.mubr.msk.f32.mxu0 %vm3301_vm2, %v3300_v5 }
 0x11d   : > { %2963 = vmatmul.mubr.msk.f32.gmra.mxu1 %vm584_vm1, %v2415_v37 }
 0x11e   : > { %2965 = vmatprep.mubr.msk.f32.mxu1 %vm3301_vm2, %v3300_v5 }
 0x11f   : > { %2871 = vmatmul.mubr.msk.f32.gmra.mxu0 %vm584_vm1, %v2365_v38 }
 0x120   : > { %2873 = vmatprep.mubr.msk.f32.mxu0 %vm3301_vm2, %v3300_v5 }
 0x121   : > { %2966 = vmatmul.mubr.msk.f32.gmra.mxu1 %vm584_vm1, %v2416_v39 }
 0x122   : > { %2968 = vmatprep.mubr.msk.f32.mxu1 %vm3301_vm2, %v3300_v5 }
 0x123   : > { %2874 = vmatmul.mubr.msk.f32.gmra.mxu0 %vm584_vm1, %v2366_v40 }
 0x124   : > { %2876 = vmatprep.mubr.msk.f32.mxu0 %vm3301_vm2, %v3300_v5 }
 0x125   : > { %2969 = vmatmul.mubr.msk.f32.gmra.mxu1 %vm584_vm1, %v2417_v41 }
 0x126   : > { %2971 = vmatprep.mubr.msk.f32.mxu1 %vm3301_vm2, %v3300_v5 }
 0x127   : > { %2877 = vmatmul.mubr.msk.f32.gmra.mxu0 %vm584_vm1, %v2367_v42 }
 0x128   : > { %2879 = vmatprep.mubr.msk.f32.mxu0 %vm3301_vm2, %v3300_v5 }
 0x129   : > { %2972 = vmatmul.mubr.msk.f32.gmra.mxu1 %vm584_vm1, %v2418_v43 }
 0x12a   : > { %2974 = vmatprep.mubr.msk.f32.mxu1 %vm3301_vm2, %v3300_v5 }
 0x12b   : > { %2880 = vmatmul.mubr.msk.f32.gmra.mxu0 %vm584_vm1, %v2368_v44 }
 0x12c   : > { %2882 = vmatprep.mubr.msk.f32.mxu0 %vm3301_vm2, %v3300_v5 }
 0x12d   : > { %2975 = vmatmul.mubr.msk.f32.gmra.mxu1 %vm584_vm1, %v2419_v45 }
 0x12e   : > { %2977 = vmatprep.mubr.msk.f32.mxu1 %vm3301_vm2, %v3300_v5 }
 0x12f   : > { %2883 = vmatmul.mubr.msk.f32.gmra.mxu0 %vm584_vm1, %v2369_v46 }
 0x130   : > { %2885 = vmatprep.mubr.msk.f32.mxu0 %vm3301_vm2, %v3300_v5 }
 0x131   : > { %2978 = vmatmul.mubr.msk.f32.gmra.mxu1 %vm584_vm1, %v2420_v47 }
 0x132   : > { %2980 = vmatprep.mubr.msk.f32.mxu1 %vm3301_vm2, %v3300_v5 }
 0x133   : > { %v4104_v50 = vpop.f32.mrf.mxu0  ;;  %2886 = vmatmul.mubr.msk.f32.gmra.mxu0 %vm584_vm1, %v2370_v48 }
 0x134   : > { %2888 = vmatprep.mubr.msk.f32.mxu0 %vm3301_vm2, %v3300_v5 }
 0x135   : > { %v4110_v52 = vpop.f32.mrf.mxu1  ;;  %2981 = vmatmul.mubr.msk.f32.gmra.mxu1 %vm584_vm1, %v2421_v49  ;;  %v2628_v53 = vpop.f32.mrf.mxu0 }
 0x136   : > { %v1145_v54 = vmax.f32 %v4104_v50, %v4110_v52  ;;  %2983 = vmatprep.mubr.msk.f32.mxu1 %vm3301_vm2, %v3300_v5 }
 0x137   : > { %v2723_v56 = vpop.f32.mrf.mxu1  ;;  %v4118_v57 = vpop.f32.mrf.mxu0  ;;  %2889 = vmatmul.mubr.msk.f32.gmra.mxu0 %vm584_vm1, %v2371_v51 }
 0x139   : > { %v4121_v58 = vpop.f32.mrf.mxu1  ;;  %2984 = vmatmul.mubr.msk.f32.gmra.mxu1 %vm584_vm1, %v2422_v55  ;;  %v2631_v59 = vpop.f32.mrf.mxu0 }
 0x13a   : > { %v1146_v60 = vmax.f32 %v4118_v57, %v4121_v58 }
 0x13b   : > { %v2726_v61 = vpop.f32.mrf.mxu1  ;;  %v4126_v62 = vpop.f32.mrf.mxu0 }
 0x13d   : > { %v4128_v63 = vpop.f32.mrf.mxu1  ;;  %v2634_v5 = vpop.f32.mrf.mxu0 }
 0x13f   : > { %v2729_v1 = vpop.f32.mrf.mxu1  ;;  %v4132_v2 = vpop.f32.mrf.mxu0 }
 0x141   : > { %v4134_v3 = vpop.f32.mrf.mxu1  ;;  %v2637_v4 = vpop.f32.mrf.mxu0 }
 0x143   : > { %v2732_v7 = vpop.f32.mrf.mxu1  ;;  %v4138_v8 = vpop.f32.mrf.mxu0 }
 0x145   : > { %v4140_v9 = vpop.f32.mrf.mxu1  ;;  %v2640_v10 = vpop.f32.mrf.mxu0 }
 0x147   : > { %v2735_v12 = vpop.f32.mrf.mxu1  ;;  %v4144_v13 = vpop.f32.mrf.mxu0 }
 0x149   : > { %v4146_v14 = vpop.f32.mrf.mxu1  ;;  %v2643_v15 = vpop.f32.mrf.mxu0 }
 0x14b   : > { %v2738_v17 = vpop.f32.mrf.mxu1  ;;  %v4150_v18 = vpop.f32.mrf.mxu0 }
 0x14d   : > { %v4152_v19 = vpop.f32.mrf.mxu1  ;;  %v2646_v20 = vpop.f32.mrf.mxu0 }
 0x14f   : > { %v2741_v22 = vpop.f32.mrf.mxu1  ;;  %v4156_v23 = vpop.f32.mrf.mxu0 }
 0x151   : > { %v4158_v24 = vpop.f32.mrf.mxu1  ;;  %v2649_v25 = vpop.f32.mrf.mxu0 }
 0x153   : > { %v2744_v27 = vpop.f32.mrf.mxu1  ;;  %v4162_v28 = vpop.f32.mrf.mxu0 }
 0x155   : > { %v4164_v29 = vpop.f32.mrf.mxu1  ;;  %v2652_v30 = vpop.f32.mrf.mxu0 }
 0x157   : > { %v2747_v32 = vpop.f32.mrf.mxu1  ;;  %v4168_v33 = vpop.f32.mrf.mxu0 }
 0x159   : > { %v4170_v34 = vpop.f32.mrf.mxu1  ;;  %v2655_v35 = vpop.f32.mrf.mxu0 }
 0x15b   : > { %v2750_v37 = vpop.f32.mrf.mxu1  ;;  %v4174_v38 = vpop.f32.mrf.mxu0 }
 0x15d   : > { %v4176_v39 = vpop.f32.mrf.mxu1  ;;  %v2658_v40 = vpop.f32.mrf.mxu0 }
 0x15f   : > { %v2753_v42 = vpop.f32.mrf.mxu1  ;;  %v4180_v43 = vpop.f32.mrf.mxu0 }
 0x161   : > { %v4182_v44 = vpop.f32.mrf.mxu1  ;;  %v2661_v45 = vpop.f32.mrf.mxu0 }
 0x163   : > { %v2756_v47 = vpop.f32.mrf.mxu1  ;;  %v4186_v48 = vpop.f32.mrf.mxu0 }
 0x165   : > { %v4188_v49 = vpop.f32.mrf.mxu1  ;;  %v2664_v51 = vpop.f32.mrf.mxu0 }
 0x167   : > { %v2759_v55 = vpop.f32.mrf.mxu1  ;;  %v4192_v56 = vpop.f32.mrf.mxu0 }
 0x169   : > { %v4194_v59 = vpop.f32.mrf.mxu1  ;;  %v2667_v61 = vpop.f32.mrf.mxu0 }
 0x16b   : > { %v2762_v1 = vpop.f32.mrf.mxu1  ;;  %v4198_v4 = vpop.f32.mrf.mxu0 }
 0x16d   : > { %v4200_v7 = vpop.f32.mrf.mxu1  ;;  %v2670_v10 = vpop.f32.mrf.mxu0 }
 0x16f   : > { %v2765_v15 = vpop.f32.mrf.mxu1  ;;  %v4204_v17 = vpop.f32.mrf.mxu0 }
 0x171   : > { %v4206_v20 = vpop.f32.mrf.mxu1  ;;  %v2673_v22 = vpop.f32.mrf.mxu0 }
 0x173   : > { %v2768_v27 = vpop.f32.mrf.mxu1  ;;  %v4210_v30 = vpop.f32.mrf.mxu0 }
 0x175   : > { %v4212_v32 = vpop.f32.mrf.mxu1  ;;  %v2676_v35 = vpop.f32.mrf.mxu0 }
 0x177   : > { %v2771_v40 = vpop.f32.mrf.mxu1  ;;  %v4216_v42 = vpop.f32.mrf.mxu0 }
 0x179   : > { %v4218_v45 = vpop.f32.mrf.mxu1  ;;  %v2679_v47 = vpop.f32.mrf.mxu0 }
 0x17b   : > { %v2774_v55 = vpop.f32.mrf.mxu1  ;;  %v4222_v61 = vpop.f32.mrf.mxu0 }
 0x17d   : > { %v4224_v1 = vpop.f32.mrf.mxu1  ;;  %v2682_v10 = vpop.f32.mrf.mxu0 }
 0x17f   : > { %v2777_v22 = vpop.f32.mrf.mxu1  ;;  %v4228_v27 = vpop.f32.mrf.mxu0 }
 0x181   : > { %v4230_v35 = vpop.f32.mrf.mxu1  ;;  %v2685_v40 = vpop.f32.mrf.mxu0 }
 0x183   : > { %v2780_v37 = vpop.f32.mrf.mxu1  ;;  %v4234_v51 = vpop.f32.mrf.mxu0 }
 0x185   : > { %v4236_v55 = vpop.f32.mrf.mxu1  ;;  %v2688_v25 = vpop.f32.mrf.mxu0 }
 0x187   : > { %v2783_v12 = vpop.f32.mrf.mxu1  ;;  %v4240_v15 = vpop.f32.mrf.mxu0 }
 0x189   : > { %v4242_v22 = vpop.f32.mrf.mxu1  ;;  %v2691_v5 = vpop.f32.mrf.mxu0 }
 0x18b   : > { %v2786_v53 = vpop.f32.mrf.mxu1  ;;  %v4246_v47 = vpop.f32.mrf.mxu0 }
 0x18d   : > { %v4248_v37 = vpop.f32.mrf.mxu1  ;;  %v2694_v46 = vpop.f32.mrf.mxu0 }
 0x18f   : > { %v2789_v10 = vpop.f32.mrf.mxu1  ;;  %v4252_v12 = vpop.f32.mrf.mxu0 }
 0x191   : > { %v4254_v41 = vpop.f32.mrf.mxu1  ;;  %v2697_v36 = vpop.f32.mrf.mxu0 }
 0x193   : > { %v2792_v40 = vpop.f32.mrf.mxu1  ;;  %v4258_v53 = vpop.f32.mrf.mxu0 }
 0x194   : > { %v4272_v40 = vld [vmem:[%s4542_s2] ss:$0 sm:$0xff] }
 0x195   : > { %v4260_v31 = vpop.f32.mrf.mxu1  ;;  %v2700_v26 = vpop.f32.mrf.mxu0 }
 0x197   : > { %v2795_v21 = vpop.f32.mrf.mxu1  ;;  %v1337_v25 = vpop.f32.mrf.mxu0 }
 0x198   : > { %v1461_v10 = vmax.f32 %v1145_v54, %v1337_v25 }
 0x199   : > { %v1653_v36 = vpop.f32.mrf.mxu1  ;;  %v2818_v5 = vpop.f32.mrf.mxu0 }
 0x19a   : > { %v1777_v16 = vmax.f32 %v1461_v10, %v1653_v36 }
 0x19b   : > { %v2913_v26 = vpop.f32.mrf.mxu1  ;;  %v1342_v11 = vpop.f32.mrf.mxu0 }
 0x19c   : > { %v1809_v46 = vadd.f32 %v4272_v40, %v1777_v16  ;;  %v1462_v21 = vmax.f32 %v1146_v60, %v1342_v11  ;;  %v4552_v16 = vmax.f32 %v4126_v62, %v4128_v63  ;;  %v4553_v26 = vmax.f32 %v4132_v2, %v4134_v3 }
 0x19d   : > { %v1658_v50 = vpop.f32.mrf.mxu1  ;;  %v2821_v52 = vpop.f32.mrf.mxu0 }
 0x19e   : > { %v1834_v54 = vmax.f32 %v1809_v46, 0.0  ;;  %v1778_v25 = vmax.f32 %v1462_v21, %v1658_v50 }
 0x19f   : > { %v2916_v6 = vpop.f32.mrf.mxu1  ;;  %v1347_v0 = vpop.f32.mrf.mxu0 }
 0x1a0   : > { %1860 = vst.msk [vmem:[%s4278_s12] sm:$0xff] %vm1859_vm3, %v1834_v54  ;;  %v1810_v5 = vadd.f32 %v4272_v40, %v1778_v25  ;;  %v1463_v57 = vmax.f32 %v4552_v16, %v1347_v0 }
 0x1a1   : > { %v1663_v58 = vpop.f32.mrf.mxu1  ;;  %v2824_v60 = vpop.f32.mrf.mxu0 }
 0x1a2   : > { %v1835_v11 = vmax.f32 %v1810_v5, 0.0  ;;  %v1779_v46 = vmax.f32 %v1463_v57, %v1663_v58  ;;  %v4554_v5 = vmax.f32 %v4138_v8, %v4140_v9 }
 0x1a3   : > { %v2919_v10 = vpop.f32.mrf.mxu1  ;;  %v1352_v6 = vpop.f32.mrf.mxu0 }
 0x1a4   : > { %1861 = vst.msk [vmem:[%s4278_s12 + $0x8] sm:$0xff] %vm1859_vm3, %v1835_v11  ;;  %v1811_v36 = vadd.f32 %v4272_v40, %v1779_v46  ;;  %v1464_v21 = vmax.f32 %v4553_v26, %v1352_v6  ;;  %v4555_v10 = vmax.f32 %v4144_v13, %v4146_v14 }
 0x1a5   : > { %v1668_v50 = vpop.f32.mrf.mxu1  ;;  %v2827_v52 = vpop.f32.mrf.mxu0 }
 0x1a6   : > { %v1836_v62 = vmax.f32 %v1811_v36, 0.0  ;;  %v1780_v63 = vmax.f32 %v1464_v21, %v1668_v50 }
 0x1a7   : > { %v2922_v0 = vpop.f32.mrf.mxu1  ;;  %v1357_v54 = vpop.f32.mrf.mxu0 }
 0x1a8   : > { %1862 = vst.msk [vmem:[%s4278_s12 + $0x10] sm:$0xff] %vm1859_vm3, %v1836_v62  ;;  %v1812_v25 = vadd.f32 %v4272_v40, %v1780_v63  ;;  %v1465_v16 = vmax.f32 %v4554_v5, %v1357_v54  ;;  %v4556_v62 = vmax.f32 %v4150_v18, %v4152_v19 }
 0x1a9   : > { %v1673_v57 = vpop.f32.mrf.mxu1  ;;  %v2830_v58 = vpop.f32.mrf.mxu0 }
 0x1aa   : > { %v1837_v2 = vmax.f32 %v1812_v25, 0.0  ;;  %v1781_v3 = vmax.f32 %v1465_v16, %v1673_v57  ;;  %v4557_v57 = vmax.f32 %v4156_v23, %v4158_v24 }
 0x1ab   : > { %v2925_v60 = vpop.f32.mrf.mxu1  ;;  %v1362_v11 = vpop.f32.mrf.mxu0 }
 0x1ac   : > { %1863 = vst.msk [vmem:[%s4278_s12 + $0x18] sm:$0xff] %vm1859_vm3, %v1837_v2  ;;  %v1813_v46 = vadd.f32 %v4272_v40, %v1781_v3  ;;  %v1466_v6 = vmax.f32 %v4555_v10, %v1362_v11  ;;  %v4558_v10 = vmax.f32 %v4162_v28, %v4164_v29 }
 0x1ad   : > { %v1678_v36 = vpop.f32.mrf.mxu1  ;;  %v2833_v26 = vpop.f32.mrf.mxu0 }
 0x1ae   : > { %v1838_v8 = vmax.f32 %v1813_v46, 0.0  ;;  %v1782_v9 = vmax.f32 %v1466_v6, %v1678_v36 }
 0x1af   : > { %v2928_v21 = vpop.f32.mrf.mxu1  ;;  %v1367_v50 = vpop.f32.mrf.mxu0 }
 0x1b0   : > { %1864 = vst.msk [vmem:[%s4278_s12 + $0x20] sm:$0xff] %vm1859_vm3, %v1838_v8  ;;  %v1814_v52 = vadd.f32 %v4272_v40, %v1782_v9  ;;  %v1467_v63 = vmax.f32 %v4556_v62, %v1367_v50  ;;  %v4559_v50 = vmax.f32 %v4168_v33, %v4170_v34 }
 0x1b1   : > { %v1683_v0 = vpop.f32.mrf.mxu1  ;;  %v2836_v54 = vpop.f32.mrf.mxu0 }
 0x1b2   : > { %v1839_v13 = vmax.f32 %v1814_v52, 0.0  ;;  %v1783_v14 = vmax.f32 %v1467_v63, %v1683_v0 }
 0x1b3   : > { %v2931_v25 = vpop.f32.mrf.mxu1  ;;  %v1372_v5 = vpop.f32.mrf.mxu0 }
 0x1b4   : > { %1865 = vst.msk [vmem:[%s4278_s12 + $0x28] sm:$0xff] %vm1859_vm3, %v1839_v13  ;;  %v1815_v16 = vadd.f32 %v4272_v40, %v1783_v14  ;;  %v1468_v58 = vmax.f32 %v4557_v57, %v1372_v5  ;;  %v4560_v14 = vmax.f32 %v4174_v38, %v4176_v39 }
 0x1b5   : > { %v1688_v2 = vpop.f32.mrf.mxu1  ;;  %v2839_v3 = vpop.f32.mrf.mxu0 }
 0x1b6   : > { %v1840_v18 = vmax.f32 %v1815_v16, 0.0  ;;  %v1784_v19 = vmax.f32 %v1468_v58, %v1688_v2  ;;  %v4561_v3 = vmax.f32 %v4180_v43, %v4182_v44 }
 0x1b7   : > { %v2934_v60 = vpop.f32.mrf.mxu1  ;;  %v1377_v11 = vpop.f32.mrf.mxu0 }
 0x1b8   : > { %1866 = vst.msk [vmem:[%s4278_s12 + $0x30] sm:$0xff] %vm1859_vm3, %v1840_v18  ;;  %v1816_v46 = vadd.f32 %v4272_v40, %v1784_v19  ;;  %v1469_v6 = vmax.f32 %v4558_v10, %v1377_v11 }
 0x1b9   : > { %v1693_v36 = vpop.f32.mrf.mxu1  ;;  %v2842_v26 = vpop.f32.mrf.mxu0 }
 0x1ba   : > { %v1841_v23 = vmax.f32 %v1816_v46, 0.0  ;;  %v1785_v24 = vmax.f32 %v1469_v6, %v1693_v36  ;;  %v4562_v6 = vmax.f32 %v4186_v48, %v4188_v49 }
 0x1bb   : > { %v2937_v8 = vpop.f32.mrf.mxu1  ;;  %v1382_v9 = vpop.f32.mrf.mxu0 }
 0x1bc   : > { %1867 = vst.msk [vmem:[%s4278_s12 + $0x38] sm:$0xff] %vm1859_vm3, %v1841_v23  ;;  %v1817_v21 = vadd.f32 %v4272_v40, %v1785_v24  ;;  %v1470_v52 = vmax.f32 %v4559_v50, %v1382_v9 }
 0x1bd   : > { %v1698_v62 = vpop.f32.mrf.mxu1  ;;  %v2845_v63 = vpop.f32.mrf.mxu0 }
 0x1be   : > { %v1842_v28 = vmax.f32 %v1817_v21, 0.0  ;;  %v1786_v29 = vmax.f32 %v1470_v52, %v1698_v62  ;;  %v4563_v21 = vmax.f32 %v4192_v56, %v4194_v59 }
 0x1bf   : > { %v2940_v0 = vpop.f32.mrf.mxu1  ;;  %v1387_v54 = vpop.f32.mrf.mxu0 }
 0x1c0   : > { %1868 = vst.msk [vmem:[%s4278_s12 + $0x40] sm:$0xff] %vm1859_vm3, %v1842_v28  ;;  %v1818_v13 = vadd.f32 %v4272_v40, %v1786_v29  ;;  %v1471_v25 = vmax.f32 %v4560_v14, %v1387_v54  ;;  %v4564_v0 = vmax.f32 %v4198_v4, %v4200_v7 }
 0x1c1   : > { %v1703_v5 = vpop.f32.mrf.mxu1  ;;  %v2848_v16 = vpop.f32.mrf.mxu0 }
 0x1c2   : > { %v1843_v33 = vmax.f32 %v1818_v13, 0.0  ;;  %v1787_v34 = vmax.f32 %v1471_v25, %v1703_v5 }
 0x1c3   : > { %v2943_v57 = vpop.f32.mrf.mxu1  ;;  %v1392_v58 = vpop.f32.mrf.mxu0 }
 0x1c4   : > { %1869 = vst.msk [vmem:[%s4278_s12 + $0x48] sm:$0xff] %vm1859_vm3, %v1843_v33  ;;  %v1819_v2 = vadd.f32 %v4272_v40, %v1787_v34  ;;  %v1472_v18 = vmax.f32 %v4561_v3, %v1392_v58  ;;  %v4565_v33 = vmax.f32 %v4204_v17, %v4206_v20 }
 0x1c5   : > { %v1708_v19 = vpop.f32.mrf.mxu1  ;;  %v2851_v60 = vpop.f32.mrf.mxu0 }
 0x1c6   : > { %v1844_v38 = vmax.f32 %v1819_v2, 0.0  ;;  %v1788_v39 = vmax.f32 %v1472_v18, %v1708_v19  ;;  %v4566_v19 = vmax.f32 %v4210_v30, %v4212_v32 }
 0x1c7   : > { %v2946_v11 = vpop.f32.mrf.mxu1  ;;  %v1397_v46 = vpop.f32.mrf.mxu0 }
 0x1c8   : > { %1870 = vst.msk [vmem:[%s4278_s12 + $0x50] sm:$0xff] %vm1859_vm3, %v1844_v38  ;;  %v1820_v10 = vadd.f32 %v4272_v40, %v1788_v39  ;;  %v1473_v36 = vmax.f32 %v4562_v6, %v1397_v46  ;;  %v4567_v6 = vmax.f32 %v4216_v42, %v4218_v45 }
 0x1c9   : > { %v1713_v26 = vpop.f32.mrf.mxu1  ;;  %v2854_v23 = vpop.f32.mrf.mxu0 }
 0x1ca   : > { %v1845_v43 = vmax.f32 %v1820_v10, 0.0  ;;  %v1789_v44 = vmax.f32 %v1473_v36, %v1713_v26 }
 0x1cb   : > { %v2949_v24 = vpop.f32.mrf.mxu1  ;;  %v1402_v8 = vpop.f32.mrf.mxu0 }
 0x1cc   : > { %1871 = vst.msk [vmem:[%s4278_s12 + $0x58] sm:$0xff] %vm1859_vm3, %v1845_v43  ;;  %v1821_v9 = vadd.f32 %v4272_v40, %v1789_v44  ;;  %v1474_v50 = vmax.f32 %v4563_v21, %v1402_v8  ;;  %v4568_v8 = vmax.f32 %v4222_v61, %v4224_v1 }
 0x1cd   : > { %v1718_v52 = vpop.f32.mrf.mxu1  ;;  %v2857_v62 = vpop.f32.mrf.mxu0 }
 0x1ce   : > { %v1846_v48 = vmax.f32 %v1821_v9, 0.0  ;;  %v1790_v49 = vmax.f32 %v1474_v50, %v1718_v52 }
 0x1cf   : > { %v2952_v63 = vpop.f32.mrf.mxu1  ;;  %v1407_v28 = vpop.f32.mrf.mxu0 }
 0x1d0   : > { %1872 = vst.msk [vmem:[%s4278_s12 + $0x60] sm:$0xff] %vm1859_vm3, %v1846_v48  ;;  %v1822_v29 = vadd.f32 %v4272_v40, %v1790_v49  ;;  %v1475_v54 = vmax.f32 %v4564_v0, %v1407_v28  ;;  %v4569_v49 = vmax.f32 %v4228_v27, %v4230_v35 }
 0x1d1   : > { %v1723_v13 = vpop.f32.mrf.mxu1  ;;  %v2860_v14 = vpop.f32.mrf.mxu0 }
 0x1d2   : > { %v1847_v56 = vmax.f32 %v1822_v29, 0.0  ;;  %v1791_v59 = vmax.f32 %v1475_v54, %v1723_v13  ;;  %v4570_v14 = vmax.f32 %v4234_v51, %v4236_v55 }
 0x1d3   : > { %v2955_v25 = vpop.f32.mrf.mxu1  ;;  %v1412_v5 = vpop.f32.mrf.mxu0 }
 0x1d4   : > { %1873 = vst.msk [vmem:[%s4278_s12 + $0x68] sm:$0xff] %vm1859_vm3, %v1847_v56  ;;  %v1823_v16 = vadd.f32 %v4272_v40, %v1791_v59  ;;  %v1476_v34 = vmax.f32 %v4565_v33, %v1412_v5 }
 0x1d5   : > { %v1728_v57 = vpop.f32.mrf.mxu1  ;;  %v2863_v58 = vpop.f32.mrf.mxu0 }
 0x1d6   : > { %v1848_v4 = vmax.f32 %v1823_v16, 0.0  ;;  %v1792_v7 = vmax.f32 %v1476_v34, %v1728_v57  ;;  %v4571_v34 = vmax.f32 %v4240_v15, %v4242_v22 }
 0x1d7   : > { %v2958_v2 = vpop.f32.mrf.mxu1  ;;  %v1417_v3 = vpop.f32.mrf.mxu0 }
 0x1d8   : > { %1874 = vst.msk [vmem:[%s4278_s12 + $0x70] sm:$0xff] %vm1859_vm3, %v1848_v4  ;;  %v1824_v18 = vadd.f32 %v4272_v40, %v1792_v7  ;;  %v1477_v60 = vmax.f32 %v4566_v19, %v1417_v3 }
 0x1d9   : > { %v1733_v38 = vpop.f32.mrf.mxu1  ;;  %v2866_v39 = vpop.f32.mrf.mxu0 }
 0x1da   : > { %v1849_v17 = vmax.f32 %v1824_v18, 0.0  ;;  %v1793_v20 = vmax.f32 %v1477_v60, %v1733_v38  ;;  %v4572_v18 = vmax.f32 %v4246_v47, %v4248_v37 }
 0x1db   : > { %v2961_v11 = vpop.f32.mrf.mxu1  ;;  %v1422_v46 = vpop.f32.mrf.mxu0 }
 0x1dc   : > { %1875 = vst.msk [vmem:[%s4278_s12 + $0x78] sm:$0xff] %vm1859_vm3, %v1849_v17  ;;  %v1825_v10 = vadd.f32 %v4272_v40, %v1793_v20  ;;  %v1478_v36 = vmax.f32 %v4567_v6, %v1422_v46  ;;  %v4573_v11 = vmax.f32 %v4252_v12, %v4254_v41 }
 0x1dd   : > { %v1738_v26 = vpop.f32.mrf.mxu1  ;;  %v2869_v23 = vpop.f32.mrf.mxu0 }
 0x1de   : > { %v1850_v30 = vmax.f32 %v1825_v10, 0.0  ;;  %v1794_v32 = vmax.f32 %v1478_v36, %v1738_v26 }
 0x1df   : > { %v2964_v43 = vpop.f32.mrf.mxu1  ;;  %v1427_v44 = vpop.f32.mrf.mxu0 }
 0x1e0   : > { %1876 = vst.msk [vmem:[%s4278_s12 + $0x80] sm:$0xff] %vm1859_vm3, %v1850_v30  ;;  %v1826_v24 = vadd.f32 %v4272_v40, %v1794_v32  ;;  %v1479_v9 = vmax.f32 %v4568_v8, %v1427_v44  ;;  %v4574_v30 = vmax.f32 %v4258_v53, %v4260_v31 }
 0x1e1   : > { %v1743_v21 = vpop.f32.mrf.mxu1  ;;  %v2872_v50 = vpop.f32.mrf.mxu0 }
 0x1e2   : > { %v1851_v42 = vmax.f32 %v1826_v24, 0.0  ;;  %v1795_v45 = vmax.f32 %v1479_v9, %v1743_v21 }
 0x1e3   : > { %v2967_v52 = vpop.f32.mrf.mxu1  ;;  %v1432_v62 = vpop.f32.mrf.mxu0 }
 0x1e4   : > { %1877 = vst.msk [vmem:[%s4278_s12 + $0x88] sm:$0xff] %vm1859_vm3, %v1851_v42  ;;  %v1827_v48 = vadd.f32 %v4272_v40, %v1795_v45  ;;  %v1480_v63 = vmax.f32 %v4569_v49, %v1432_v62 }
 0x1e5   : > { %v1748_v28 = vpop.f32.mrf.mxu1  ;;  %v2875_v29 = vpop.f32.mrf.mxu0 }
 0x1e6   : > { %v1852_v61 = vmax.f32 %v1827_v48, 0.0  ;;  %v1796_v1 = vmax.f32 %v1480_v63, %v1748_v28 }
 0x1e7   : > { %v2970_v0 = vpop.f32.mrf.mxu1  ;;  %v1437_v54 = vpop.f32.mrf.mxu0 }
 0x1e8   : > { %1878 = vst.msk [vmem:[%s4278_s12 + $0x90] sm:$0xff] %vm1859_vm3, %v1852_v61  ;;  %v1828_v13 = vadd.f32 %v4272_v40, %v1796_v1  ;;  %v1481_v56 = vmax.f32 %v4570_v14, %v1437_v54 }
 0x1e9   : > { %v1753_v59 = vpop.f32.mrf.mxu1  ;;  %v2878_v25 = vpop.f32.mrf.mxu0 }
 0x1ea   : > { %v1853_v27 = vmax.f32 %v1828_v13, 0.0  ;;  %v1797_v35 = vmax.f32 %v1481_v56, %v1753_v59 }
 0x1eb   : > { %v2973_v5 = vpop.f32.mrf.mxu1  ;;  %v1442_v16 = vpop.f32.mrf.mxu0 }
 0x1ec   : > { %1879 = vst.msk [vmem:[%s4278_s12 + $0x98] sm:$0xff] %vm1859_vm3, %v1853_v27  ;;  %v1829_v33 = vadd.f32 %v4272_v40, %v1797_v35  ;;  %v1482_v57 = vmax.f32 %v4571_v34, %v1442_v16 }
 0x1ed   : > { %v1758_v58 = vpop.f32.mrf.mxu1  ;;  %v2881_v4 = vpop.f32.mrf.mxu0 }
 0x1ee   : > { %v1854_v51 = vmax.f32 %v1829_v33, 0.0  ;;  %v1798_v55 = vmax.f32 %v1482_v57, %v1758_v58 }
 0x1ef   : > { %v2976_v7 = vpop.f32.mrf.mxu1  ;;  %v1447_v2 = vpop.f32.mrf.mxu0 }
 0x1f0   : > { %1880 = vst.msk [vmem:[%s4278_s12 + $0xa0] sm:$0xff] %vm1859_vm3, %v1854_v51  ;;  %v1830_v3 = vadd.f32 %v4272_v40, %v1798_v55  ;;  %v1483_v19 = vmax.f32 %v4572_v18, %v1447_v2 }
 0x1f1   : > { %v1763_v60 = vpop.f32.mrf.mxu1  ;;  %v2884_v38 = vpop.f32.mrf.mxu0 }
 0x1f2   : > { %v1855_v15 = vmax.f32 %v1830_v3, 0.0  ;;  %v1799_v22 = vmax.f32 %v1483_v19, %v1763_v60 }
 0x1f3   : > { %v2979_v39 = vpop.f32.mrf.mxu1  ;;  %v1452_v17 = vpop.f32.mrf.mxu0 }
 0x1f4   : > { %1881 = vst.msk [vmem:[%s4278_s12 + $0xa8] sm:$0xff] %vm1859_vm3, %v1855_v15  ;;  %v1831_v20 = vadd.f32 %v4272_v40, %v1799_v22  ;;  %v1484_v46 = vmax.f32 %v4573_v11, %v1452_v17 }
 0x1f5   : > { %v1768_v10 = vpop.f32.mrf.mxu1  ;;  %v2887_v6 = vpop.f32.mrf.mxu0 }
 0x1f6   : > { %v1856_v47 = vmax.f32 %v1831_v20, 0.0  ;;  %v1800_v37 = vmax.f32 %v1484_v46, %v1768_v10 }
 0x1f7   : > { %v2982_v36 = vpop.f32.mrf.mxu1  ;;  %v1457_v26 = vpop.f32.mrf.mxu0 }
 0x1f8   : > { %1882 = vst.msk [vmem:[%s4278_s12 + $0xb0] sm:$0xff] %vm1859_vm3, %v1856_v47  ;;  %v1832_v23 = vadd.f32 %v4272_v40, %v1800_v37  ;;  %v1485_v32 = vmax.f32 %v4574_v30, %v1457_v26 }
 0x1f9   : > { %v1773_v43 = vpop.f32.mrf.mxu1  ;;  %v2890_v44 = vpop.f32.mrf.mxu0 }
 0x1fa   : > { %v1857_v41 = vmax.f32 %v1832_v23, 0.0  ;;  %v1801_v12 = vmax.f32 %v1485_v32, %v1773_v43 }
 0x1fb   : > { %v2985_v24 = vpop.f32.mrf.mxu1 }
 0x1fc   : > { %1883 = vst.msk [vmem:[%s4278_s12 + $0xb8] sm:$0xff] %vm1859_vm3, %v1857_v41  ;;  %v1833_v8 = vadd.f32 %v4272_v40, %v1801_v12  ;;  %1891 = sbr.rel (!%p3353_p5) target bundleno = 572 (0x23c), region = 88 }
 0x1fe   : > { %v1858_v9 = vmax.f32 %v1833_v8, 0.0 }
 0x200   : > { %1884 = vst.msk [vmem:[%s4278_s12 + $0xc0] sm:$0xff] %vm1859_vm3, %v1858_v9 }
 0x201   : > { %s4590_s9 = smov (!%p1894_p4, %s1893_s9), 25 }
 0x202   : > { %s2450_s18 = sshll.u32 %s4590_s9, 7 }
 0x203   : > { %p2453_p6 = scmp.eq.s32.totalorder %s2450_s18, 0 }
 0x204   : > { %3144 = sdivrem.u32 (!%p2453_p6), %s4590_s9, 25 }
 0x205   : > { %1902 = sbr.rel (%p2453_p6) target bundleno = 572 (0x23c), region = 92 }
 0x20d   : > { %s4436_s20 = spop.drf %3144 }
 0x20e   : > { %p2454_p5 = scmp.le.s32.totalorder %s4436_s20, 0 }
 0x20f   : > { %s4575_s15 = smov (!%p2454_p5), %s4430_s17  ;;  %s4576_s21 = smov (!%p2454_p5), %s4278_s12 }
 0x210   : > { %2209 = sbr.rel (%p2454_p5) target bundleno = 547 (0x223), region = 206  ;;  %s4445_s22 = smov (!%p2454_p5), 0  }
 0x211   : > { %s4447_s23 = smov (!%p2454_p5), 0  }
 0x215 LB: >> { %v2015_v31 = vld [vmem:[%s3274_s21] sm:$0xff]  ;;  %v2017_v53 = vld [vmem:[%s3274_s21 + $0x8] sm:$0xff]  ;;  %v2019_v40 = vld [vmem:[%s3274_s21 + $0x10] sm:$0xff]  ;;  %s2065_s25 = sadd.s32 1, %s3278_s22  ;;  %s2009_s23 = sadd.s32 1, %s3282_s23   ;;  %s3282_s23 = sphi %s4447_s23, %s2009_s23   ;;  %s3278_s22 = sphi %s4445_s22, %s4579_s22   ;;  %s3274_s21 = sphi %s4576_s21, %s4578_s21   ;;  %s3270_s15 = sphi %s4575_s15, %s4577_s15  }
 0x216   : >> { %2016 = vst [vmem:[%s3270_s15] sm:$0xff] %v2015_v31  ;;  %2018 = vst [vmem:[%s3270_s15 + $0x8] sm:$0xff] %v2017_v53  ;;  %v2021_v21 = vld [vmem:[%s3274_s21 + $0x18] sm:$0xff]  ;;  %v2023_v50 = vld [vmem:[%s3274_s21 + $0x20] sm:$0xff]  ;;  %p2066_p7 = scmp.ge.s32.totalorder %s2065_s25, %s4436_s20  ;;  %p2008_p8 = scmp.ge.s32.totalorder %s2009_s23, %s4436_s20 }
 0x217   : >> { %2020 = vst [vmem:[%s3270_s15 + $0x10] sm:$0xff] %v2019_v40  ;;  %v2025_v42 = vld [vmem:[%s3274_s21 + $0x28] sm:$0xff]  ;;  %2022 = vst [vmem:[%s3270_s15 + $0x18] sm:$0xff] %v2021_v21  ;;  %v2027_v45 = vld [vmem:[%s3274_s21 + $0x30] sm:$0xff] }
 0x218   : >> { %2024 = vst [vmem:[%s3270_s15 + $0x20] sm:$0xff] %v2023_v50  ;;  %2026 = vst [vmem:[%s3270_s15 + $0x28] sm:$0xff] %v2025_v42  ;;  %v2029_v52 = vld [vmem:[%s3274_s21 + $0x38] sm:$0xff]  ;;  %v2031_v62 = vld [vmem:[%s3274_s21 + $0x40] sm:$0xff]  ;;  %s4592_s25 = smov (%p2066_p7, %s2065_s25), 0 }
 0x219   : >> { %2028 = vst [vmem:[%s3270_s15 + $0x30] sm:$0xff] %v2027_v45  ;;  %2030 = vst [vmem:[%s3270_s15 + $0x38] sm:$0xff] %v2029_v52  ;;  %v2033_v48 = vld [vmem:[%s3274_s21 + $0x48] sm:$0xff]  ;;  %v2035_v49 = vld [vmem:[%s3274_s21 + $0x50] sm:$0xff]  ;;  %s2068_s26 = smul.u32 200, %s4592_s25  ;;  %s4579_s22 = smov %s4592_s25 }
 0x21a   : >> { %2032 = vst [vmem:[%s3270_s15 + $0x40] sm:$0xff] %v2031_v62  ;;  %v2037_v63 = vld [vmem:[%s3274_s21 + $0x58] sm:$0xff]  ;;  %2034 = vst [vmem:[%s3270_s15 + $0x48] sm:$0xff] %v2033_v48  ;;  %v2039_v28 = vld [vmem:[%s3274_s21 + $0x60] sm:$0xff] }
 0x21b   : >> { %2036 = vst [vmem:[%s3270_s15 + $0x50] sm:$0xff] %v2035_v49  ;;  %2038 = vst [vmem:[%s3270_s15 + $0x58] sm:$0xff] %v2037_v63  ;;  %v2041_v29 = vld [vmem:[%s3274_s21 + $0x68] sm:$0xff]  ;;  %v2043_v61 = vld [vmem:[%s3274_s21 + $0x70] sm:$0xff]  ;;  %s2070_s27 = scalar_lea.vmem %s4278_s12, %s2068_s26 [#allocation3]   ;;  %s2071_s29 = scalar_lea.vmem %s4430_s17, %s2068_s26  }
 0x21c   : >> { %2040 = vst [vmem:[%s3270_s15 + $0x60] sm:$0xff] %v2039_v28  ;;  %2042 = vst [vmem:[%s3270_s15 + $0x68] sm:$0xff] %v2041_v29  ;;  %v2045_v1 = vld [vmem:[%s3274_s21 + $0x78] sm:$0xff]  ;;  %v2047_v0 = vld [vmem:[%s3274_s21 + $0x80] sm:$0xff] }
 0x21d   : >> { %2044 = vst [vmem:[%s3270_s15 + $0x70] sm:$0xff] %v2043_v61  ;;  %v2049_v54 = vld [vmem:[%s3274_s21 + $0x88] sm:$0xff]  ;;  %2046 = vst [vmem:[%s3270_s15 + $0x78] sm:$0xff] %v2045_v1  ;;  %v2051_v13 = vld [vmem:[%s3274_s21 + $0x90] sm:$0xff] }
 0x21e   : >> { %2048 = vst [vmem:[%s3270_s15 + $0x80] sm:$0xff] %v2047_v0  ;;  %2050 = vst [vmem:[%s3270_s15 + $0x88] sm:$0xff] %v2049_v54  ;;  %v2053_v14 = vld [vmem:[%s3274_s21 + $0x98] sm:$0xff]  ;;  %v2055_v56 = vld [vmem:[%s3274_s21 + $0xa0] sm:$0xff]  ;;  %2011 = sbr.rel (!%p2008_p8) target bundleno = 533 (0x215), region = 212 }
 0x21f   : >> { %2052 = vst [vmem:[%s3270_s15 + $0x90] sm:$0xff] %v2051_v13  ;;  %2054 = vst [vmem:[%s3270_s15 + $0x98] sm:$0xff] %v2053_v14  ;;  %v2057_v59 = vld [vmem:[%s3274_s21 + $0xa8] sm:$0xff]  ;;  %v2059_v25 = vld [vmem:[%s3274_s21 + $0xb0] sm:$0xff] }
 0x220   : >> { %2056 = vst [vmem:[%s3270_s15 + $0xa0] sm:$0xff] %v2055_v56  ;;  %v2061_v27 = vld [vmem:[%s3274_s21 + $0xb8] sm:$0xff]  ;;  %2058 = vst [vmem:[%s3270_s15 + $0xa8] sm:$0xff] %v2057_v59  ;;  %v2063_v35 = vld [vmem:[%s3274_s21 + $0xc0] sm:$0xff]  ;;  %s4578_s21 = smov %s2070_s27 }
 0x221   : >> { %2060 = vst [vmem:[%s3270_s15 + $0xb0] sm:$0xff] %v2059_v25  ;;  %2062 = vst [vmem:[%s3270_s15 + $0xb8] sm:$0xff] %v2061_v27 }
 0x222   : >> { %2064 = vst [vmem:[%s3270_s15 + $0xc0] sm:$0xff] %v2063_v35  ;;  %s4577_s15 = smov %s2071_s29 }
 0x223 PF: > { %3146 = sdivrem.u32 %s4590_s9, 25 }
 0x224   : > { %s2455_s24 = smul.u32 200, %s4436_s20 }
 0x226   : > { %s2076_s28 = scalar_lea.vmem %s4278_s12, %s2455_s24 [#allocation3]   ;;  %s2078_s30 = scalar_lea.vmem %s4430_s17, %s2455_s24  }
 0x22c   : > { %s3147_s4 = spop.drf %3146 }
 0x22d   : > { %p2457_p9 = scmp.le.s32.totalorder %s3147_s4, 0 }
 0x22e   : > { %s3284_s5 = smov (!%p2457_p9), %s2078_s30   ;;  %s3288_s6 = smov (!%p2457_p9), %s2076_s28  }
 0x22f   : > { %2223 = sbr.rel (%p2457_p9) target bundleno = 572 (0x23c), region = 217  ;;  %s3292_s14 = smov (!%p2457_p9), 0  }
 0x230   : > { %s3296_s7 = smov (!%p2457_p9), 0  }
 0x234 LB: >> { %v2088_v5 = vld [vmem:[%s3290_s6] sm:$0xff]  ;;  %s2090_s8 = sadd.s32 1, %s3294_s14  ;;  %s2082_s7 = sadd.s32 1, %s3298_s7   ;;  %s3298_s7 = sphi %s3296_s7, %s2082_s7   ;;  %s3294_s14 = sphi %s3292_s14, %s3293_s14   ;;  %s3290_s6 = sphi %s3288_s6, %s2095_s6   ;;  %s3286_s5 = sphi %s3284_s5, %s2096_s5  }
 0x235   : >> { %2089 = vst [vmem:[%s3286_s5] sm:$0xff] %v2088_v5  ;;  %p2091_p10 = scmp.ge.s32.totalorder %s2090_s8, %s3147_s4  ;;  %p2081_p11 = scmp.ge.s32.totalorder %s2082_s7, %s3147_s4 }
 0x237   : >> { %s4594_s8 = smov (%p2091_p10, %s2090_s8), 0  ;;  %2084 = sbr.rel (!%p2081_p11) target bundleno = 564 (0x234), region = 223 }
 0x238   : >> { %s2458_s12 = sshll.u32 %s4594_s8, 3  ;;  %s3293_s14 = smov %s4594_s8  }
 0x239   : >> { %s2095_s6 = scalar_lea.vmem %s2076_s28, %s2458_s12 [#allocation3]   ;;  %s2096_s5 = scalar_lea.vmem %s2078_s30, %s2458_s12  }
 0x23c PF: > { %p10_p12 = scmp.ge.s32.totalorder %s3341_s16, 4   ;;  %s4580_s12 = smov %s3230_s13 }
 0x23d   : > { %s4581_s13 = smov %s3351_s19  ;;  %s4582_s14 = smov %s3341_s16 }
 0x23e   :  { %12 = sbr.rel (!%p10_p12) target bundleno = 2 (0x2), region = 234 }

// kernel: convnet_forward.4
= control target key start
LH: loop header
LB: loop body
LE: loop exit
PB: predicated region body
PF: predicated region fallthrough
CT: control target
= control target key end

     0   :  { %s1482_s12 = smov 0   ;;  %s1484_s13 = smov 0   ;;  %s2053_s0 = inlined_call_operand.vmem [shape: f32[4,50,150], index: 0, kind: input, shape index: {}]   ;;  %s2054_s1 = inlined_call_operand.vmem [shape: f32[150,16], index: 1, kind: input, shape index: {}]   ;;  %s2055_s2 = inlined_call_operand.vmem [shape: f32[1,16], index: 2, kind: input, shape index: {}]   ;;  %s2056_s3 = inlined_call_operand.vmem [shape: f32[50,16], index: 3, kind: output, shape index: {}]  }
   0x1   :  { %s1486_s14 = smov 0  }
   0x2 LB: > { %s1498_s15 = sadd.s32 4294967295, %s1395_s14   ;;  %s1501_s16 = sadd.s32 1, %s1395_s14   ;;  %s1395_s14 = sphi %s1486_s14, %s2071_s14   ;;  %s1391_s13 = sphi %s1484_s13, %s2070_s13   ;;  %s1387_s12 = sphi %s1482_s12, %s2069_s12  }
   0x3   : > { %s17_s17 = ssub.s32 %s1395_s14, %s1501_s16  ;;  %s20_s18 = sadd.s32 1, %s1391_s13 }
   0x4   : > { %p18_p0 = scmp.eq.s32.totalorder %s17_s17, 0  ;;  %p27_p1 = scmp.ne.s32.totalorder %s1391_s13, %s1387_s12 }
   0x5   : > { %p28_p2 = scmp.eq.s32.totalorder %s1395_s14, 0  ;;  %p99_p3 = scmp.eq.s32.totalorder %s1498_s15, 1 }
   0x6   : > { %s1511_s19 = scalar_select %p18_p0, %s1391_s13, %s20_s18  }
   0x7   : > { %p29_p4 = por %p28_p2, %p27_p1  ;;  %p1513_p5 = por %p99_p3, %p27_p1 }
   0x8   : > { %p1065_p6 = scmp.ge.s32.totalorder %s1395_s14, 2 }
   0xa   : > { %127 = sbr.rel (%p1065_p6) target bundleno = 68 (0x44), region = 24 }
   0xf   : > { %130 = sbr.rel (!%p29_p4) target bundleno = 68 (0x44), region = 28  ;;  %s132_s21 = sand.u32 (%p29_p4), 1, %s1391_s13  }
  0x10   : > { %s1067_s22 = sshll.u32 (%p29_p4), %s1395_s14, 2  ;;  %s1066_s23 = sshll.u32 (%p29_p4), %s132_s21, 8 }
  0x11   : > { %s136_s24 = ssub.s32 (%p29_p4), 7, %s1067_s22  ;;  %s1150_s25 = sshll.u32 (%p29_p4), %s1395_s14, 6 }
  0x12   : > { %p137_p7 = scmp.lt.s32.totalorder (%p29_p4), %s136_s24, 4  ;;  %s1526_s28 = scalar_lea.vmem (%p29_p4), %s2053_s0, %s1150_s25  }
  0x13   : > { %s1529_s30 = scalar_lea.vmem (%p29_p4), [#allocation2], %s1066_s23  }
  0x14   : > { %s2073_s24 = smov (!%p137_p7, %s136_s24), 4 }
  0x15   : > { %s1148_s29 = sshll.u32 %s2073_s24, 10 }
  0x16   : > { %p1073_p8 = scmp.eq.s32.totalorder %s1148_s29, 0 }
  0x17   : > { %s1532_s4 = sshrl.u32 (!%p1073_p8), %s2073_s24, 2 }
  0x18   : > { %147 = sbr.rel (%p1073_p8) target bundleno = 68 (0x44), region = 32  ;;  %p1074_p9 = scmp.le.s32.totalorder (!%p1073_p8), %s1532_s4, 0 }
  0x1d   : > { %991 = sbr.rel (%p1074_p9) target bundleno = 51 (0x33), region = 156  ;;  %s2058_s5 = smov (!%p1074_p9), %s1529_s30 }
  0x1e   : > { %s2059_s6 = smov (!%p1074_p9), %s1526_s28  ;;  %s1541_s7 = smov (!%p1074_p9), 0  }
  0x1f   : > { %s1543_s8 = smov (!%p1074_p9), 0  }
  0x22 LB: >> { %v160_v0 = vld [vmem:[%s1403_s6] sm:$0xff]  ;;  %v162_v1 = vld [vmem:[%s1403_s6 + $0x10] sm:$0xff]  ;;  %s224_s9 = sadd.s32 1, %s1407_s7  ;;  %v168_v4 = vld [vmem:[%s1403_s6 + $0x8] sm:$0xff]  ;;  %s154_s8 = sadd.s32 1, %s1411_s8   ;;  %s1411_s8 = sphi %s1543_s8, %s154_s8   ;;  %s1407_s7 = sphi %s1541_s7, %s2062_s7   ;;  %s1403_s6 = sphi %s2059_s6, %s2061_s6   ;;  %s1399_s5 = sphi %s2058_s5, %s2060_s5  }
  0x23   : >> { %v164_v2 = vld [vmem:[%s1403_s6 + $0x20] sm:$0xff]  ;;  %161 = vst [vmem:[%s1399_s5] sm:$0xff] %v160_v0  ;;  %163 = vst [vmem:[%s1399_s5 + $0x10] sm:$0xff] %v162_v1  ;;  %v166_v3 = vld [vmem:[%s1403_s6 + $0x30] sm:$0xff]  ;;  %p225_p10 = scmp.ge.s32.totalorder %s224_s9, %s1532_s4  ;;  %p153_p11 = scmp.ge.s32.totalorder %s154_s8, %s1532_s4 }
  0x24   : >> { %165 = vst [vmem:[%s1399_s5 + $0x20] sm:$0xff] %v164_v2  ;;  %v170_v5 = vld [vmem:[%s1403_s6 + $0x18] sm:$0xff]  ;;  %167 = vst [vmem:[%s1399_s5 + $0x30] sm:$0xff] %v166_v3  ;;  %v172_v6 = vld [vmem:[%s1403_s6 + $0x28] sm:$0xff] }
  0x25   : >> { %169 = vst [vmem:[%s1399_s5 + $0x8] sm:$0xff] %v168_v4  ;;  %171 = vst [vmem:[%s1399_s5 + $0x18] sm:$0xff] %v170_v5  ;;  %v174_v7 = vld [vmem:[%s1403_s6 + $0x38] sm:$0xff]  ;;  %v176_v8 = vld [vmem:[%s1403_s6 + $0x70] sm:$0xff]  ;;  %s2075_s9 = smov (%p225_p10, %s224_s9), 0 }
  0x26   : >> { %173 = vst [vmem:[%s1399_s5 + $0x28] sm:$0xff] %v172_v6  ;;  %175 = vst [vmem:[%s1399_s5 + $0x38] sm:$0xff] %v174_v7  ;;  %v178_v9 = vld [vmem:[%s1403_s6 + $0x80] sm:$0xff]  ;;  %v180_v10 = vld [vmem:[%s1403_s6 + $0x90] sm:$0xff]  ;;  %s1075_s10 = sshll.u32 %s2075_s9, 6  ;;  %s2062_s7 = smov %s2075_s9 }
  0x27   : >> { %177 = vst [vmem:[%s1399_s5 + $0x40] sm:$0xff] %v176_v8  ;;  %v182_v11 = vld [vmem:[%s1403_s6 + $0xa0] sm:$0xff]  ;;  %179 = vst [vmem:[%s1399_s5 + $0x50] sm:$0xff] %v178_v9  ;;  %v184_v12 = vld [vmem:[%s1403_s6 + $0x78] sm:$0xff]  ;;  %s1599_s11 = scalar_lea.vmem %s1526_s28, %s1075_s10   ;;  %s230_s17 = scalar_lea.vmem %s1529_s30, %s1075_s10 [#allocation2]  }
  0x28   : >> { %181 = vst [vmem:[%s1399_s5 + $0x60] sm:$0xff] %v180_v10  ;;  %183 = vst [vmem:[%s1399_s5 + $0x70] sm:$0xff] %v182_v11  ;;  %v186_v13 = vld [vmem:[%s1403_s6 + $0x88] sm:$0xff]  ;;  %v188_v14 = vld [vmem:[%s1403_s6 + $0x98] sm:$0xff] }
  0x29   : >> { %185 = vst [vmem:[%s1399_s5 + $0x48] sm:$0xff] %v184_v12  ;;  %187 = vst [vmem:[%s1399_s5 + $0x58] sm:$0xff] %v186_v13  ;;  %v190_v15 = vld [vmem:[%s1403_s6 + $0xa8] sm:$0xff]  ;;  %v192_v16 = vld [vmem:[%s1403_s6 + $0xe0] sm:$0xff] }
  0x2a   : >> { %189 = vst [vmem:[%s1399_s5 + $0x68] sm:$0xff] %v188_v14  ;;  %v194_v17 = vld [vmem:[%s1403_s6 + $0xf0] sm:$0xff]  ;;  %191 = vst [vmem:[%s1399_s5 + $0x78] sm:$0xff] %v190_v15  ;;  %v196_v18 = vld [vmem:[%s1403_s6 + $0x100] sm:$0xff] }
  0x2b   : >> { %193 = vst [vmem:[%s1399_s5 + $0x80] sm:$0xff] %v192_v16  ;;  %195 = vst [vmem:[%s1399_s5 + $0x90] sm:$0xff] %v194_v17  ;;  %v198_v19 = vld [vmem:[%s1403_s6 + $0x110] sm:$0xff]  ;;  %v200_v20 = vld [vmem:[%s1403_s6 + $0xe8] sm:$0xff] }
  0x2c   : >> { %197 = vst [vmem:[%s1399_s5 + $0xa0] sm:$0xff] %v196_v18  ;;  %199 = vst [vmem:[%s1399_s5 + $0xb0] sm:$0xff] %v198_v19  ;;  %v202_v21 = vld [vmem:[%s1403_s6 + $0xf8] sm:$0xff]  ;;  %v204_v22 = vld [vmem:[%s1403_s6 + $0x108] sm:$0xff] }
  0x2d   : >> { %201 = vst [vmem:[%s1399_s5 + $0x88] sm:$0xff] %v200_v20  ;;  %v206_v23 = vld [vmem:[%s1403_s6 + $0x118] sm:$0xff]  ;;  %203 = vst [vmem:[%s1399_s5 + $0x98] sm:$0xff] %v202_v21  ;;  %v208_v24 = vld [vmem:[%s1403_s6 + $0x150] sm:$0xff] }
  0x2e   : >> { %205 = vst [vmem:[%s1399_s5 + $0xa8] sm:$0xff] %v204_v22  ;;  %207 = vst [vmem:[%s1399_s5 + $0xb8] sm:$0xff] %v206_v23  ;;  %v210_v25 = vld [vmem:[%s1403_s6 + $0x160] sm:$0xff]  ;;  %v212_v26 = vld [vmem:[%s1403_s6 + $0x170] sm:$0xff]  ;;  %156 = sbr.rel (!%p153_p11) target bundleno = 34 (0x22), region = 162 }
  0x2f   : >> { %209 = vst [vmem:[%s1399_s5 + $0xc0] sm:$0xff] %v208_v24  ;;  %211 = vst [vmem:[%s1399_s5 + $0xd0] sm:$0xff] %v210_v25  ;;  %v214_v27 = vld [vmem:[%s1403_s6 + $0x180] sm:$0xff]  ;;  %v216_v28 = vld [vmem:[%s1403_s6 + $0x158] sm:$0xff] }
  0x30   : >> { %213 = vst [vmem:[%s1399_s5 + $0xe0] sm:$0xff] %v212_v26  ;;  %v218_v29 = vld [vmem:[%s1403_s6 + $0x168] sm:$0xff]  ;;  %215 = vst [vmem:[%s1399_s5 + $0xf0] sm:$0xff] %v214_v27  ;;  %v220_v30 = vld [vmem:[%s1403_s6 + $0x178] sm:$0xff] }
  0x31   : >> { %217 = vst [vmem:[%s1399_s5 + $0xc8] sm:$0xff] %v216_v28  ;;  %219 = vst [vmem:[%s1399_s5 + $0xd8] sm:$0xff] %v218_v29  ;;  %v222_v31 = vld [vmem:[%s1403_s6 + $0x188] sm:$0xff]  ;;  %s2061_s6 = smov %s1599_s11 }
  0x32   : >> { %221 = vst [vmem:[%s1399_s5 + $0xe8] sm:$0xff] %v220_v30  ;;  %223 = vst [vmem:[%s1399_s5 + $0xf8] sm:$0xff] %v222_v31  ;;  %s2060_s5 = smov %s230_s17 }
  0x33 PF: > { %s1640_s18 = sand.u32 3, %s2073_s24   ;;  %s1151_s21 = sshll.u32 %s1532_s4, 6 }
  0x34   : > { %s1644_s22 = scalar_lea.vmem %s1526_s28, %s1151_s21   ;;  %s1647_s23 = scalar_lea.vmem %s1529_s30, %s1151_s21 [#allocation2]  }
  0x35   : > { %p1080_p12 = scmp.le.s32.totalorder %s1640_s18, 0 }
  0x36   : > { %s2063_s25 = smov (!%p1080_p12), %s1647_s23  ;;  %s2064_s26 = smov (!%p1080_p12), %s1644_s22 }
  0x37   : > { %1005 = sbr.rel (%p1080_p12) target bundleno = 68 (0x44), region = 167  ;;  %s1656_s27 = smov (!%p1080_p12), 0  }
  0x38   : > { %s1658_s29 = smov (!%p1080_p12), 0  }
  0x3c LB: >> { %v247_v32 = vld [vmem:[%s1419_s26] sm:$0xff]  ;;  %v249_v33 = vld [vmem:[%s1419_s26 + $0x8] sm:$0xff]  ;;  %v251_v34 = vld [vmem:[%s1419_s26 + $0x70] sm:$0xff]  ;;  %s263_s24 = sadd.s32 1, %s1423_s27  ;;  %s241_s29 = sadd.s32 1, %s1427_s29   ;;  %s1427_s29 = sphi %s1658_s29, %s241_s29   ;;  %s1423_s27 = sphi %s1656_s27, %s2065_s27   ;;  %s1419_s26 = sphi %s2064_s26, %s268_s26   ;;  %s1415_s25 = sphi %s2063_s25, %s269_s25  }
  0x3d   : >> { %248 = vst [vmem:[%s1415_s25] sm:$0xff] %v247_v32  ;;  %250 = vst [vmem:[%s1415_s25 + $0x8] sm:$0xff] %v249_v33  ;;  %v253_v35 = vld [vmem:[%s1419_s26 + $0x78] sm:$0xff]  ;;  %v255_v36 = vld [vmem:[%s1419_s26 + $0xe0] sm:$0xff]  ;;  %p264_p13 = scmp.ge.s32.totalorder %s263_s24, %s1640_s18  ;;  %p240_p0 = scmp.ge.s32.totalorder %s241_s29, %s1640_s18 }
  0x3e   : >> { %252 = vst [vmem:[%s1415_s25 + $0x40] sm:$0xff] %v251_v34  ;;  %v257_v37 = vld [vmem:[%s1419_s26 + $0xe8] sm:$0xff]  ;;  %254 = vst [vmem:[%s1415_s25 + $0x48] sm:$0xff] %v253_v35  ;;  %v259_v38 = vld [vmem:[%s1419_s26 + $0x150] sm:$0xff] }
  0x3f   : >> { %256 = vst [vmem:[%s1415_s25 + $0x80] sm:$0xff] %v255_v36  ;;  %258 = vst [vmem:[%s1415_s25 + $0x88] sm:$0xff] %v257_v37  ;;  %v261_v39 = vld [vmem:[%s1419_s26 + $0x158] sm:$0xff]  ;;  %s2077_s24 = smov (%p264_p13, %s263_s24), 0  ;;  %243 = sbr.rel (!%p240_p0) target bundleno = 60 (0x3c), region = 173 }
  0x40   : >> { %260 = vst [vmem:[%s1415_s25 + $0xc0] sm:$0xff] %v259_v38  ;;  %262 = vst [vmem:[%s1415_s25 + $0xc8] sm:$0xff] %v261_v39  ;;  %s1081_s28 = sshll.u32 %s2077_s24, 4  ;;  %s2065_s27 = smov %s2077_s24 }
  0x41   : >> { %s268_s26 = scalar_lea.vmem %s1644_s22, %s1081_s28   ;;  %s269_s25 = scalar_lea.vmem %s1647_s23, %s1081_s28 [#allocation2]  }
  0x44 PF: > { %p1083_p1 = scmp.ge.s32.totalorder %s1395_s14, 1  ;;  %p274_p2 = scmp.lt.s32.totalorder %s1395_s14, 3 }
  0x46   : > { %p275_p3 = pnand %p1083_p1, %p274_p2 }
  0x47   : > { %s281_s9 = sand.u32 (!%p275_p3), 1, %s1387_s12  }
  0x48   : > { %278 = sbr.rel (%p275_p3) target bundleno = 416 (0x1a0), region = 58  ;;  %s1084_s21 = sshll.u32 (!%p275_p3), %s281_s9, 8 }
  0x49   : > { %s1848_s24 = scalar_lea.vmem (!%p275_p3), [#allocation2], %s1084_s21  ;;  %s1085_s4 = sshll.u32 (!%p275_p3), %s281_s9, 5 }
  0x4a   : > { %s1987_s5 = scalar_lea.vmem (!%p275_p3), [#allocation3], %s1085_s4  }
  0x4d   : > { %v1681_v40 = vld [vmem:[%s2054_s1 + $0x78] sm:$0xff]  ;;  %v1461_v41 = vmov 0.0   ;;  %v1688_v42 = vld [vmem:[%s2054_s1 + $0x70] sm:$0xff]  ;;  %v1697_v43 = vld [vmem:[%s2054_s1 + $0x68] sm:$0xff]  ;;  %vm354_vm0 = vcmask 1045504   ;;  %vm341_vm1 = vcmask 179200  }
  0x4e   : > { %358 = vmatprep.subr.mxu0 %v1461_v41  ;;  %464 = vmatprep.subr.mxu1 %v1461_v41  ;;  %v1706_v44 = vld [vmem:[%s2054_s1 + $0x60] sm:$0xff]  ;;  %v1715_v45 = vld [vmem:[%s2054_s1 + $0x58] sm:$0xff]  ;;  %v1724_v46 = vld [vmem:[%s2054_s1 + $0x50] sm:$0xff]  ;;  %vm788_vm2 = vcmask 130048   ;;  %s1132_s12 = sshll.u32 (%p1513_p5), %s1498_s15, 2  ;;  %s1153_s6 = sshll.u32 (%p1513_p5), %s1498_s15, 5 }
  0x4f   : > { %359 = vmatpush1.msra.mxu0 %v1681_v40  ;;  %465 = vmatpush1.msra.mxu1 %v1681_v40  ;;  %v1733_v47 = vld [vmem:[%s2054_s1 + $0x48] sm:$0xff]  ;;  %v1742_v48 = vld [vmem:[%s2054_s1 + $0x40] sm:$0xff]  ;;  %v1751_v49 = vld [vmem:[%s2054_s1 + $0x38] sm:$0xff]  ;;  %s801_s14 = ssub.s32 (%p1513_p5), 7, %s1132_s12  ;;  %s2004_s9 = scalar_lea.vmem (%p1513_p5), %s2056_s3, %s1153_s6  }
  0x50   : > { %360 = vmatprep.subr.mxu0 %v1461_v41  ;;  %466 = vmatprep.subr.mxu1 %v1461_v41  ;;  %v1760_v50 = vld [vmem:[%s2054_s1 + $0x30] sm:$0xff]  ;;  %v1769_v51 = vld [vmem:[%s2054_s1 + $0x28] sm:$0xff]  ;;  %v1778_v52 = vld [vmem:[%s2054_s1 + $0x20] sm:$0xff]  ;;  %p802_p4 = scmp.lt.s32.totalorder (%p1513_p5), %s801_s14, 4 }
  0x51   : > { %361 = vmatpush1.msra.mxu0 %v1688_v42  ;;  %467 = vmatpush1.msra.mxu1 %v1688_v42  ;;  %v1787_v53 = vld [vmem:[%s2054_s1 + $0x18] sm:$0xff]  ;;  %v1796_v54 = vld [vmem:[%s2054_s1 + $0x10] sm:$0xff]  ;;  %v1806_v55 = vld [vmem:[%s2054_s1 + $0x8] sm:$0xff] }
  0x52   : > { %362 = vmatprep.subr.mxu0 %v1461_v41  ;;  %468 = vmatprep.subr.mxu1 %v1461_v41  ;;  %v1815_v56 = vld [vmem:[%s2054_s1] sm:$0xff]  ;;  %v1826_v57 = vld [vmem:[%s2054_s1 + $0x90] sm:$0x3f]  ;;  %v1835_v58 = vld [vmem:[%s2054_s1 + $0x88] sm:$0xff] }
  0x53   : > { %363 = vmatpush1.msra.mxu0 %v1697_v43  ;;  %469 = vmatpush1.msra.mxu1 %v1697_v43  ;;  %v1846_v59 = vld [vmem:[%s2054_s1 + $0x80] sm:$0xff]  ;;  %v334_v60 = vld [vmem:[%s1848_s24 + $0x8] sm:$0xff]  ;;  %v336_v0 = vld [vmem:[%s1848_s24 + $0x18] sm:$0xff] }
  0x54   : > { %364 = vmatprep.subr.mxu0 %v1461_v41  ;;  %470 = vmatprep.subr.mxu1 %v1461_v41  ;;  %v333_v61 = vld [vmem:[%s1848_s24] sm:$0xff]  ;;  %v1092_v62 = vld [vmem:[%s1848_s24 + $0x48] sm:$0xff]  ;;  %v335_v1 = vld [vmem:[%s1848_s24 + $0x10] sm:$0xff] }
  0x55   : > { %365 = vmatpush1.msra.mxu0 %v1706_v44  ;;  %471 = vmatpush1.msra.mxu1 %v1706_v44  ;;  %v1091_v63 = vld [vmem:[%s1848_s24 + $0x40] sm:$0xff]  ;;  %v1094_v2 = vld [vmem:[%s1848_s24 + $0x58] sm:$0xff]  ;;  %v1093_v3 = vld [vmem:[%s1848_s24 + $0x50] sm:$0xff] }
  0x56   : > { %366 = vmatprep.subr.mxu0 %v1461_v41  ;;  %472 = vmatprep.subr.mxu1 %v1461_v41  ;;  %v338_v4 = vld [vmem:[%s1848_s24 + $0x28] sm:$0xff]  ;;  %v337_v5 = vld [vmem:[%s1848_s24 + $0x20] sm:$0xff]  ;;  %v340_v8 = vld [vmem:[%s1848_s24 + $0x38] sm:$0xff] }
  0x57   : > { %367 = vmatpush1.msra.mxu0 %v1715_v45  ;;  %473 = vmatpush1.msra.mxu1 %v1715_v45  ;;  %v1096_v6 = vld [vmem:[%s1848_s24 + $0x68] sm:$0xff]  ;;  %v1095_v7 = vld [vmem:[%s1848_s24 + $0x60] sm:$0xff]  ;;  %v339_v9 = vld [vmem:[%s1848_s24 + $0x30] sm:$0xff] }
  0x58   : > { %368 = vmatprep.subr.mxu0 %v1461_v41  ;;  %474 = vmatprep.subr.mxu1 %v1461_v41  ;;  %v1098_v10 = vld [vmem:[%s1848_s24 + $0x78] sm:$0xff]  ;;  %v1097_v11 = vld [vmem:[%s1848_s24 + $0x70] sm:$0xff]  ;;  %v1105_v12 = vld [vmem:[%s1848_s24 + $0x88] sm:$0xff] }
  0x59   : > { %369 = vmatpush1.msra.mxu0 %v1724_v46  ;;  %475 = vmatpush1.msra.mxu1 %v1724_v46  ;;  %v1118_v13 = vld [vmem:[%s1848_s24 + $0xc8] sm:$0xff]  ;;  %v1104_v14 = vld [vmem:[%s1848_s24 + $0x80] sm:$0xff]  ;;  %v1107_v16 = vld [vmem:[%s1848_s24 + $0x98] sm:$0xff] }
  0x5a   : > { %370 = vmatprep.subr.mxu0 %v1461_v41  ;;  %476 = vmatprep.subr.mxu1 %v1461_v41  ;;  %v1117_v15 = vld [vmem:[%s1848_s24 + $0xc0] sm:$0xff]  ;;  %v1120_v17 = vld [vmem:[%s1848_s24 + $0xd8] sm:$0xff]  ;;  %v1106_v18 = vld [vmem:[%s1848_s24 + $0x90] sm:$0xff] }
  0x5b   : > { %371 = vmatpush1.msra.mxu0 %v1733_v47  ;;  %477 = vmatpush1.msra.mxu1 %v1733_v47  ;;  %v1119_v19 = vld [vmem:[%s1848_s24 + $0xd0] sm:$0xff]  ;;  %v1109_v20 = vld [vmem:[%s1848_s24 + $0xa8] sm:$0xff]  ;;  %v1108_v22 = vld [vmem:[%s1848_s24 + $0xa0] sm:$0xff] }
  0x5c   : > { %372 = vmatprep.subr.mxu0 %v1461_v41  ;;  %478 = vmatprep.subr.mxu1 %v1461_v41  ;;  %v1122_v21 = vld [vmem:[%s1848_s24 + $0xe8] sm:$0xff]  ;;  %v1121_v23 = vld [vmem:[%s1848_s24 + $0xe0] sm:$0xff]  ;;  %v1111_v24 = vld [vmem:[%s1848_s24 + $0xb8] sm:$0xff] }
  0x5d   : > { %373 = vmatpush1.msra.mxu0 %v1742_v48  ;;  %479 = vmatpush1.msra.mxu1 %v1742_v48  ;;  %v1124_v25 = vld [vmem:[%s1848_s24 + $0xf8] sm:$0xff]  ;;  %v1110_v26 = vld [vmem:[%s1848_s24 + $0xb0] sm:$0xff] }
  0x5e   : > { %374 = vmatprep.subr.mxu0 %v1461_v41  ;;  %480 = vmatprep.subr.mxu1 %v1461_v41  ;;  %v1123_v27 = vld [vmem:[%s1848_s24 + $0xf0] sm:$0xff] }
  0x5f   : > { %375 = vmatpush1.msra.mxu0 %v1751_v49  ;;  %481 = vmatpush1.msra.mxu1 %v1751_v49 }
  0x60   : > { %376 = vmatprep.subr.mxu0 %v1461_v41  ;;  %482 = vmatprep.subr.mxu1 %v1461_v41 }
  0x61   : > { %377 = vmatpush1.msra.mxu0 %v1760_v50  ;;  %483 = vmatpush1.msra.mxu1 %v1760_v50 }
  0x62   : > { %378 = vmatprep.subr.mxu0 %v1461_v41  ;;  %484 = vmatprep.subr.mxu1 %v1461_v41 }
  0x63   : > { %379 = vmatpush1.msra.mxu0 %v1769_v51  ;;  %485 = vmatpush1.msra.mxu1 %v1769_v51 }
  0x64   : > { %380 = vmatprep.subr.mxu0 %v1461_v41  ;;  %486 = vmatprep.subr.mxu1 %v1461_v41 }
  0x65   : > { %381 = vmatpush1.msra.mxu0 %v1778_v52  ;;  %487 = vmatpush1.msra.mxu1 %v1778_v52 }
  0x66   : > { %382 = vmatprep.subr.mxu0 %v1461_v41  ;;  %488 = vmatprep.subr.mxu1 %v1461_v41 }
  0x67   : > { %383 = vmatpush1.msra.mxu0 %v1787_v53  ;;  %489 = vmatpush1.msra.mxu1 %v1787_v53 }
  0x68   : > { %384 = vmatprep.subr.mxu0 %v1461_v41  ;;  %490 = vmatprep.subr.mxu1 %v1461_v41 }
  0x69   : > { %385 = vmatpush1.msra.mxu0 %v1796_v54  ;;  %491 = vmatpush1.msra.mxu1 %v1796_v54 }
  0x6a   : > { %386 = vmatprep.subr.mxu0 %v1461_v41  ;;  %492 = vmatprep.subr.mxu1 %v1461_v41 }
  0x6b   : > { %387 = vmatpush1.msra.mxu0 %v1806_v55  ;;  %493 = vmatpush1.msra.mxu1 %v1806_v55 }
  0x6c   : > { %388 = vmatprep.subr.mxu0 %v1461_v41  ;;  %494 = vmatprep.subr.mxu1 %v1461_v41 }
  0x6d   : > { %389 = vmatpush1.msra.mxu0 %v1815_v56  ;;  %495 = vmatpush1.msra.mxu1 %v1815_v56 }
  0x6e   : > { %416 = vmatprep.subr.mxu0 %v1461_v41  ;;  %522 = vmatprep.subr.mxu1 %v1461_v41 }
  0x6f   : > { %1086 = vmatpush2.msk.msra.mxu0 %vm354_vm0, %v1826_v57  ;;  %1099 = vmatpush2.msk.msra.mxu1 %vm354_vm0, %v1826_v57 }
  0x70   : > { %418 = vmatprep.subr.mxu0 %v1461_v41  ;;  %524 = vmatprep.subr.mxu1 %v1461_v41 }
  0x71   : > { %419 = vmatpush2.msra.mxu0 %v1835_v58  ;;  %525 = vmatpush2.msra.mxu1 %v1835_v58 }
  0x72   : > { %420 = vmatprep.subr.mxu0 %v1461_v41  ;;  %526 = vmatprep.subr.mxu1 %v1461_v41 }
  0x73   : > { %421 = vmatpush2.msra.mxu0 %v1846_v59  ;;  %1087 = vmatprep.mubr.msk.f32.mxu0 %vm341_vm1, %v334_v60 }
  0x74   : > { %527 = vmatpush2.msra.mxu1 %v1846_v59  ;;  %423 = vmatmul.mubr.f32.vlgmr.msra.gmra.mxu0 %v333_v61 }
  0x75   : > { %1100 = vmatprep.mubr.msk.f32.mxu1 %vm341_vm1, %v1092_v62  ;;  %574 = vmatprep.subr.mxu0 %v1461_v41 }
  0x76   : > { %684 = vmatprep.subr.mxu1 %v1461_v41  ;;  %529 = vmatmul.mubr.f32.vlgmr.msra.gmra.mxu1 %v1091_v63 }
  0x77   : > { %575 = vmatpush1.msra.mxu0 %v1681_v40  ;;  %685 = vmatpush1.msra.mxu1 %v1681_v40 }
  0x78   : > { %576 = vmatprep.subr.mxu0 %v1461_v41  ;;  %686 = vmatprep.subr.mxu1 %v1461_v41 }
  0x79   : > { %577 = vmatpush1.msra.mxu0 %v1688_v42  ;;  %687 = vmatpush1.msra.mxu1 %v1688_v42 }
  0x7a   : > { %578 = vmatprep.subr.mxu0 %v1461_v41  ;;  %688 = vmatprep.subr.mxu1 %v1461_v41 }
  0x7b   : > { %579 = vmatpush1.msra.mxu0 %v1697_v43  ;;  %689 = vmatpush1.msra.mxu1 %v1697_v43 }
  0x7c   : > { %580 = vmatprep.subr.mxu0 %v1461_v41  ;;  %690 = vmatprep.subr.mxu1 %v1461_v41 }
  0x7d   : > { %581 = vmatpush1.msra.mxu0 %v1706_v44  ;;  %691 = vmatpush1.msra.mxu1 %v1706_v44 }
  0x7e   : > { %582 = vmatprep.subr.mxu0 %v1461_v41  ;;  %692 = vmatprep.subr.mxu1 %v1461_v41 }
  0x7f   : > { %583 = vmatpush1.msra.mxu0 %v1715_v45  ;;  %693 = vmatpush1.msra.mxu1 %v1715_v45 }
  0x80   : > { %584 = vmatprep.subr.mxu0 %v1461_v41  ;;  %694 = vmatprep.subr.mxu1 %v1461_v41 }
  0x81   : > { %585 = vmatpush1.msra.mxu0 %v1724_v46  ;;  %695 = vmatpush1.msra.mxu1 %v1724_v46 }
  0x82   : > { %586 = vmatprep.subr.mxu0 %v1461_v41  ;;  %696 = vmatprep.subr.mxu1 %v1461_v41 }
  0x83   : > { %587 = vmatpush1.msra.mxu0 %v1733_v47  ;;  %697 = vmatpush1.msra.mxu1 %v1733_v47 }
  0x84   : > { %588 = vmatprep.subr.mxu0 %v1461_v41  ;;  %698 = vmatprep.subr.mxu1 %v1461_v41 }
  0x85   : > { %589 = vmatpush1.msra.mxu0 %v1742_v48  ;;  %699 = vmatpush1.msra.mxu1 %v1742_v48  ;;  %v1130_v48 = vld [vmem:[%s2055_s2] ss:$0 sm:$0xff] }
  0x86   : > { %590 = vmatprep.subr.mxu0 %v1461_v41  ;;  %700 = vmatprep.subr.mxu1 %v1461_v41 }
  0x87   : > { %591 = vmatpush1.msra.mxu0 %v1751_v49  ;;  %701 = vmatpush1.msra.mxu1 %v1751_v49 }
  0x88   : > { %592 = vmatprep.subr.mxu0 %v1461_v41  ;;  %702 = vmatprep.subr.mxu1 %v1461_v41 }
  0x89   : > { %593 = vmatpush1.msra.mxu0 %v1760_v50  ;;  %703 = vmatpush1.msra.mxu1 %v1760_v50 }
  0x8a   : > { %594 = vmatprep.subr.mxu0 %v1461_v41  ;;  %704 = vmatprep.subr.mxu1 %v1461_v41 }
  0x8b   : > { %595 = vmatpush1.msra.mxu0 %v1769_v51  ;;  %705 = vmatpush1.msra.mxu1 %v1769_v51 }
  0x8c   : > { %596 = vmatprep.subr.mxu0 %v1461_v41  ;;  %706 = vmatprep.subr.mxu1 %v1461_v41 }
  0x8d   : > { %1088 = vmatprep.mubr.msk.f32.mxu0 %vm341_vm1, %v336_v0  ;;  %597 = vmatpush1.msra.mxu0 %v1778_v52 }
  0x8e   : > { %707 = vmatpush1.msra.mxu1 %v1778_v52  ;;  %428 = vmatmul.mubr.f32.gmra.mxu0 %v335_v1 }
  0x8f   : > { %598 = vmatprep.subr.mxu0 %v1461_v41  ;;  %708 = vmatprep.subr.mxu1 %v1461_v41 }
  0x90   : > { %1101 = vmatprep.mubr.msk.f32.mxu1 %vm341_vm1, %v1094_v2  ;;  %599 = vmatpush1.msra.mxu0 %v1787_v53 }
  0x91   : > { %709 = vmatpush1.msra.mxu1 %v1787_v53  ;;  %600 = vmatprep.subr.mxu0 %v1461_v41 }
  0x92   : > { %534 = vmatmul.mubr.f32.gmra.mxu1 %v1093_v3  ;;  %710 = vmatprep.subr.mxu1 %v1461_v41 }
  0x93   : > { %1089 = vmatprep.mubr.msk.f32.mxu0 %vm341_vm1, %v338_v4  ;;  %601 = vmatpush1.msra.mxu0 %v1796_v54 }
  0x94   : > { %711 = vmatpush1.msra.mxu1 %v1796_v54  ;;  %433 = vmatmul.mubr.f32.gmra.mxu0 %v337_v5 }
  0x95   : > { %602 = vmatprep.subr.mxu0 %v1461_v41  ;;  %712 = vmatprep.subr.mxu1 %v1461_v41 }
  0x96   : > { %1102 = vmatprep.mubr.msk.f32.mxu1 %vm341_vm1, %v1096_v6  ;;  %603 = vmatpush1.msra.mxu0 %v1806_v55 }
  0x97   : > { %713 = vmatpush1.msra.mxu1 %v1806_v55  ;;  %604 = vmatprep.subr.mxu0 %v1461_v41 }
  0x98   : > { %539 = vmatmul.mubr.f32.gmra.mxu1 %v1095_v7  ;;  %714 = vmatprep.subr.mxu1 %v1461_v41 }
  0x99   : > { %1090 = vmatprep.mubr.msk.f32.mxu0 %vm341_vm1, %v340_v8  ;;  %605 = vmatpush1.msra.mxu0 %v1815_v56 }
  0x9a   : > { %715 = vmatpush1.msra.mxu1 %v1815_v56  ;;  %438 = vmatmul.mubr.f32.gmra.mxu0 %v339_v9 }
  0x9b   : > { %632 = vmatprep.subr.mxu0 %v1461_v41  ;;  %742 = vmatprep.subr.mxu1 %v1461_v41 }
  0x9c   : > { %1103 = vmatprep.mubr.msk.f32.mxu1 %vm341_vm1, %v1098_v10  ;;  %1112 = vmatpush2.msk.msra.mxu0 %vm354_vm0, %v1826_v57 }
  0x9d   : > { %1125 = vmatpush2.msk.msra.mxu1 %vm354_vm0, %v1826_v57  ;;  %634 = vmatprep.subr.mxu0 %v1461_v41 }
  0x9e   : > { %544 = vmatmul.mubr.f32.gmra.mxu1 %v1097_v11  ;;  %744 = vmatprep.subr.mxu1 %v1461_v41 }
  0x9f   : > { %635 = vmatpush2.msra.mxu0 %v1835_v58  ;;  %745 = vmatpush2.msra.mxu1 %v1835_v58 }
  0xa0   : > { %636 = vmatprep.subr.mxu0 %v1461_v41  ;;  %746 = vmatprep.subr.mxu1 %v1461_v41 }
  0xa1   : > { %637 = vmatpush2.msra.mxu0 %v1846_v59  ;;  %1113 = vmatprep.mubr.msk.f32.mxu0 %vm341_vm1, %v1105_v12 }
  0xa2   : > { %747 = vmatpush2.msra.mxu1 %v1846_v59  ;;  %1126 = vmatprep.mubr.msk.f32.mxu1 %vm341_vm1, %v1118_v13 }
  0xa3   : > { %639 = vmatmul.mubr.f32.vlgmr.msra.gmra.mxu0 %v1104_v14  ;;  %749 = vmatmul.mubr.f32.vlgmr.msra.gmra.mxu1 %v1117_v15 }
  0xa4   : > { %1114 = vmatprep.mubr.msk.f32.mxu0 %vm341_vm1, %v1107_v16  ;;  %1127 = vmatprep.mubr.msk.f32.mxu1 %vm341_vm1, %v1120_v17 }
  0xa7   : > { %644 = vmatmul.mubr.f32.gmra.mxu0 %v1106_v18  ;;  %754 = vmatmul.mubr.f32.gmra.mxu1 %v1119_v19 }
  0xa8   : > { %1115 = vmatprep.mubr.msk.f32.mxu0 %vm341_vm1, %v1109_v20  ;;  %1128 = vmatprep.mubr.msk.f32.mxu1 %vm341_vm1, %v1122_v21 }
  0xab   : > { %649 = vmatmul.mubr.f32.gmra.mxu0 %v1108_v22  ;;  %759 = vmatmul.mubr.f32.gmra.mxu1 %v1121_v23 }
  0xac   : > { %1116 = vmatprep.mubr.msk.f32.mxu0 %vm341_vm1, %v1111_v24  ;;  %1129 = vmatprep.mubr.msk.f32.mxu1 %vm341_vm1, %v1124_v25 }
  0xaf   : > { %654 = vmatmul.mubr.f32.gmra.mxu0 %v1110_v26  ;;  %764 = vmatmul.mubr.f32.gmra.mxu1 %v1123_v27 }
 0x134   : > { %v424_v28 = vpop.f32.mrf.mxu0 }
 0x136   : > { %v530_v29 = vpop.f32.mrf.mxu1  ;;  %v426_v30 = vpop.f32.mrf.mxu0 }
 0x137   : > { %v549_v44 = vmax.f32 %v424_v28, %v530_v29 }
 0x138   : > { %v532_v31 = vpop.f32.mrf.mxu1 }
 0x14e   : > { %v429_v32 = vpop.f32.mrf.mxu0 }
 0x150   : > { %v431_v33 = vpop.f32.mrf.mxu0 }
 0x152   : > { %v535_v34 = vpop.f32.mrf.mxu1 }
 0x153   : > { %v550_v51 = vmax.f32 %v429_v32, %v535_v34 }
 0x154   : > { %v434_v35 = vpop.f32.mrf.mxu0  ;;  %v537_v36 = vpop.f32.mrf.mxu1 }
 0x156   : > { %v436_v37 = vpop.f32.mrf.mxu0 }
 0x158   : > { %v540_v38 = vpop.f32.mrf.mxu1 }
 0x159   : > { %v551_v59 = vmax.f32 %v434_v35, %v540_v38 }
 0x15a   : > { %v439_v39 = vpop.f32.mrf.mxu0  ;;  %v542_v40 = vpop.f32.mrf.mxu1 }
 0x15c   : > { %v441_v41 = vpop.f32.mrf.mxu0 }
 0x15e   : > { %v545_v42 = vpop.f32.mrf.mxu1 }
 0x15f   : > { %v552_v4 = vmax.f32 %v439_v39, %v545_v42 }
 0x160   : > { %v547_v43 = vpop.f32.mrf.mxu1 }
 0x163   : > { %v640_v45 = vpop.f32.mrf.mxu0  ;;  %v750_v46 = vpop.f32.mrf.mxu1 }
 0x164   : > { %v659_v47 = vmax.f32 %v549_v44, %v640_v45 }
 0x165   : > { %v642_v49 = vpop.f32.mrf.mxu0  ;;  %v752_v50 = vpop.f32.mrf.mxu1 }
 0x166   : > { %v769_v52 = vmax.f32 %v659_v47, %v750_v46 }
 0x167   : > { %v645_v53 = vpop.f32.mrf.mxu0  ;;  %v755_v54 = vpop.f32.mrf.mxu1 }
 0x168   : > { %v780_v55 = vadd.f32 %v1130_v48, %v769_v52  ;;  %v660_v56 = vmax.f32 %v550_v51, %v645_v53 }
 0x169   : > { %v647_v57 = vpop.f32.mrf.mxu0  ;;  %v757_v58 = vpop.f32.mrf.mxu1 }
 0x16a   : > { %v784_v60 = vmax.f32 %v780_v55, 0.0  ;;  %v770_v61 = vmax.f32 %v660_v56, %v755_v54 }
 0x16b   : > { %v650_v62 = vpop.f32.mrf.mxu0  ;;  %v760_v63 = vpop.f32.mrf.mxu1 }
 0x16c   : > { %789 = vst.msk [vmem:[%s1987_s5] sm:$0xff] %vm788_vm2, %v784_v60  ;;  %v781_v0 = vadd.f32 %v1130_v48, %v770_v61  ;;  %v661_v1 = vmax.f32 %v551_v59, %v650_v62 }
 0x16d   : > { %v652_v2 = vpop.f32.mrf.mxu0  ;;  %v762_v3 = vpop.f32.mrf.mxu1 }
 0x16e   : > { %v785_v5 = vmax.f32 %v781_v0, 0.0  ;;  %v771_v6 = vmax.f32 %v661_v1, %v760_v63 }
 0x16f   : > { %v655_v7 = vpop.f32.mrf.mxu0  ;;  %v765_v8 = vpop.f32.mrf.mxu1 }
 0x170   : > { %790 = vst.msk [vmem:[%s1987_s5 + $0x8] sm:$0xff] %vm788_vm2, %v785_v5  ;;  %v782_v9 = vadd.f32 %v1130_v48, %v771_v6  ;;  %v662_v10 = vmax.f32 %v552_v4, %v655_v7 }
 0x171   : > { %v657_v11 = vpop.f32.mrf.mxu0  ;;  %v767_v12 = vpop.f32.mrf.mxu1 }
 0x172   : > { %v786_v13 = vmax.f32 %v782_v9, 0.0  ;;  %v772_v14 = vmax.f32 %v662_v10, %v765_v8 }
 0x174   : > { %791 = vst.msk [vmem:[%s1987_s5 + $0x10] sm:$0xff] %vm788_vm2, %v786_v13  ;;  %v783_v15 = vadd.f32 %v1130_v48, %v772_v14  ;;  %799 = sbr.rel (!%p1513_p5) target bundleno = 416 (0x1a0), region = 66 }
 0x176   : > { %v787_v16 = vmax.f32 %v783_v15, 0.0 }
 0x178   : > { %792 = vst.msk [vmem:[%s1987_s5 + $0x18] sm:$0xff] %vm788_vm2, %v787_v16 }
 0x179   : > { %s2079_s14 = smov (!%p802_p4, %s801_s14), 4 }
 0x17a   : > { %s1133_s10 = sshll.u32 %s2079_s14, 7 }
 0x17b   : > { %p1136_p6 = scmp.eq.s32.totalorder %s1133_s10, 0 }
 0x17c   : > { %s2010_s20 = sshrl.u32 (!%p1136_p6), %s2079_s14, 2 }
 0x17d   : > { %810 = sbr.rel (%p1136_p6) target bundleno = 416 (0x1a0), region = 70  ;;  %p1137_p5 = scmp.le.s32.totalorder (!%p1136_p6), %s2010_s20, 0 }
 0x182   : > { %1019 = sbr.rel (%p1137_p5) target bundleno = 399 (0x18f), region = 178  ;;  %s2066_s15 = smov (!%p1137_p5), %s2004_s9 }
 0x183   : > { %s2067_s11 = smov (!%p1137_p5), %s1987_s5  ;;  %s2019_s17 = smov (!%p1137_p5), 0  }
 0x184   : > { %s1441_s18 = smov (!%p1137_p5), 0  }
 0x187 LB: >> { %v879_v17 = vld [vmem:[%s1435_s11] sm:$0xff]  ;;  %v881_v18 = vld [vmem:[%s1435_s11 + $0x8] sm:$0xff]  ;;  %v883_v19 = vld [vmem:[%s1435_s11 + $0x10] sm:$0xff]  ;;  %s887_s21 = sadd.s32 1, %s1439_s17  ;;  %s873_s18 = sadd.s32 1, %s1443_s18   ;;  %s1443_s18 = sphi %s1441_s18, %s873_s18   ;;  %s1439_s17 = sphi %s2019_s17, %s2068_s17   ;;  %s1435_s11 = sphi %s2067_s11, %s892_s11   ;;  %s1431_s15 = sphi %s2066_s15, %s893_s15  }
 0x188   : >> { %880 = vst [vmem:[%s1431_s15] sm:$0xff] %v879_v17  ;;  %882 = vst [vmem:[%s1431_s15 + $0x8] sm:$0xff] %v881_v18  ;;  %v885_v20 = vld [vmem:[%s1435_s11 + $0x18] sm:$0xff]  ;;  %p888_p7 = scmp.ge.s32.totalorder %s887_s21, %s2010_s20  ;;  %p872_p8 = scmp.ge.s32.totalorder %s873_s18, %s2010_s20 }
 0x189   : >> { %884 = vst [vmem:[%s1431_s15 + $0x10] sm:$0xff] %v883_v19  ;;  %886 = vst [vmem:[%s1431_s15 + $0x18] sm:$0xff] %v885_v20 }
 0x18a   : >> { %s2081_s21 = smov (%p888_p7, %s887_s21), 0  ;;  %875 = sbr.rel (!%p872_p8) target bundleno = 391 (0x187), region = 184 }
 0x18b   : >> { %s1138_s22 = sshll.u32 %s2081_s21, 5  ;;  %s2068_s17 = smov %s2081_s21 }
 0x18c   : >> { %s892_s11 = scalar_lea.vmem %s1987_s5, %s1138_s22 [#allocation3]   ;;  %s893_s15 = scalar_lea.vmem %s2004_s9, %s1138_s22  }
 0x18f PF: > { %s2035_s23 = sand.u32 3, %s2079_s14   ;;  %s1154_s25 = sshll.u32 %s2010_s20, 5 }
 0x190   : > { %s898_s26 = scalar_lea.vmem %s1987_s5, %s1154_s25 [#allocation3]   ;;  %s900_s27 = scalar_lea.vmem %s2004_s9, %s1154_s25  }
 0x191   : > { %p1143_p9 = scmp.le.s32.totalorder %s2035_s23, 0 }
 0x192   : > { %s1445_s29 = smov (!%p1143_p9), %s900_s27   ;;  %s1449_s24 = smov (!%p1143_p9), %s898_s26  }
 0x193   : > { %1033 = sbr.rel (%p1143_p9) target bundleno = 416 (0x1a0), region = 189  ;;  %s1453_s28 = smov (!%p1143_p9), 0  }
 0x194   : > { %s1457_s30 = smov (!%p1143_p9), 0  }
 0x198 LB: >> { %v910_v21 = vld [vmem:[%s1451_s24] sm:$0xff]  ;;  %s912_s4 = sadd.s32 1, %s1455_s28  ;;  %s904_s30 = sadd.s32 1, %s1459_s30   ;;  %s1459_s30 = sphi %s1457_s30, %s904_s30   ;;  %s1455_s28 = sphi %s1453_s28, %s1454_s28   ;;  %s1451_s24 = sphi %s1449_s24, %s917_s24   ;;  %s1447_s29 = sphi %s1445_s29, %s918_s29  }
 0x199   : >> { %911 = vst [vmem:[%s1447_s29] sm:$0xff] %v910_v21  ;;  %p913_p10 = scmp.ge.s32.totalorder %s912_s4, %s2035_s23  ;;  %p903_p11 = scmp.ge.s32.totalorder %s904_s30, %s2035_s23 }
 0x19b   : >> { %s2083_s4 = smov (%p913_p10, %s912_s4), 0  ;;  %906 = sbr.rel (!%p903_p11) target bundleno = 408 (0x198), region = 195 }
 0x19c   : >> { %s1144_s5 = sshll.u32 %s2083_s4, 3  ;;  %s1454_s28 = smov %s2083_s4  }
 0x19d   : >> { %s917_s24 = scalar_lea.vmem %s898_s26, %s1144_s5 [#allocation3]   ;;  %s918_s29 = scalar_lea.vmem %s900_s27, %s1144_s5  }
 0x1a0 PF: > { %p10_p12 = scmp.ge.s32.totalorder %s1501_s16, 4   ;;  %s2069_s12 = smov %s1391_s13 }
 0x1a1   : > { %s2070_s13 = smov %s1511_s19  ;;  %s2071_s14 = smov %s1501_s16 }
 0x1a2   :  { %12 = sbr.rel (!%p10_p12) target bundleno = 2 (0x2), region = 206 }

// kernel: convnet_forward.5
= control target key start
LH: loop header
LB: loop body
LE: loop exit
PB: predicated region body
PF: predicated region fallthrough
CT: control target
= control target key end

     0   :  { %v561_v1 = vmov 0.0   ;;  %vm87_vm0 = vcmask 130048   ;;  %vm562_vm1 = vmmov 0   ;;  %vm351_vm2 = vcmask 1043456   ;;  %s901_s1 = inlined_call_operand.vmem [shape: f32[400,120], index: 1, kind: input, shape index: {}]   ;;  %s902_s0 = inlined_call_operand.vmem [shape: f32[8,400], index: 0, kind: input, shape index: {}]   ;;  %s903_s3 = inlined_call_operand.vmem [shape: f32[120,84], index: 3, kind: input, shape index: {}]   ;;  %s904_s5 = inlined_call_operand.vmem [shape: f32[84,10], index: 5, kind: input, shape index: {}]   ;;  %s905_s2 = inlined_call_operand.vmem [shape: f32[1,120], index: 2, kind: input, shape index: {}]   ;;  %s906_s4 = inlined_call_operand.vmem [shape: f32[1,84], index: 4, kind: input, shape index: {}]   ;;  %s907_s6 = inlined_call_operand.vmem [shape: f32[1,10], index: 6, kind: input, shape index: {}]   ;;  %s908_s7 = inlined_call_operand.vmem [shape: f32[8,10], index: 7, kind: output, shape index: {}]  }
   0x1   :  { %v61_v0 = vld [vmem:[%s901_s1 + $0xf8] sm:$0xff]  ;;  %161 = vmatprep.subr.mxu1 %v561_v1  ;;  %v60_v4 = vld [vmem:[%s901_s1 + $0xf0] sm:$0xff]  ;;  %v59_v7 = vld [vmem:[%s901_s1 + $0xe8] sm:$0xff]  ;;  %vm254_vm3 = vcmask 982016   ;;  %vm347_vm4 = vcmask 687104   ;;  %vm425_vm5 = vcmask 80896  }
   0x2   :  { %v45_v2 = vld [vmem:[%s901_s1 + $0x78] sm:$0xff]  ;;  %438 = vmatprep.subr.mxu0 %v61_v0  ;;  %v44_v5 = vld [vmem:[%s901_s1 + $0x70] sm:$0xff]  ;;  %v75_v8 = vld [vmem:[%s901_s1 + $0x168] sm:$0xff] }
   0x3   :  { %v77_v3 = vld [vmem:[%s901_s1 + $0x178] sm:$0xff]  ;;  %v76_v6 = vld [vmem:[%s901_s1 + $0x170] sm:$0xff]  ;;  %439 = vmatpush3.msra.mxu0 %v45_v2  ;;  %v43_v9 = vld [vmem:[%s901_s1 + $0x68] sm:$0xff] }
   0x4   :  { %162 = vmatpush1.msra.mxu1 %v77_v3  ;;  %440 = vmatprep.subr.mxu0 %v60_v4  ;;  %v58_v10 = vld [vmem:[%s901_s1 + $0xe0] sm:$0xff]  ;;  %v57_v13 = vld [vmem:[%s901_s1 + $0xd8] sm:$0xff]  ;;  %v56_v16 = vld [vmem:[%s901_s1 + $0xd0] sm:$0xff] }
   0x5   :  { %163 = vmatprep.subr.mxu1 %v561_v1  ;;  %441 = vmatpush3.msra.mxu0 %v44_v5  ;;  %v74_v11 = vld [vmem:[%s901_s1 + $0x160] sm:$0xff]  ;;  %v73_v14 = vld [vmem:[%s901_s1 + $0x158] sm:$0xff]  ;;  %v72_v17 = vld [vmem:[%s901_s1 + $0x150] sm:$0xff] }
   0x6   :  { %164 = vmatpush1.msra.mxu1 %v76_v6  ;;  %442 = vmatprep.subr.mxu0 %v59_v7  ;;  %v42_v12 = vld [vmem:[%s901_s1 + $0x60] sm:$0xff]  ;;  %v41_v15 = vld [vmem:[%s901_s1 + $0x58] sm:$0xff]  ;;  %v40_v18 = vld [vmem:[%s901_s1 + $0x50] sm:$0xff] }
   0x7   :  { %165 = vmatprep.subr.mxu1 %v561_v1  ;;  %443 = vmatpush3.msra.mxu0 %v43_v9  ;;  %v55_v19 = vld [vmem:[%s901_s1 + $0xc8] sm:$0xff]  ;;  %v54_v22 = vld [vmem:[%s901_s1 + $0xc0] sm:$0xff]  ;;  %v53_v25 = vld [vmem:[%s901_s1 + $0xb8] sm:$0xff] }
   0x8   :  { %166 = vmatpush1.msra.mxu1 %v75_v8  ;;  %444 = vmatprep.subr.mxu0 %v58_v10  ;;  %v71_v20 = vld [vmem:[%s901_s1 + $0x148] sm:$0xff]  ;;  %v70_v23 = vld [vmem:[%s901_s1 + $0x140] sm:$0xff]  ;;  %v69_v26 = vld [vmem:[%s901_s1 + $0x138] sm:$0xff] }
   0x9   :  { %167 = vmatprep.subr.mxu1 %v561_v1  ;;  %445 = vmatpush3.msra.mxu0 %v42_v12  ;;  %v39_v21 = vld [vmem:[%s901_s1 + $0x48] sm:$0xff]  ;;  %v38_v24 = vld [vmem:[%s901_s1 + $0x40] sm:$0xff]  ;;  %v37_v27 = vld [vmem:[%s901_s1 + $0x38] sm:$0xff] }
   0xa   :  { %168 = vmatpush1.msra.mxu1 %v74_v11  ;;  %446 = vmatprep.subr.mxu0 %v57_v13  ;;  %v52_v28 = vld [vmem:[%s901_s1 + $0xb0] sm:$0xff]  ;;  %v51_v31 = vld [vmem:[%s901_s1 + $0xa8] sm:$0xff]  ;;  %v50_v34 = vld [vmem:[%s901_s1 + $0xa0] sm:$0xff] }
   0xb   :  { %169 = vmatprep.subr.mxu1 %v561_v1  ;;  %447 = vmatpush3.msra.mxu0 %v41_v15  ;;  %v68_v29 = vld [vmem:[%s901_s1 + $0x130] sm:$0xff]  ;;  %v67_v32 = vld [vmem:[%s901_s1 + $0x128] sm:$0xff]  ;;  %v66_v35 = vld [vmem:[%s901_s1 + $0x120] sm:$0xff] }
   0xc   :  { %170 = vmatpush1.msra.mxu1 %v73_v14  ;;  %448 = vmatprep.subr.mxu0 %v56_v16  ;;  %v36_v30 = vld [vmem:[%s901_s1 + $0x30] sm:$0xff]  ;;  %v35_v33 = vld [vmem:[%s901_s1 + $0x28] sm:$0xff]  ;;  %v34_v36 = vld [vmem:[%s901_s1 + $0x20] sm:$0xff] }
   0xd   :  { %171 = vmatprep.subr.mxu1 %v561_v1  ;;  %449 = vmatpush3.msra.mxu0 %v40_v18  ;;  %v49_v37 = vld [vmem:[%s901_s1 + $0x98] sm:$0xff]  ;;  %v48_v40 = vld [vmem:[%s901_s1 + $0x90] sm:$0xff]  ;;  %v47_v43 = vld [vmem:[%s901_s1 + $0x88] sm:$0xff] }
   0xe   :  { %172 = vmatpush1.msra.mxu1 %v72_v17  ;;  %450 = vmatprep.subr.mxu0 %v55_v19  ;;  %v65_v38 = vld [vmem:[%s901_s1 + $0x118] sm:$0xff]  ;;  %v64_v41 = vld [vmem:[%s901_s1 + $0x110] sm:$0xff]  ;;  %v63_v44 = vld [vmem:[%s901_s1 + $0x108] sm:$0xff] }
   0xf   :  { %173 = vmatprep.subr.mxu1 %v561_v1  ;;  %451 = vmatpush3.msra.mxu0 %v39_v21  ;;  %v33_v39 = vld [vmem:[%s901_s1 + $0x18] sm:$0xff]  ;;  %v32_v42 = vld [vmem:[%s901_s1 + $0x10] sm:$0xff]  ;;  %v31_v45 = vld [vmem:[%s901_s1 + $0x8] sm:$0xff] }
  0x10   :  { %174 = vmatpush1.msra.mxu1 %v71_v20  ;;  %452 = vmatprep.subr.mxu0 %v54_v22  ;;  %v46_v46 = vld [vmem:[%s901_s1 + $0x80] sm:$0xff]  ;;  %v27_v47 = vld [vmem:[%s902_s0 + $0x8] sm:$0xff]  ;;  %v29_v52 = vld [vmem:[%s902_s0 + $0x18] sm:$0xff] }
  0x11   :  { %175 = vmatprep.subr.mxu1 %v561_v1  ;;  %453 = vmatpush3.msra.mxu0 %v38_v24  ;;  %v30_v48 = vld [vmem:[%s901_s1] sm:$0xff]  ;;  %v79_v51 = vld [vmem:[%s901_s1 + $0x188] sm:$0xff]  ;;  %v246_v54 = vld [vmem:[%s903_s3 + $0x70] sm:$0xff] }
  0x12   :  { %176 = vmatpush1.msra.mxu1 %v70_v23  ;;  %454 = vmatprep.subr.mxu0 %v53_v25  ;;  %v62_v49 = vld [vmem:[%s901_s1 + $0x100] sm:$0xff]  ;;  %v28_v55 = vld [vmem:[%s902_s0 + $0x10] sm:$0xff]  ;;  %v245_v56 = vld [vmem:[%s903_s3 + $0x68] sm:$0xff] }
  0x13   :  { %177 = vmatprep.subr.mxu1 %v561_v1  ;;  %455 = vmatpush3.msra.mxu0 %v37_v27  ;;  %v26_v50 = vld [vmem:[%s902_s0] sm:$0xff]  ;;  %v243_v58 = vld [vmem:[%s903_s3 + $0x58] sm:$0xff]  ;;  %v242_v59 = vld [vmem:[%s903_s3 + $0x50] sm:$0xff] }
  0x14   :  { %178 = vmatpush1.msra.mxu1 %v69_v26  ;;  %456 = vmatprep.subr.mxu0 %v52_v28  ;;  %v78_v53 = vld [vmem:[%s901_s1 + $0x180] sm:$0xff]  ;;  %v241_v60 = vld [vmem:[%s903_s3 + $0x48] sm:$0xff]  ;;  %v239_v62 = vld [vmem:[%s903_s3 + $0x38] sm:$0xff] }
  0x15   :  { %179 = vmatprep.subr.mxu1 %v561_v1  ;;  %457 = vmatpush3.msra.mxu0 %v36_v30  ;;  %v244_v57 = vld [vmem:[%s903_s3 + $0x60] sm:$0xff]  ;;  %v238_v63 = vld [vmem:[%s903_s3 + $0x30] sm:$0xff]  ;;  %v237_v0 = vld [vmem:[%s903_s3 + $0x28] sm:$0xff] }
  0x16   :  { %180 = vmatpush1.msra.mxu1 %v68_v29  ;;  %458 = vmatprep.subr.mxu0 %v51_v31  ;;  %v240_v61 = vld [vmem:[%s903_s3 + $0x40] sm:$0xff]  ;;  %v235_v3 = vld [vmem:[%s903_s3 + $0x18] sm:$0xff]  ;;  %v234_v4 = vld [vmem:[%s903_s3 + $0x10] sm:$0xff] }
  0x17   :  { %181 = vmatprep.subr.mxu1 %v561_v1  ;;  %459 = vmatpush3.msra.mxu0 %v35_v33  ;;  %v236_v2 = vld [vmem:[%s903_s3 + $0x20] sm:$0xff]  ;;  %v233_v5 = vld [vmem:[%s903_s3 + $0x8] sm:$0xff]  ;;  %v339_v7 = vld [vmem:[%s904_s5 + $0x50] sm:$0xf] }
  0x18   :  { %182 = vmatpush1.msra.mxu1 %v67_v32  ;;  %460 = vmatprep.subr.mxu0 %v50_v34  ;;  %v232_v6 = vld [vmem:[%s903_s3] sm:$0xff]  ;;  %v338_v8 = vld [vmem:[%s904_s5 + $0x48] sm:$0xff]  ;;  %v336_v10 = vld [vmem:[%s904_s5 + $0x38] sm:$0xff] }
  0x19   :  { %183 = vmatprep.subr.mxu1 %v561_v1  ;;  %461 = vmatpush3.msra.mxu0 %v34_v36  ;;  %v337_v9 = vld [vmem:[%s904_s5 + $0x40] sm:$0xff]  ;;  %v335_v11 = vld [vmem:[%s904_s5 + $0x30] sm:$0xff]  ;;  %v334_v12 = vld [vmem:[%s904_s5 + $0x28] sm:$0xff] }
  0x1a   :  { %184 = vmatpush1.msra.mxu1 %v66_v35  ;;  %462 = vmatprep.subr.mxu0 %v49_v37  ;;  %v333_v13 = vld [vmem:[%s904_s5 + $0x20] sm:$0xff]  ;;  %v332_v14 = vld [vmem:[%s904_s5 + $0x18] sm:$0xff]  ;;  %v331_v24 = vld [vmem:[%s904_s5 + $0x10] sm:$0xff] }
  0x1b   :  { %185 = vmatprep.subr.mxu1 %v561_v1  ;;  %463 = vmatpush3.msra.mxu0 %v33_v39  ;;  %v431_v17 = vld [vmem:[%s905_s2] ss:$0 sm:$0xff]  ;;  %v330_v25 = vld [vmem:[%s904_s5 + $0x8] sm:$0xff] }
  0x1c   :  { %186 = vmatpush1.msra.mxu1 %v65_v38  ;;  %464 = vmatprep.subr.mxu0 %v48_v40  ;;  %v329_v26 = vld [vmem:[%s904_s5] sm:$0xff] }
  0x1d   :  { %187 = vmatprep.subr.mxu1 %v561_v1  ;;  %465 = vmatpush3.msra.mxu0 %v32_v42  ;;  %v433_v27 = vld [vmem:[%s906_s4] ss:$0 sm:$0xff] }
  0x1e   :  { %188 = vmatpush1.msra.mxu1 %v64_v41  ;;  %466 = vmatprep.subr.mxu0 %v47_v43  ;;  %v435_v32 = vld [vmem:[%s907_s6] ss:$0 sm:$0xff] }
  0x1f   :  { %189 = vmatprep.subr.mxu1 %v561_v1  ;;  %467 = vmatpush3.msra.mxu0 %v31_v45 }
  0x20   :  { %190 = vmatpush1.msra.mxu1 %v63_v44  ;;  %468 = vmatprep.subr.mxu0 %v46_v46 }
  0x21   :  { %191 = vmatprep.subr.mxu1 %v561_v1  ;;  %155 = vmatprep.mubr.f32.mxu0 %v27_v47 }
  0x22   :  { %469 = vmatpush3.msra.mxu0 %v30_v48  ;;  %192 = vmatpush1.msra.mxu1 %v62_v49 }
  0x23   :  { %156 = vmatmul.mubr.f32.vlgmr.msra.gmra.mxu0 %v26_v50  ;;  %221 = vmatprep.subr.mxu1 %v561_v1 }
  0x24   :  { %222 = vmatpush2.msra.mxu1 %v79_v51  ;;  %432 = vmatprep.mubr.msk.f32.mxu1 %vm87_vm0, %v29_v52 }
  0x25   :  { %223 = vmatprep.subr.mxu1 %v561_v1  ;;  %501 = vmatprep.subr.mxu0 %v561_v1 }
  0x26   :  { %224 = vmatpush2.msra.mxu1 %v78_v53  ;;  %502 = vmatpush3.msra.mxu0 %v246_v54 }
  0x27   :  { %226 = vmatmul.mubr.f32.vlgmr.msra.gmra.mxu1 %v28_v55  ;;  %503 = vmatprep.subr.mxu0 %v561_v1 }
  0x28   :  { %504 = vmatpush3.msra.mxu0 %v245_v56  ;;  %534 = vmatprep.subr.mxu1 %v561_v1 }
  0x29   :  { %505 = vmatprep.subr.mxu0 %v561_v1  ;;  %531 = vmatprep.mubr.msk.f32.mxu0 %vm562_vm1, %v561_v1 }
  0x2a   :  { %506 = vmatpush3.msra.mxu0 %v244_v57  ;;  %556 = vmatprep.mubr.msk.f32.mxu1 %vm562_vm1, %v561_v1 }
  0x2b   :  { %507 = vmatprep.subr.mxu0 %v561_v1  ;;  %535 = vmatpush3.msk.msra.mxu1 %vm351_vm2, %v339_v7 }
  0x2c   :  { %508 = vmatpush3.msra.mxu0 %v243_v58  ;;  %536 = vmatprep.subr.mxu1 %v561_v1 }
  0x2d   :  { %509 = vmatprep.subr.mxu0 %v561_v1  ;;  %537 = vmatpush3.msra.mxu1 %v338_v8 }
  0x2e   :  { %510 = vmatpush3.msra.mxu0 %v242_v59  ;;  %538 = vmatprep.subr.mxu1 %v561_v1 }
  0x2f   :  { %511 = vmatprep.subr.mxu0 %v561_v1  ;;  %539 = vmatpush3.msra.mxu1 %v337_v9 }
  0x30   :  { %512 = vmatpush3.msra.mxu0 %v241_v60  ;;  %540 = vmatprep.subr.mxu1 %v561_v1 }
  0x31   :  { %513 = vmatprep.subr.mxu0 %v561_v1  ;;  %541 = vmatpush3.msra.mxu1 %v336_v10 }
  0x32   :  { %514 = vmatpush3.msra.mxu0 %v240_v61  ;;  %542 = vmatprep.subr.mxu1 %v561_v1 }
  0x33   :  { %515 = vmatprep.subr.mxu0 %v561_v1  ;;  %543 = vmatpush3.msra.mxu1 %v335_v11 }
  0x34   :  { %516 = vmatpush3.msra.mxu0 %v239_v62  ;;  %544 = vmatprep.subr.mxu1 %v561_v1 }
  0x35   :  { %517 = vmatprep.subr.mxu0 %v561_v1  ;;  %545 = vmatpush3.msra.mxu1 %v334_v12 }
  0x36   :  { %518 = vmatpush3.msra.mxu0 %v238_v63  ;;  %546 = vmatprep.subr.mxu1 %v561_v1 }
  0x37   :  { %519 = vmatprep.subr.mxu0 %v561_v1  ;;  %547 = vmatpush3.msra.mxu1 %v333_v13 }
  0x38   :  { %520 = vmatpush3.msra.mxu0 %v237_v0  ;;  %548 = vmatprep.subr.mxu1 %v561_v1 }
  0x39   :  { %521 = vmatprep.subr.mxu0 %v561_v1  ;;  %549 = vmatpush3.msra.mxu1 %v332_v14 }
  0x3a   :  { %522 = vmatpush3.msra.mxu0 %v236_v2  ;;  %550 = vmatprep.subr.mxu1 %v561_v1 }
  0x3b   :  { %523 = vmatprep.subr.mxu0 %v561_v1  ;;  %551 = vmatpush3.msra.mxu1 %v331_v24 }
  0x3c   :  { %524 = vmatpush3.msra.mxu0 %v235_v3  ;;  %552 = vmatprep.subr.mxu1 %v561_v1 }
  0x3d   :  { %525 = vmatprep.subr.mxu0 %v561_v1  ;;  %553 = vmatpush3.msra.mxu1 %v330_v25 }
  0x3e   :  { %526 = vmatpush3.msra.mxu0 %v234_v4  ;;  %554 = vmatprep.subr.mxu1 %v561_v1 }
  0x3f   :  { %527 = vmatprep.subr.mxu0 %v561_v1  ;;  %555 = vmatpush3.msra.mxu1 %v329_v26 }
  0x40   :  { %528 = vmatpush3.msra.mxu0 %v233_v5 }
  0x41   :  { %529 = vmatprep.subr.mxu0 %v561_v1 }
  0x42   :  { %530 = vmatpush3.msra.mxu0 %v232_v6 }
  0xe3   :  { %v470_v15 = vpop.f32.mrf.mxu0 }
  0xe5   :  { %v471_v16 = vpop.f32.mrf.mxu0 }
  0xe6   :  { %v472_v18 = vadd.f32 %v471_v16, %v470_v15 }
  0xe7   :  { %v227_v19 = vpop.f32.mrf.mxu1 }
  0xe8   :  { %v158_v20 = vadd.f32 %v472_v18, %v431_v17 }
  0xe9   :  { %v229_v21 = vpop.f32.mrf.mxu1 }
  0xea   :  { %v228_v22 = vadd.f32 %v227_v19, %v158_v20 }
  0xec   :  { %v231_v23 = vmax.f32 %v228_v22, 0.0 }
  0xee   :  { %532 = vmatmul.mubr.msk.f32.vlgmr.msra.gmra.mxu0 %vm254_vm3, %v231_v23 }
 0x1ae   :  { %v324_v28 = vpop.f32.mrf.mxu0 }
 0x1af   :  { %v325_v29 = vadd.f32 %v433_v27, %v324_v28 }
 0x1b0   :  { %v533_v30 = vpop.f32.mrf.mxu0 }
 0x1b1   :  { %v328_v31 = vmax.f32 %v325_v29, 0.0 }
 0x1b3   :  { %557 = vmatmul.mubr.msk.f32.vlgmr.msra.gmra.mxu1 %vm347_vm4, %v328_v31 }
 0x273   :  { %v421_v1 = vpop.f32.mrf.mxu1 }
 0x274   :  { %v422_v33 = vadd.f32 %v435_v32, %v421_v1 }
 0x275   :  { %v558_v34 = vpop.f32.mrf.mxu1 }
 0x276   :  { %426 = vst.msk [vmem:[%s908_s7] sm:$0xff] %vm425_vm5, %v422_v33 }

</bundles_post_ra>
